<compile_context>
chip_gen: v7x
topology: tpu7x:2x2x1
jax: 0.10.0
libtpu: 0.0.40
codegen_flags: <defaults>
</compile_context>

<pallas_src>
import functools

import jax
import jax.numpy as jnp
from jax.experimental import pallas as pl
from jax.experimental.pallas import tpu as pltpu

DIM = 32          # hidden dim (module default 150; small for the demo)
DEPTH = 2
P = 4             # num_particles
OUTDIM = 1


def round_up(x, m):
    return ((x + m - 1) // m) * m


# ----------------------------------------------------------------------------
# Pallas kernels (fully fused, bf16 MXU / f32 epilogue)
# ----------------------------------------------------------------------------
def _gine_layers_kernel(h_ref, ea_ref, g_ref, s_ref,
                        we_ref, be_ref, w1_ref, b1_ref, w2_ref, b2_ref,
                        wro_ref, bro_ref, h_out_ref, ro_out_ref, *, num_layers):
    f32, bf16 = jnp.float32, jnp.bfloat16
    h = h_ref[0]                 # (Np, D) f32  current particle's nodes
    ea = ea_ref[0]               # (Ep, D) bf16 shared edge attributes
    g = g_ref[...]               # (Ep, Np) bf16 src-gather one-hot
    s = s_ref[...]               # (Np, Ep) bf16 dst-scatter one-hot
    for l in range(num_layers):
        e = jnp.dot(ea, we_ref[l], preferred_element_type=f32) + be_ref[l]   # (Ep, D)
        hs = jnp.dot(g, h.astype(bf16), preferred_element_type=f32)          # (Ep, D)
        msg = jnp.maximum(hs + e, 0.0).astype(bf16)
        agg = jnp.dot(s, msg, preferred_element_type=f32)                    # (Np, D)
        t = (h + agg).astype(bf16)
        h1 = jnp.maximum(
            jnp.dot(t, w1_ref[l], preferred_element_type=f32) + b1_ref[l], 0.0)
        h = jnp.maximum(
            jnp.dot(h1.astype(bf16), w2_ref[l], preferred_element_type=f32)
            + b2_ref[l], 0.0)
    h_out_ref[0] = h
    ro = jnp.dot(h.astype(bf16), wro_ref[...], preferred_element_type=f32) + bro_ref[...]
    ro_out_ref[0] = ro


def gine_forward(conv, h, ea, g_mat, s_mat):
    """Run all layers of one GNN conv (+ readout) in a single pallas_call.

    h: (P_, Np, D) f32, ea: (1, Ep, D) bf16 (shared per particle).
    Returns (h_new, readout), each (P_, Np, D) f32.
    """
    P_, Np, D = h.shape
    Ep = ea.shape[1]
    L = conv["we"].shape[0]
    flops = 2 * P_ * (L * (Ep * D * D + 2 * Ep * Np * D + 2 * Np * D * D) + Np * D * D)
    bytes_accessed = (4 * P_ * 3 * Np * D                    # h in + 2 f32 outputs
                      + 2 * (Ep * D + 2 * Ep * Np)           # bf16 ea + one-hots
                      + 2 * L * 3 * D * D + 4 * L * 3 * D    # layer weights/biases
                      + 2 * D * D + 4 * D)                   # readout
    h_out, ro_out = pl.pallas_call(
        functools.partial(_gine_layers_kernel, num_layers=L),
        out_shape=(jax.ShapeDtypeStruct((P_, Np, D), jnp.float32),
                   jax.ShapeDtypeStruct((P_, Np, D), jnp.float32)),
        grid=(P_,),
        in_specs=[
            pl.BlockSpec((1, Np, D), lambda p: (p, 0, 0)),    # h (per particle)
            pl.BlockSpec((1, Ep, D), lambda p: (0, 0, 0)),    # edge_attr (shared)
            pl.BlockSpec((Ep, Np), lambda p: (0, 0)),         # src one-hot (shared)
            pl.BlockSpec((Np, Ep), lambda p: (0, 0)),         # dst one-hot (shared)
            pl.BlockSpec((L, D, D), lambda p: (0, 0, 0)),     # edge W
            pl.BlockSpec((L, 1, D), lambda p: (0, 0, 0)),     # edge b
            pl.BlockSpec((L, D, D), lambda p: (0, 0, 0)),     # lin1 W
            pl.BlockSpec((L, 1, D), lambda p: (0, 0, 0)),     # lin1 b
            pl.BlockSpec((L, D, D), lambda p: (0, 0, 0)),     # lin2 W
            pl.BlockSpec((L, 1, D), lambda p: (0, 0, 0)),     # lin2 b
            pl.BlockSpec((D, D), lambda p: (0, 0)),           # readout W
            pl.BlockSpec((1, D), lambda p: (0, 0)),           # readout b
        ],
        out_specs=(pl.BlockSpec((1, Np, D), lambda p: (p, 0, 0)),
                   pl.BlockSpec((1, Np, D), lambda p: (p, 0, 0))),
        compiler_params=pltpu.CompilerParams(dimension_semantics=("parallel",)),
        cost_estimate=pl.CostEstimate(flops=flops, transcendentals=0,
                                      bytes_accessed=bytes_accessed),
    )(h, ea, g_mat, s_mat, conv["we"], conv["be"], conv["w1"], conv["b1"],
      conv["w2"], conv["b2"], conv["wro"], conv["bro"])
    return h_out, ro_out


def _policy_kernel(h_ref, w1_ref, b1_ref, w2_ref, b2_ref, w3_ref, b3_ref, o_ref):
    f32, bf16 = jnp.float32, jnp.bfloat16
    h = h_ref[0].astype(bf16)                                           # (Np, D)
    s1 = jnp.maximum(
        jnp.dot(h, w1_ref[...], preferred_element_type=f32) + b1_ref[...], 0.0)
    s2 = jnp.maximum(
        jnp.dot(s1.astype(bf16), w2_ref[...], preferred_element_type=f32)
        + b2_ref[...], 0.0)
    # lane-dense score row: (8, D) @ (Np, D)^T -> (8, Np); row 0 holds w3^T.
    sc = jax.lax.dot_general(w3_ref[...], s2.astype(bf16),
                             dimension_numbers=(((1,), (1,)), ((), ())),
                             preferred_element_type=f32)
    o_ref[0] = sc + b3_ref[...]


def policy_forward(pol, h):
    """Fused 3-layer policy MLP + sum(-1) -> per-node score, (P_, Np)."""
    P_, Np, D = h.shape
    out = pl.pallas_call(
        _policy_kernel,
        out_shape=jax.ShapeDtypeStruct((P_, 8, Np), jnp.float32),
        grid=(P_,),
        in_specs=[
            pl.BlockSpec((1, Np, D), lambda p: (p, 0, 0)),
            pl.BlockSpec((D, D), lambda p: (0, 0)),
            pl.BlockSpec((1, D), lambda p: (0, 0)),
            pl.BlockSpec((D, D), lambda p: (0, 0)),
            pl.BlockSpec((1, D), lambda p: (0, 0)),
            pl.BlockSpec((8, D), lambda p: (0, 0)),           # w3^T in row 0
            pl.BlockSpec((1, 1), lambda p: (0, 0)),           # b3 scalar
        ],
        out_specs=pl.BlockSpec((1, 8, Np), lambda p: (p, 0, 0)),
        compiler_params=pltpu.CompilerParams(dimension_semantics=("parallel",)),
    )(h, pol["w1"], pol["b1"], pol["w2"], pol["b2"], pol["w3r"], pol["b3"])
    return out[:, 0, :]


def _relabel_kernel(x_ref, w1_ref, b1_ref, w2_ref, b2_ref, o_ref):
    f32, bf16 = jnp.float32, jnp.bfloat16
    x = x_ref[...].astype(bf16)
    h1 = jnp.maximum(
        jnp.dot(x, w1_ref[...], preferred_element_type=f32) + b1_ref[...], 0.0)
    h2 = jnp.dot(h1.astype(bf16), w2_ref[...], preferred_element_type=f32) + b2_ref[...]
    o_ref[...] = jnp.maximum(h2, 0.0)      # outer relu from transition()


def relabel_forward(rel, x):
    M, D = x.shape
    return pl.pallas_call(
        _relabel_kernel,
        out_shape=jax.ShapeDtypeStruct((M, D), jnp.float32),
        grid=(1,),
        in_specs=[pl.BlockSpec((M, D), lambda i: (0, 0)),
                  pl.BlockSpec((D, D), lambda i: (0, 0)),
                  pl.BlockSpec((1, D), lambda i: (0, 0)),
                  pl.BlockSpec((D, D), lambda i: (0, 0)),
                  pl.BlockSpec((1, D), lambda i: (0, 0))],
        out_specs=pl.BlockSpec((M, D), lambda i: (0, 0)),
    )(x, rel["w1"], rel["b1"], rel["w2"], rel["b2"])


def _mlp3_kernel(x_ref, w1_ref, b1_ref, w2_ref, b2_ref, w3_ref, b3_ref, o_ref):
    f32, bf16 = jnp.float32, jnp.bfloat16
    x = x_ref[...].astype(bf16)
    h1 = jnp.maximum(
        jnp.dot(x, w1_ref[...], preferred_element_type=f32) + b1_ref[...], 0.0)
    h2 = jnp.maximum(
        jnp.dot(h1.astype(bf16), w2_ref[...], preferred_element_type=f32)
        + b2_ref[...], 0.0)
    o_ref[...] = jnp.dot(h2.astype(bf16), w3_ref[...],
                         preferred_element_type=f32) + b3_ref[...]


def mlp3_forward(mlp, x):
    M, Din = x.shape
    H1 = mlp["w1"].shape[1]
    H2 = mlp["w2"].shape[1]
    Do = mlp["w3"].shape[1]
    return pl.pallas_call(
        _mlp3_kernel,
        out_shape=jax.ShapeDtypeStruct((M, Do), jnp.float32),
        grid=(1,),
        in_specs=[pl.BlockSpec((M, Din), lambda i: (0, 0)),
                  pl.BlockSpec((Din, H1), lambda i: (0, 0)),
                  pl.BlockSpec((1, H1), lambda i: (0, 0)),
                  pl.BlockSpec((H1, H2), lambda i: (0, 0)),
                  pl.BlockSpec((1, H2), lambda i: (0, 0)),
                  pl.BlockSpec((H2, Do), lambda i: (0, 0)),
                  pl.BlockSpec((1, Do), lambda i: (0, 0))],
        out_specs=pl.BlockSpec((M, Do), lambda i: (0, 0)),
    )(x, mlp["w1"], mlp["b1"], mlp["w2"], mlp["b2"], mlp["w3"], mlp["b3"])


# ----------------------------------------------------------------------------
# Deterministic parameter init + one-time weight prep (stack / cast bf16)
# ----------------------------------------------------------------------------
def init_linear(key, fan_in, fan_out):
    k1, k2 = jax.random.split(key)
    lim = 1.0 / jnp.sqrt(jnp.float32(fan_in))
    w = jax.random.uniform(k1, (fan_in, fan_out), jnp.float32, -lim, lim)
    b = jax.random.uniform(k2, (fan_out,), jnp.float32, -lim, lim)
    return {"w": w, "b": b}


def init_gnn(key, num_layers, dim):
    keys = jax.random.split(key, 3 * num_layers + 1)
    layers = []
    for l in range(num_layers):
        layers.append({"edge": init_linear(keys[3 * l + 0], dim, dim),
                       "lin1": init_linear(keys[3 * l + 1], dim, dim),
                       "lin2": init_linear(keys[3 * l + 2], dim, dim)})
    return {"layers": layers, "readout": init_linear(keys[-1], dim, dim)}


def init_params(key, dim=DIM, depth=DEPTH, outdim=OUTDIM):
    keys = jax.random.split(key, 9 + depth)
    params = {
        "policy": [init_linear(keys[0], dim, dim),
                   init_linear(keys[1], dim, dim),
                   init_linear(keys[2], dim, 1)],
        "relabel": [init_linear(keys[3], dim, dim),
                    init_linear(keys[4], dim, dim)],
        "mlp": [init_linear(keys[5], (depth + 1) * dim, 2 * dim),
                init_linear(keys[6], 2 * dim, dim),
                init_linear(keys[7], dim, outdim)],
    }
    convs = [init_gnn(keys[8], 5, dim)]
    for i in range(depth):
        convs.append(init_gnn(keys[9 + i], 1, dim))
    params["convs"] = convs
    return params


def _prep_gnn(g):
    we = jnp.stack([l["edge"]["w"] for l in g["layers"]]).astype(jnp.bfloat16)
    be = jnp.stack([l["edge"]["b"] for l in g["layers"]])[:, None, :]
    w1 = jnp.stack([l["lin1"]["w"] for l in g["layers"]]).astype(jnp.bfloat16)
    b1 = jnp.stack([l["lin1"]["b"] for l in g["layers"]])[:, None, :]
    w2 = jnp.stack([l["lin2"]["w"] for l in g["layers"]]).astype(jnp.bfloat16)
    b2 = jnp.stack([l["lin2"]["b"] for l in g["layers"]])[:, None, :]
    return {"we": we, "be": be, "w1": w1, "b1": b1, "w2": w2, "b2": b2,
            "wro": g["readout"]["w"].astype(jnp.bfloat16),
            "bro": g["readout"]["b"][None, :]}


def prepare_params(params, dim=DIM):
    pol = params["policy"]
    w3r = jnp.zeros((8, dim), jnp.float32).at[0].set(pol[2]["w"][:, 0])
    return {
        "convs": [_prep_gnn(g) for g in params["convs"]],
        "policy": {"w1": pol[0]["w"].astype(jnp.bfloat16), "b1": pol[0]["b"][None, :],
                   "w2": pol[1]["w"].astype(jnp.bfloat16), "b2": pol[1]["b"][None, :],
                   "w3r": w3r.astype(jnp.bfloat16),
                   "b3": pol[2]["b"].reshape(1, 1)},
        "relabel": {"w1": params["relabel"][0]["w"].astype(jnp.bfloat16),
                    "b1": params["relabel"][0]["b"][None, :],
                    "w2": params["relabel"][1]["w"].astype(jnp.bfloat16),
                    "b2": params["relabel"][1]["b"][None, :]},
        "mlp": {"w1": params["mlp"][0]["w"].astype(jnp.bfloat16),
                "b1": params["mlp"][0]["b"][None, :],
                "w2": params["mlp"][1]["w"].astype(jnp.bfloat16),
                "b2": params["mlp"][1]["b"][None, :],
                "w3": params["mlp"][2]["w"].astype(jnp.bfloat16),
                "b3": params["mlp"][2]["b"][None, :]},
    }


# ----------------------------------------------------------------------------
# Forward (Pallas for dense compute, JAX glue for indexing / sampling)
# ----------------------------------------------------------------------------
def pfgnn_forward(prep, node_emb, edge_emb, edge_index, batch, key, *,
                  B, max_num_nodes):
    N, dim = node_emb.shape
    E = edge_index.shape[1]
    Np = round_up(N, 8)
    Ep = round_up(E, 8)
    src, dst = edge_index[0], edge_index[1]

    # One shared gather/scatter one-hot pair (S_comp = I_P (x) S): the composite
    # aggregation is P per-particle (Np,Ep)@(Ep,D) matmuls inside the kernel.
    g_mat = jnp.zeros((Ep, Np), jnp.bfloat16).at[jnp.arange(E), src].set(1.0)
    s_mat = jnp.zeros((Np, Ep), jnp.bfloat16).at[dst, jnp.arange(E)].set(1.0)

    # Pad once; stays padded across the whole DEPTH loop.
    ea = jnp.zeros((1, Ep, dim), jnp.bfloat16).at[0, :E].set(edge_emb.astype(jnp.bfloat16))
    h0 = jnp.zeros((1, Np, dim), jnp.float32).at[0, :N].set(node_emb.astype(jnp.float32))

    # convs[0]: 5 fused GINE layers + readout, one pallas_call.
    h_base, ro_base = gine_forward(prep["convs"][0], h0, ea, g_mat, s_mat)

    weight_prob = jnp.full((P, B), 1.0 / P, jnp.float32)
    weight_log = jnp.log(weight_prob)

    final_out_list = [jnp.broadcast_to(ro_base[:, :N, :], (P, N, dim))]
    weight_probs_list = [weight_prob[:, :, None, None]]
    log_probs = []

    h_comp = jnp.broadcast_to(h_base, (P, Np, dim))          # (P, Np, D)

    # static per-graph bookkeeping
    nn_per_graph = jax.ops.segment_sum(jnp.ones((N,), jnp.int32), batch, num_segments=B)
    cum = jnp.concatenate([jnp.zeros((1,), jnp.int32),
                           jnp.cumsum(nn_per_graph)[:-1]]).astype(jnp.int32)
    local = jnp.arange(N, dtype=jnp.int32) - cum[batch]
    flat_slot = batch * max_num_nodes + local                # (N,)
    p_idx = jnp.repeat(jnp.arange(P, dtype=jnp.int32), B)    # (P*B,)
    Mr = round_up(P * B, 8)
    alpha = 0.5

    for i in range(DEPTH):
        k_act = jax.random.fold_in(key, 2 * i)
        k_res = jax.random.fold_in(key, 2 * i + 1)

        # -------- sample_action: fused policy MLP + segment softmax ----------
        score = policy_forward(prep["policy"], h_comp)[:, :N]          # (P, N)
        scT = score.T                                                   # (N, P)
        mx = jax.ops.segment_max(scT, batch, num_segments=B)
        ex = jnp.exp(scT - mx[batch])
        denom = jax.ops.segment_sum(ex, batch, num_segments=B)
        probs = (ex / denom[batch]).T                                   # (P, N)

        dense = jnp.zeros((P, B * max_num_nodes), jnp.float32)
        dense = dense.at[:, flat_slot].set(probs).reshape(P, B, max_num_nodes)
        logits = jnp.where(dense > 0, jnp.log(dense), -jnp.inf)
        # TODO(synk): torch.multinomial has no Pallas equivalent; sampled with
        # jax.random.categorical in host JAX.
        perm_local = jax.random.categorical(k_act, logits, axis=-1)     # (P, B)
        picked = jnp.take_along_axis(dense, perm_local[..., None], axis=-1)[..., 0]
        log_probs.append(jnp.log(picked).T)                             # (B, P)
        node_idx = (cum[None, :] + perm_local).astype(jnp.int32)        # (P, B)

        # -------- transition: fused relabel MLP + scatter + fused GINE -------
        n_idx = node_idx.reshape(-1)
        hp = h_comp[p_idx, n_idx]                                       # (P*B, D)
        hp_p = jnp.zeros((Mr, dim), jnp.float32).at[:P * B].set(hp)
        r = relabel_forward(prep["relabel"], hp_p)[:P * B]
        new_ones = jnp.ones((P, Np, dim), jnp.float32).at[p_idx, n_idx].set(r)
        h_relab = h_comp * new_ones

        h_comp, ro_comp = gine_forward(prep["convs"][i + 1], h_relab, ea, g_mat, s_mat)
        final_out_list.append(ro_comp[:, :N, :])     # pre-resample readout (as in ref)

        # -------- resample (particle filter) ----------------------------------
        weight_prob = jnp.exp(weight_log)
        ws = alpha * weight_prob + (1.0 - alpha) / P                    # (P, B)
        # TODO(synk): multinomial(replacement=True) via jax.random.categorical.
        idx_bp = jax.random.categorical(k_res, jnp.log(ws.T)[:, None, :],
                                        axis=-1, shape=(B, P))          # (B, P)
        indices = idx_bp.T.astype(jnp.int32)                            # (P, B)
        flat = (jnp.arange(B, dtype=jnp.int32)[None, :] + indices * B).reshape(-1)
        wp = weight_prob.reshape(-1)[flat]
        w_new = wp / (alpha * wp + (1.0 - alpha) / P)
        wlog = jnp.log(w_new + 1e-29).reshape(P, B)
        weight_log = wlog - jax.scipy.special.logsumexp(wlog, axis=0, keepdims=True)
        weight_prob = jnp.exp(weight_log)
        weight_probs_list.append(weight_prob[:, :, None, None])

        idx_all = indices[:, batch]                                     # (P, N)
        h_real = h_comp[:, :N, :][idx_all, jnp.arange(N)[None, :]]      # (P, N, D)
        h_comp = h_comp.at[:, :N, :].set(h_real)
        # resampled readout is discarded (matches reference forward)

    # -------- readout pooling (scatter_add over batch) + weighting + MLP ------
    out_cat = jnp.concatenate(final_out_list, axis=-1)                  # (P, N, (D+1)*dim)
    pooled = jax.ops.segment_sum(
        jnp.transpose(out_cat, (1, 0, 2)).reshape(N, -1), batch, num_segments=B)
    pooled = pooled.reshape(B, P, DEPTH + 1, dim).transpose(1, 0, 2, 3)  # (P,B,D+1,dim)
    wcat = jnp.concatenate(weight_probs_list, axis=-2)                   # (P,B,D+1,1)
    out = (pooled * wcat).max(axis=0).reshape(B, -1)                     # (B,(D+1)*dim)

    Bp = round_up(B, 8)
    out_p = jnp.zeros((Bp, out.shape[1]), jnp.float32).at[:B].set(out)
    out = mlp3_forward(prep["mlp"], out_p)[:B]                           # (B, OUTDIM)

    log_probs = jnp.concatenate(log_probs, axis=1)                       # (B, DEPTH*P)
    return out, log_probs, B


# ----------------------------------------------------------------------------
if __name__ == "__main__":
    # small batch of 3 graphs with 5/6/7 nodes, bidirectional ring edges
    sizes = [5, 6, 7]
    B = len(sizes)
    N = sum(sizes)
    max_num_nodes = max(sizes)
    batch = jnp.concatenate(
        [jnp.full((s,), g, jnp.int32) for g, s in enumerate(sizes)])

    srcs, dsts = [], []
    off = 0
    for s in sizes:
        for n in range(s):
            srcs += [off + n, off + (n + 1) % s]
            dsts += [off + (n + 1) % s, off + n]
        off += s
    edge_index = jnp.array([srcs, dsts], dtype=jnp.int32)               # (2, 36)
    E = edge_index.shape[1]

    key = jax.random.PRNGKey(0)
    kn, ke, kp, ks = jax.random.split(key, 4)
    node_emb = jax.random.normal(kn, (N, DIM), jnp.float32)             # (18, 32)
    edge_emb = jax.random.normal(ke, (E, DIM), jnp.float32)             # (36, 32)
    params = init_params(kp)
    prep = prepare_params(params)

    fwd = jax.jit(pfgnn_forward, static_argnames=("B", "max_num_nodes"))
    out, log_probs, bsz = fwd(prep, node_emb, edge_emb, edge_index, batch, ks,
                              B=B, max_num_nodes=max_num_nodes)
    jax.block_until_ready((out, log_probs))

    assert out.shape == (B, OUTDIM)
    assert log_probs.shape == (B, DEPTH * P)
    assert int(bsz) == B
    print("KERNEL_OK")
</pallas_src>

<mosaic_0001>
module attributes {stable_mosaic.version = 11 : i64} {
  func.func @_policy_kernel(%arg0: i32, %arg1: memref<1x24x32xf32, #tpu.memory_space<vmem>>, %arg2: memref<32x32xbf16, #tpu.memory_space<vmem>>, %arg3: memref<1x32xf32, #tpu.memory_space<vmem>>, %arg4: memref<32x32xbf16, #tpu.memory_space<vmem>>, %arg5: memref<1x32xf32, #tpu.memory_space<vmem>>, %arg6: memref<8x32xbf16, #tpu.memory_space<vmem>>, %arg7: memref<1x1xf32, #tpu.memory_space<vmem>>, %arg8: memref<1x8x24xf32, #tpu.memory_space<vmem>>) attributes {dimension_semantics = [#tpu.dimension_semantics<parallel>], iteration_bounds = array<i64: 4>, scalar_prefetch = 0 : i64, scratch_operands = 0 : i64, tpu.core_type = #tpu.core_type<tc>, window_params = [{transform_indices = @transform_0, window_bounds = array<i64: 1, 24, 32>}, {pipeline_mode = #tpu.pipeline_mode<synchronous>, transform_indices = @transform_1, window_bounds = array<i64: 32, 32>}, {pipeline_mode = #tpu.pipeline_mode<synchronous>, transform_indices = @transform_2, window_bounds = array<i64: 1, 32>}, {pipeline_mode = #tpu.pipeline_mode<synchronous>, transform_indices = @transform_3, window_bounds = array<i64: 32, 32>}, {pipeline_mode = #tpu.pipeline_mode<synchronous>, transform_indices = @transform_4, window_bounds = array<i64: 1, 32>}, {pipeline_mode = #tpu.pipeline_mode<synchronous>, transform_indices = @transform_5, window_bounds = array<i64: 8, 32>}, {pipeline_mode = #tpu.pipeline_mode<synchronous>, transform_indices = @transform_6, window_bounds = array<i64: 1, 1>}, {transform_indices = @transform_7, window_bounds = array<i64: 1, 8, 24>}]} {
    %c0 = arith.constant 0 : index
    %c0_0 = arith.constant 0 : index
    %c0_1 = arith.constant 0 : index
    %0 = vector.load %arg1[%c0, %c0_0, %c0_1] : memref<1x24x32xf32, #tpu.memory_space<vmem>>, vector<1x24x32xf32>
    %1 = vector.shape_cast %0 : vector<1x24x32xf32> to vector<24x32xf32>
    %2 = arith.truncf %1 : vector<24x32xf32> to vector<24x32xbf16>
    %c0_2 = arith.constant 0 : index
    %c0_3 = arith.constant 0 : index
    %3 = vector.load %arg2[%c0_2, %c0_3] : memref<32x32xbf16, #tpu.memory_space<vmem>>, vector<32x32xbf16>
    %cst = arith.constant dense<0.000000e+00> : vector<24x32xf32>
    %4 = tpu.matmul %2, %3, %cst {dimension_numbers = #tpu.dot_dimension_numbers<[1], [0], [0], [1], [0, 0, 1, 1], [], []>} : vector<24x32xbf16>, vector<32x32xbf16>, vector<24x32xf32> -> vector<24x32xf32>
    %c0_4 = arith.constant 0 : index
    %c0_5 = arith.constant 0 : index
    %5 = vector.load %arg3[%c0_4, %c0_5] : memref<1x32xf32, #tpu.memory_space<vmem>>, vector<1x32xf32>
    %6 = vector.broadcast %5 : vector<1x32xf32> to vector<24x32xf32>
    %7 = arith.addf %4, %6 : vector<24x32xf32>
    %cst_6 = arith.constant 0.000000e+00 : f32
    %8 = vector.broadcast %cst_6 : f32 to vector<24x32xf32>
    %9 = arith.maximumf %7, %8 : vector<24x32xf32>
    %10 = arith.truncf %9 : vector<24x32xf32> to vector<24x32xbf16>
    %c0_7 = arith.constant 0 : index
    %c0_8 = arith.constant 0 : index
    %11 = vector.load %arg4[%c0_7, %c0_8] : memref<32x32xbf16, #tpu.memory_space<vmem>>, vector<32x32xbf16>
    %cst_9 = arith.constant dense<0.000000e+00> : vector<24x32xf32>
    %12 = tpu.matmul %10, %11, %cst_9 {dimension_numbers = #tpu.dot_dimension_numbers<[1], [0], [0], [1], [0, 0, 1, 1], [], []>} : vector<24x32xbf16>, vector<32x32xbf16>, vector<24x32xf32> -> vector<24x32xf32>
    %c0_10 = arith.constant 0 : index
    %c0_11 = arith.constant 0 : index
    %13 = vector.load %arg5[%c0_10, %c0_11] : memref<1x32xf32, #tpu.memory_space<vmem>>, vector<1x32xf32>
    %14 = vector.broadcast %13 : vector<1x32xf32> to vector<24x32xf32>
    %15 = arith.addf %12, %14 : vector<24x32xf32>
    %cst_12 = arith.constant 0.000000e+00 : f32
    %16 = vector.broadcast %cst_12 : f32 to vector<24x32xf32>
    %17 = arith.maximumf %15, %16 : vector<24x32xf32>
    %c0_13 = arith.constant 0 : index
    %c0_14 = arith.constant 0 : index
    %18 = vector.load %arg6[%c0_13, %c0_14] : memref<8x32xbf16, #tpu.memory_space<vmem>>, vector<8x32xbf16>
    %19 = arith.truncf %17 : vector<24x32xf32> to vector<24x32xbf16>
    %cst_15 = arith.constant dense<0.000000e+00> : vector<8x24xf32>
    %20 = tpu.matmul %18, %19, %cst_15 {dimension_numbers = #tpu.dot_dimension_numbers<[1], [1], [0], [0], [0, 0, 1, 0], [], []>} : vector<8x32xbf16>, vector<24x32xbf16>, vector<8x24xf32> -> vector<8x24xf32>
    %c0_16 = arith.constant 0 : index
    %c0_17 = arith.constant 0 : index
    %21 = vector.load %arg7[%c0_16, %c0_17] : memref<1x1xf32, #tpu.memory_space<vmem>>, vector<1x1xf32>
    %22 = vector.broadcast %21 : vector<1x1xf32> to vector<8x24xf32>
    %23 = arith.addf %20, %22 : vector<8x24xf32>
    %c0_18 = arith.constant 0 : index
    %c0_19 = arith.constant 0 : index
    %c0_20 = arith.constant 0 : index
    %24 = vector.load %arg8[%c0_18, %c0_19, %c0_20] : memref<1x8x24xf32, #tpu.memory_space<vmem>>, vector<1x8x24xf32>
    %25 = vector.shape_cast %24 : vector<1x8x24xf32> to vector<8x24xf32>
    %26 = vector.shape_cast %23 : vector<8x24xf32> to vector<1x8x24xf32>
    tpu.vector_store %arg8[%c0_18, %c0_19, %c0_20], %26 {strides = array<i32>} : memref<1x8x24xf32, #tpu.memory_space<vmem>>, vector<1x8x24xf32>,
    return
  }
  func.func @transform_0(%arg0: i32) -> (i32, i32, i32) {
    %c0_i32 = arith.constant 0 : i32
    %c0_i32_0 = arith.constant 0 : i32
    %c0_i32_1 = arith.constant 0 : i32
    return %arg0, %c0_i32, %c0_i32_0 : i32, i32, i32
  }
  func.func @transform_1(%arg0: i32) -> (i32, i32) {
    %c0_i32 = arith.constant 0 : i32
    %c0_i32_0 = arith.constant 0 : i32
    %c0_i32_1 = arith.constant 0 : i32
    return %c0_i32, %c0_i32_0 : i32, i32
  }
  func.func @transform_2(%arg0: i32) -> (i32, i32) {
    %c0_i32 = arith.constant 0 : i32
    %c0_i32_0 = arith.constant 0 : i32
    %c0_i32_1 = arith.constant 0 : i32
    return %c0_i32, %c0_i32_0 : i32, i32
  }
  func.func @transform_3(%arg0: i32) -> (i32, i32) {
    %c0_i32 = arith.constant 0 : i32
    %c0_i32_0 = arith.constant 0 : i32
    %c0_i32_1 = arith.constant 0 : i32
    return %c0_i32, %c0_i32_0 : i32, i32
  }
  func.func @transform_4(%arg0: i32) -> (i32, i32) {
    %c0_i32 = arith.constant 0 : i32
    %c0_i32_0 = arith.constant 0 : i32
    %c0_i32_1 = arith.constant 0 : i32
    return %c0_i32, %c0_i32_0 : i32, i32
  }
  func.func @transform_5(%arg0: i32) -> (i32, i32) {
    %c0_i32 = arith.constant 0 : i32
    %c0_i32_0 = arith.constant 0 : i32
    %c0_i32_1 = arith.constant 0 : i32
    return %c0_i32, %c0_i32_0 : i32, i32
  }
  func.func @transform_6(%arg0: i32) -> (i32, i32) {
    %c0_i32 = arith.constant 0 : i32
    %c0_i32_0 = arith.constant 0 : i32
    %c0_i32_1 = arith.constant 0 : i32
    return %c0_i32, %c0_i32_0 : i32, i32
  }
  func.func @transform_7(%arg0: i32) -> (i32, i32, i32) {
    %c0_i32 = arith.constant 0 : i32
    %c0_i32_0 = arith.constant 0 : i32
    %c0_i32_1 = arith.constant 0 : i32
    return %arg0, %c0_i32, %c0_i32_0 : i32, i32, i32
  }
}

module attributes {stable_mosaic.version = 11 : i64} {
  func.func @_gine_layers_kernel(%arg0: i32, %arg1: memref<1x24x32xf32, #tpu.memory_space<vmem>>, %arg2: memref<1x40x32xbf16, #tpu.memory_space<vmem>>, %arg3: memref<40x24xbf16, #tpu.memory_space<vmem>>, %arg4: memref<24x40xbf16, #tpu.memory_space<vmem>>, %arg5: memref<5x32x32xbf16, #tpu.memory_space<vmem>>, %arg6: memref<5x1x32xf32, #tpu.memory_space<vmem>>, %arg7: memref<5x32x32xbf16, #tpu.memory_space<vmem>>, %arg8: memref<5x1x32xf32, #tpu.memory_space<vmem>>, %arg9: memref<5x32x32xbf16, #tpu.memory_space<vmem>>, %arg10: memref<5x1x32xf32, #tpu.memory_space<vmem>>, %arg11: memref<32x32xbf16, #tpu.memory_space<vmem>>, %arg12: memref<1x32xf32, #tpu.memory_space<vmem>>, %arg13: memref<1x24x32xf32, #tpu.memory_space<vmem>>, %arg14: memref<1x24x32xf32, #tpu.memory_space<vmem>>) attributes {dimension_semantics = [#tpu.dimension_semantics<parallel>], iteration_bounds = array<i64: 1>, scalar_prefetch = 0 : i64, scratch_operands = 0 : i64, tpu.core_type = #tpu.core_type<tc>, window_params = [{transform_indices = @transform_0, window_bounds = array<i64: 1, 24, 32>}, {pipeline_mode = #tpu.pipeline_mode<synchronous>, transform_indices = @transform_1, window_bounds = array<i64: 1, 40, 32>}, {pipeline_mode = #tpu.pipeline_mode<synchronous>, transform_indices = @transform_2, window_bounds = array<i64: 40, 24>}, {pipeline_mode = #tpu.pipeline_mode<synchronous>, transform_indices = @transform_3, window_bounds = array<i64: 24, 40>}, {pipeline_mode = #tpu.pipeline_mode<synchronous>, transform_indices = @transform_4, window_bounds = array<i64: 5, 32, 32>}, {pipeline_mode = #tpu.pipeline_mode<synchronous>, transform_indices = @transform_5, window_bounds = array<i64: 5, 1, 32>}, {pipeline_mode = #tpu.pipeline_mode<synchronous>, transform_indices = @transform_6, window_bounds = array<i64: 5, 32, 32>}, {pipeline_mode = #tpu.pipeline_mode<synchronous>, transform_indices = @transform_7, window_bounds = array<i64: 5, 1, 32>}, {pipeline_mode = #tpu.pipeline_mode<synchronous>, transform_indices = @transform_8, window_bounds = array<i64: 5, 32, 32>}, {pipeline_mode = #tpu.pipeline_mode<synchronous>, transform_indices = @transform_9, window_bounds = array<i64: 5, 1, 32>}, {pipeline_mode = #tpu.pipeline_mode<synchronous>, transform_indices = @transform_10, window_bounds = array<i64: 32, 32>}, {pipeline_mode = #tpu.pipeline_mode<synchronous>, transform_indices = @transform_11, window_bounds = array<i64: 1, 32>}, {transform_indices = @transform_12, window_bounds = array<i64: 1, 24, 32>}, {transform_indices = @transform_13, window_bounds = array<i64: 1, 24, 32>}]} {
    %c0 = arith.constant 0 : index
    %c0_0 = arith.constant 0 : index
    %c0_1 = arith.constant 0 : index
    %0 = vector.load %arg1[%c0, %c0_0, %c0_1] : memref<1x24x32xf32, #tpu.memory_space<vmem>>, vector<1x24x32xf32>
    %1 = vector.shape_cast %0 : vector<1x24x32xf32> to vector<24x32xf32>
    %c0_2 = arith.constant 0 : index
    %c0_3 = arith.constant 0 : index
    %c0_4 = arith.constant 0 : index
    %2 = vector.load %arg2[%c0_2, %c0_3, %c0_4] : memref<1x40x32xbf16, #tpu.memory_space<vmem>>, vector<1x40x32xbf16>
    %3 = vector.shape_cast %2 : vector<1x40x32xbf16> to vector<40x32xbf16>
    %c0_5 = arith.constant 0 : index
    %c0_6 = arith.constant 0 : index
    %4 = vector.load %arg3[%c0_5, %c0_6] : memref<40x24xbf16, #tpu.memory_space<vmem>>, vector<40x24xbf16>
    %c0_7 = arith.constant 0 : index
    %c0_8 = arith.constant 0 : index
    %5 = vector.load %arg4[%c0_7, %c0_8] : memref<24x40xbf16, #tpu.memory_space<vmem>>, vector<24x40xbf16>
    %c0_9 = arith.constant 0 : index
    %c0_10 = arith.constant 0 : index
    %c0_11 = arith.constant 0 : index
    %6 = vector.load %arg5[%c0_9, %c0_10, %c0_11] : memref<5x32x32xbf16, #tpu.memory_space<vmem>>, vector<1x32x32xbf16>
    %7 = vector.shape_cast %6 : vector<1x32x32xbf16> to vector<32x32xbf16>
    %cst = arith.constant dense<0.000000e+00> : vector<40x32xf32>
    %8 = tpu.matmul %3, %7, %cst {dimension_numbers = #tpu.dot_dimension_numbers<[1], [0], [0], [1], [0, 0, 1, 1], [], []>} : vector<40x32xbf16>, vector<32x32xbf16>, vector<40x32xf32> -> vector<40x32xf32>
    %c0_12 = arith.constant 0 : index
    %c0_13 = arith.constant 0 : index
    %c0_14 = arith.constant 0 : index
    %9 = vector.load %arg6[%c0_12, %c0_13, %c0_14] : memref<5x1x32xf32, #tpu.memory_space<vmem>>, vector<1x1x32xf32>
    %10 = vector.shape_cast %9 : vector<1x1x32xf32> to vector<1x32xf32>
    %11 = vector.broadcast %10 : vector<1x32xf32> to vector<40x32xf32>
    %12 = arith.addf %8, %11 : vector<40x32xf32>
    %13 = arith.truncf %1 : vector<24x32xf32> to vector<24x32xbf16>
    %cst_15 = arith.constant dense<0.000000e+00> : vector<40x32xf32>
    %14 = tpu.matmul %4, %13, %cst_15 {dimension_numbers = #tpu.dot_dimension_numbers<[1], [0], [0], [1], [0, 0, 1, 1], [], []>} : vector<40x24xbf16>, vector<24x32xbf16>, vector<40x32xf32> -> vector<40x32xf32>
    %15 = arith.addf %14, %12 : vector<40x32xf32>
    %cst_16 = arith.constant 0.000000e+00 : f32
    %16 = vector.broadcast %cst_16 : f32 to vector<40x32xf32>
    %17 = arith.maximumf %15, %16 : vector<40x32xf32>
    %18 = arith.truncf %17 : vector<40x32xf32> to vector<40x32xbf16>
    %cst_17 = arith.constant dense<0.000000e+00> : vector<24x32xf32>
    %19 = tpu.matmul %5, %18, %cst_17 {dimension_numbers = #tpu.dot_dimension_numbers<[1], [0], [0], [1], [0, 0, 1, 1], [], []>} : vector<24x40xbf16>, vector<40x32xbf16>, vector<24x32xf32> -> vector<24x32xf32>
    %20 = arith.addf %1, %19 : vector<24x32xf32>
    %21 = arith.truncf %20 : vector<24x32xf32> to vector<24x32xbf16>
    %c0_18 = arith.constant 0 : index
    %c0_19 = arith.constant 0 : index
    %c0_20 = arith.constant 0 : index
    %22 = vector.load %arg7[%c0_18, %c0_19, %c0_20] : memref<5x32x32xbf16, #tpu.memory_space<vmem>>, vector<1x32x32xbf16>
    %23 = vector.shape_cast %22 : vector<1x32x32xbf16> to vector<32x32xbf16>
    %cst_21 = arith.constant dense<0.000000e+00> : vector<24x32xf32>
    %24 = tpu.matmul %21, %23, %cst_21 {dimension_numbers = #tpu.dot_dimension_numbers<[1], [0], [0], [1], [0, 0, 1, 1], [], []>} : vector<24x32xbf16>, vector<32x32xbf16>, vector<24x32xf32> -> vector<24x32xf32>
    %c0_22 = arith.constant 0 : index
    %c0_23 = arith.constant 0 : index
    %c0_24 = arith.constant 0 : index
    %25 = vector.load %arg8[%c0_22, %c0_23, %c0_24] : memref<5x1x32xf32, #tpu.memory_space<vmem>>, vector<1x1x32xf32>
    %26 = vector.shape_cast %25 : vector<1x1x32xf32> to vector<1x32xf32>
    %27 = vector.broadcast %26 : vector<1x32xf32> to vector<24x32xf32>
    %28 = arith.addf %24, %27 : vector<24x32xf32>
    %cst_25 = arith.constant 0.000000e+00 : f32
    %29 = vector.broadcast %cst_25 : f32 to vector<24x32xf32>
    %30 = arith.maximumf %28, %29 : vector<24x32xf32>
    %31 = arith.truncf %30 : vector<24x32xf32> to vector<24x32xbf16>
    %c0_26 = arith.constant 0 : index
    %c0_27 = arith.constant 0 : index
    %c0_28 = arith.constant 0 : index
    %32 = vector.load %arg9[%c0_26, %c0_27, %c0_28] : memref<5x32x32xbf16, #tpu.memory_space<vmem>>, vector<1x32x32xbf16>
    %33 = vector.shape_cast %32 : vector<1x32x32xbf16> to vector<32x32xbf16>
    %cst_29 = arith.constant dense<0.000000e+00> : vector<24x32xf32>
    %34 = tpu.matmul %31, %33, %cst_29 {dimension_numbers = #tpu.dot_dimension_numbers<[1], [0], [0], [1], [0, 0, 1, 1], [], []>} : vector<24x32xbf16>, vector<32x32xbf16>, vector<24x32xf32> -> vector<24x32xf32>
    %c0_30 = arith.constant 0 : index
    %c0_31 = arith.constant 0 : index
    %c0_32 = arith.constant 0 : index
    %35 = vector.load %arg10[%c0_30, %c0_31, %c0_32] : memref<5x1x32xf32, #tpu.memory_space<vmem>>, vector<1x1x32xf32>
    %36 = vector.shape_cast %35 : vector<1x1x32xf32> to vector<1x32xf32>
    %37 = vector.broadcast %36 : vector<1x32xf32> to vector<24x32xf32>
    %38 = arith.addf %34, %37 : vector<24x32xf32>
    %cst_33 = arith.constant 0.000000e+00 : f32
    %39 = vector.broadcast %cst_33 : f32 to vector<24x32xf32>
    %40 = arith.maximumf %38, %39 : vector<24x32xf32>
    %c1 = arith.constant 1 : index
    %c0_34 = arith.constant 0 : index
    %c0_35 = arith.constant 0 : index
    %41 = vector.load %arg5[%c1, %c0_34, %c0_35] : memref<5x32x32xbf16, #tpu.memory_space<vmem>>, vector<1x32x32xbf16>
    %42 = vector.shape_cast %41 : vector<1x32x32xbf16> to vector<32x32xbf16>
    %cst_36 = arith.constant dense<0.000000e+00> : vector<40x32xf32>
    %43 = tpu.matmul %3, %42, %cst_36 {dimension_numbers = #tpu.dot_dimension_numbers<[1], [0], [0], [1], [0, 0, 1, 1], [], []>} : vector<40x32xbf16>, vector<32x32xbf16>, vector<40x32xf32> -> vector<40x32xf32>
    %c1_37 = arith.constant 1 : index
    %c0_38 = arith.constant 0 : index
    %c0_39 = arith.constant 0 : index
    %44 = vector.load %arg6[%c1_37, %c0_38, %c0_39] : memref<5x1x32xf32, #tpu.memory_space<vmem>>, vector<1x1x32xf32>
    %45 = vector.shape_cast %44 : vector<1x1x32xf32> to vector<1x32xf32>
    %46 = vector.broadcast %45 : vector<1x32xf32> to vector<40x32xf32>
    %47 = arith.addf %43, %46 : vector<40x32xf32>
    %48 = arith.truncf %40 : vector<24x32xf32> to vector<24x32xbf16>
    %cst_40 = arith.constant dense<0.000000e+00> : vector<40x32xf32>
    %49 = tpu.matmul %4, %48, %cst_40 {dimension_numbers = #tpu.dot_dimension_numbers<[1], [0], [0], [1], [0, 0, 1, 1], [], []>} : vector<40x24xbf16>, vector<24x32xbf16>, vector<40x32xf32> -> vector<40x32xf32>
    %50 = arith.addf %49, %47 : vector<40x32xf32>
    %cst_41 = arith.constant 0.000000e+00 : f32
    %51 = vector.broadcast %cst_41 : f32 to vector<40x32xf32>
    %52 = arith.maximumf %50, %51 : vector<40x32xf32>
    %53 = arith.truncf %52 : vector<40x32xf32> to vector<40x32xbf16>
    %cst_42 = arith.constant dense<0.000000e+00> : vector<24x32xf32>
    %54 = tpu.matmul %5, %53, %cst_42 {dimension_numbers = #tpu.dot_dimension_numbers<[1], [0], [0], [1], [0, 0, 1, 1], [], []>} : vector<24x40xbf16>, vector<40x32xbf16>, vector<24x32xf32> -> vector<24x32xf32>
    %55 = arith.addf %40, %54 : vector<24x32xf32>
    %56 = arith.truncf %55 : vector<24x32xf32> to vector<24x32xbf16>
    %c1_43 = arith.constant 1 : index
    %c0_44 = arith.constant 0 : index
    %c0_45 = arith.constant 0 : index
    %57 = vector.load %arg7[%c1_43, %c0_44, %c0_45] : memref<5x32x32xbf16, #tpu.memory_space<vmem>>, vector<1x32x32xbf16>
    %58 = vector.shape_cast %57 : vector<1x32x32xbf16> to vector<32x32xbf16>
    %cst_46 = arith.constant dense<0.000000e+00> : vector<24x32xf32>
    %59 = tpu.matmul %56, %58, %cst_46 {dimension_numbers = #tpu.dot_dimension_numbers<[1], [0], [0], [1], [0, 0, 1, 1], [], []>} : vector<24x32xbf16>, vector<32x32xbf16>, vector<24x32xf32> -> vector<24x32xf32>
    %c1_47 = arith.constant 1 : index
    %c0_48 = arith.constant 0 : index
    %c0_49 = arith.constant 0 : index
    %60 = vector.load %arg8[%c1_47, %c0_48, %c0_49] : memref<5x1x32xf32, #tpu.memory_space<vmem>>, vector<1x1x32xf32>
    %61 = vector.shape_cast %60 : vector<1x1x32xf32> to vector<1x32xf32>
    %62 = vector.broadcast %61 : vector<1x32xf32> to vector<24x32xf32>
    %63 = arith.addf %59, %62 : vector<24x32xf32>
    %cst_50 = arith.constant 0.000000e+00 : f32
    %64 = vector.broadcast %cst_50 : f32 to vector<24x32xf32>
    %65 = arith.maximumf %63, %64 : vector<24x32xf32>
    %66 = arith.truncf %65 : vector<24x32xf32> to vector<24x32xbf16>
    %c1_51 = arith.constant 1 : index
    %c0_52 = arith.constant 0 : index
    %c0_53 = arith.constant 0 : index
    %67 = vector.load %arg9[%c1_51, %c0_52, %c0_53] : memref<5x32x32xbf16, #tpu.memory_space<vmem>>, vector<1x32x32xbf16>
    %68 = vector.shape_cast %67 : vector<1x32x32xbf16> to vector<32x32xbf16>
    %cst_54 = arith.constant dense<0.000000e+00> : vector<24x32xf32>
    %69 = tpu.matmul %66, %68, %cst_54 {dimension_numbers = #tpu.dot_dimension_numbers<[1], [0], [0], [1], [0, 0, 1, 1], [], []>} : vector<24x32xbf16>, vector<32x32xbf16>, vector<24x32xf32> -> vector<24x32xf32>
    %c1_55 = arith.constant 1 : index
    %c0_56 = arith.constant 0 : index
    %c0_57 = arith.constant 0 : index
    %70 = vector.load %arg10[%c1_55, %c0_56, %c0_57] : memref<5x1x32xf32, #tpu.memory_space<vmem>>, vector<1x1x32xf32>
    %71 = vector.shape_cast %70 : vector<1x1x32xf32> to vector<1x32xf32>
    %72 = vector.broadcast %71 : vector<1x32xf32> to vector<24x32xf32>
    %73 = arith.addf %69, %72 : vector<24x32xf32>
    %cst_58 = arith.constant 0.000000e+00 : f32
    %74 = vector.broadcast %cst_58 : f32 to vector<24x32xf32>
    %75 = arith.maximumf %73, %74 : vector<24x32xf32>
    %c2 = arith.constant 2 : index
    %c0_59 = arith.constant 0 : index
    %c0_60 = arith.constant 0 : index
    %76 = vector.load %arg5[%c2, %c0_59, %c0_60] : memref<5x32x32xbf16, #tpu.memory_space<vmem>>, vector<1x32x32xbf16>
    %77 = vector.shape_cast %76 : vector<1x32x32xbf16> to vector<32x32xbf16>
    %cst_61 = arith.constant dense<0.000000e+00> : vector<40x32xf32>
    %78 = tpu.matmul %3, %77, %cst_61 {dimension_numbers = #tpu.dot_dimension_numbers<[1], [0], [0], [1], [0, 0, 1, 1], [], []>} : vector<40x32xbf16>, vector<32x32xbf16>, vector<40x32xf32> -> vector<40x32xf32>
    %c2_62 = arith.constant 2 : index
    %c0_63 = arith.constant 0 : index
    %c0_64 = arith.constant 0 : index
    %79 = vector.load %arg6[%c2_62, %c0_63, %c0_64] : memref<5x1x32xf32, #tpu.memory_space<vmem>>, vector<1x1x32xf32>
    %80 = vector.shape_cast %79 : vector<1x1x32xf32> to vector<1x32xf32>
    %81 = vector.broadcast %80 : vector<1x32xf32> to vector<40x32xf32>
    %82 = arith.addf %78, %81 : vector<40x32xf32>
    %83 = arith.truncf %75 : vector<24x32xf32> to vector<24x32xbf16>
    %cst_65 = arith.constant dense<0.000000e+00> : vector<40x32xf32>
    %84 = tpu.matmul %4, %83, %cst_65 {dimension_numbers = #tpu.dot_dimension_numbers<[1], [0], [0], [1], [0, 0, 1, 1], [], []>} : vector<40x24xbf16>, vector<24x32xbf16>, vector<40x32xf32> -> vector<40x32xf32>
    %85 = arith.addf %84, %82 : vector<40x32xf32>
    %cst_66 = arith.constant 0.000000e+00 : f32
    %86 = vector.broadcast %cst_66 : f32 to vector<40x32xf32>
    %87 = arith.maximumf %85, %86 : vector<40x32xf32>
    %88 = arith.truncf %87 : vector<40x32xf32> to vector<40x32xbf16>
    %cst_67 = arith.constant dense<0.000000e+00> : vector<24x32xf32>
    %89 = tpu.matmul %5, %88, %cst_67 {dimension_numbers = #tpu.dot_dimension_numbers<[1], [0], [0], [1], [0, 0, 1, 1], [], []>} : vector<24x40xbf16>, vector<40x32xbf16>, vector<24x32xf32> -> vector<24x32xf32>
    %90 = arith.addf %75, %89 : vector<24x32xf32>
    %91 = arith.truncf %90 : vector<24x32xf32> to vector<24x32xbf16>
    %c2_68 = arith.constant 2 : index
    %c0_69 = arith.constant 0 : index
    %c0_70 = arith.constant 0 : index
    %92 = vector.load %arg7[%c2_68, %c0_69, %c0_70] : memref<5x32x32xbf16, #tpu.memory_space<vmem>>, vector<1x32x32xbf16>
    %93 = vector.shape_cast %92 : vector<1x32x32xbf16> to vector<32x32xbf16>
    %cst_71 = arith.constant dense<0.000000e+00> : vector<24x32xf32>
    %94 = tpu.matmul %91, %93, %cst_71 {dimension_numbers = #tpu.dot_dimension_numbers<[1], [0], [0], [1], [0, 0, 1, 1], [], []>} : vector<24x32xbf16>, vector<32x32xbf16>, vector<24x32xf32> -> vector<24x32xf32>
    %c2_72 = arith.constant 2 : index
    %c0_73 = arith.constant 0 : index
    %c0_74 = arith.constant 0 : index
    %95 = vector.load %arg8[%c2_72, %c0_73, %c0_74] : memref<5x1x32xf32, #tpu.memory_space<vmem>>, vector<1x1x32xf32>
    %96 = vector.shape_cast %95 : vector<1x1x32xf32> to vector<1x32xf32>
    %97 = vector.broadcast %96 : vector<1x32xf32> to vector<24x32xf32>
    %98 = arith.addf %94, %97 : vector<24x32xf32>
    %cst_75 = arith.constant 0.000000e+00 : f32
    %99 = vector.broadcast %cst_75 : f32 to vector<24x32xf32>
    %100 = arith.maximumf %98, %99 : vector<24x32xf32>
    %101 = arith.truncf %100 : vector<24x32xf32> to vector<24x32xbf16>
    %c2_76 = arith.constant 2 : index
    %c0_77 = arith.constant 0 : index
    %c0_78 = arith.constant 0 : index
    %102 = vector.load %arg9[%c2_76, %c0_77, %c0_78] : memref<5x32x32xbf16, #tpu.memory_space<vmem>>, vector<1x32x32xbf16>
    %103 = vector.shape_cast %102 : vector<1x32x32xbf16> to vector<32x32xbf16>
    %cst_79 = arith.constant dense<0.000000e+00> : vector<24x32xf32>
    %104 = tpu.matmul %101, %103, %cst_79 {dimension_numbers = #tpu.dot_dimension_numbers<[1], [0], [0], [1], [0, 0, 1, 1], [], []>} : vector<24x32xbf16>, vector<32x32xbf16>, vector<24x32xf32> -> vector<24x32xf32>
    %c2_80 = arith.constant 2 : index
    %c0_81 = arith.constant 0 : index
    %c0_82 = arith.constant 0 : index
    %105 = vector.load %arg10[%c2_80, %c0_81, %c0_82] : memref<5x1x32xf32, #tpu.memory_space<vmem>>, vector<1x1x32xf32>
    %106 = vector.shape_cast %105 : vector<1x1x32xf32> to vector<1x32xf32>
    %107 = vector.broadcast %106 : vector<1x32xf32> to vector<24x32xf32>
    %108 = arith.addf %104, %107 : vector<24x32xf32>
    %cst_83 = arith.constant 0.000000e+00 : f32
    %109 = vector.broadcast %cst_83 : f32 to vector<24x32xf32>
    %110 = arith.maximumf %108, %109 : vector<24x32xf32>
    %c3 = arith.constant 3 : index
    %c0_84 = arith.constant 0 : index
    %c0_85 = arith.constant 0 : index
    %111 = vector.load %arg5[%c3, %c0_84, %c0_85] : memref<5x32x32xbf16, #tpu.memory_space<vmem>>, vector<1x32x32xbf16>
    %112 = vector.shape_cast %111 : vector<1x32x32xbf16> to vector<32x32xbf16>
    %cst_86 = arith.constant dense<0.000000e+00> : vector<40x32xf32>
    %113 = tpu.matmul %3, %112, %cst_86 {dimension_numbers = #tpu.dot_dimension_numbers<[1], [0], [0], [1], [0, 0, 1, 1], [], []>} : vector<40x32xbf16>, vector<32x32xbf16>, vector<40x32xf32> -> vector<40x32xf32>
    %c3_87 = arith.constant 3 : index
    %c0_88 = arith.constant 0 : index
    %c0_89 = arith.constant 0 : index
    %114 = vector.load %arg6[%c3_87, %c0_88, %c0_89] : memref<5x1x32xf32, #tpu.memory_space<vmem>>, vector<1x1x32xf32>
    %115 = vector.shape_cast %114 : vector<1x1x32xf32> to vector<1x32xf32>
    %116 = vector.broadcast %115 : vector<1x32xf32> to vector<40x32xf32>
    %117 = arith.addf %113, %116 : vector<40x32xf32>
    %118 = arith.truncf %110 : vector<24x32xf32> to vector<24x32xbf16>
    %cst_90 = arith.constant dense<0.000000e+00> : vector<40x32xf32>
    %119 = tpu.matmul %4, %118, %cst_90 {dimension_numbers = #tpu.dot_dimension_numbers<[1], [0], [0], [1], [0, 0, 1, 1], [], []>} : vector<40x24xbf16>, vector<24x32xbf16>, vector<40x32xf32> -> vector<40x32xf32>
    %120 = arith.addf %119, %117 : vector<40x32xf32>
    %cst_91 = arith.constant 0.000000e+00 : f32
    %121 = vector.broadcast %cst_91 : f32 to vector<40x32xf32>
    %122 = arith.maximumf %120, %121 : vector<40x32xf32>
    %123 = arith.truncf %122 : vector<40x32xf32> to vector<40x32xbf16>
    %cst_92 = arith.constant dense<0.000000e+00> : vector<24x32xf32>
    %124 = tpu.matmul %5, %123, %cst_92 {dimension_numbers = #tpu.dot_dimension_numbers<[1], [0], [0], [1], [0, 0, 1, 1], [], []>} : vector<24x40xbf16>, vector<40x32xbf16>, vector<24x32xf32> -> vector<24x32xf32>
    %125 = arith.addf %110, %124 : vector<24x32xf32>
    %126 = arith.truncf %125 : vector<24x32xf32> to vector<24x32xbf16>
    %c3_93 = arith.constant 3 : index
    %c0_94 = arith.constant 0 : index
    %c0_95 = arith.constant 0 : index
    %127 = vector.load %arg7[%c3_93, %c0_94, %c0_95] : memref<5x32x32xbf16, #tpu.memory_space<vmem>>, vector<1x32x32xbf16>
    %128 = vector.shape_cast %127 : vector<1x32x32xbf16> to vector<32x32xbf16>
    %cst_96 = arith.constant dense<0.000000e+00> : vector<24x32xf32>
    %129 = tpu.matmul %126, %128, %cst_96 {dimension_numbers = #tpu.dot_dimension_numbers<[1], [0], [0], [1], [0, 0, 1, 1], [], []>} : vector<24x32xbf16>, vector<32x32xbf16>, vector<24x32xf32> -> vector<24x32xf32>
    %c3_97 = arith.constant 3 : index
    %c0_98 = arith.constant 0 : index
    %c0_99 = arith.constant 0 : index
    %130 = vector.load %arg8[%c3_97, %c0_98, %c0_99] : memref<5x1x32xf32, #tpu.memory_space<vmem>>, vector<1x1x32xf32>
    %131 = vector.shape_cast %130 : vector<1x1x32xf32> to vector<1x32xf32>
    %132 = vector.broadcast %131 : vector<1x32xf32> to vector<24x32xf32>
    %133 = arith.addf %129, %132 : vector<24x32xf32>
    %cst_100 = arith.constant 0.000000e+00 : f32
    %134 = vector.broadcast %cst_100 : f32 to vector<24x32xf32>
    %135 = arith.maximumf %133, %134 : vector<24x32xf32>
    %136 = arith.truncf %135 : vector<24x32xf32> to vector<24x32xbf16>
    %c3_101 = arith.constant 3 : index
    %c0_102 = arith.constant 0 : index
    %c0_103 = arith.constant 0 : index
    %137 = vector.load %arg9[%c3_101, %c0_102, %c0_103] : memref<5x32x32xbf16, #tpu.memory_space<vmem>>, vector<1x32x32xbf16>
    %138 = vector.shape_cast %137 : vector<1x32x32xbf16> to vector<32x32xbf16>
    %cst_104 = arith.constant dense<0.000000e+00> : vector<24x32xf32>
    %139 = tpu.matmul %136, %138, %cst_104 {dimension_numbers = #tpu.dot_dimension_numbers<[1], [0], [0], [1], [0, 0, 1, 1], [], []>} : vector<24x32xbf16>, vector<32x32xbf16>, vector<24x32xf32> -> vector<24x32xf32>
    %c3_105 = arith.constant 3 : index
    %c0_106 = arith.constant 0 : index
    %c0_107 = arith.constant 0 : index
    %140 = vector.load %arg10[%c3_105, %c0_106, %c0_107] : memref<5x1x32xf32, #tpu.memory_space<vmem>>, vector<1x1x32xf32>
    %141 = vector.shape_cast %140 : vector<1x1x32xf32> to vector<1x32xf32>
    %142 = vector.broadcast %141 : vector<1x32xf32> to vector<24x32xf32>
    %143 = arith.addf %139, %142 : vector<24x32xf32>
    %cst_108 = arith.constant 0.000000e+00 : f32
    %144 = vector.broadcast %cst_108 : f32 to vector<24x32xf32>
    %145 = arith.maximumf %143, %144 : vector<24x32xf32>
    %c4 = arith.constant 4 : index
    %c0_109 = arith.constant 0 : index
    %c0_110 = arith.constant 0 : index
    %146 = vector.load %arg5[%c4, %c0_109, %c0_110] : memref<5x32x32xbf16, #tpu.memory_space<vmem>>, vector<1x32x32xbf16>
    %147 = vector.shape_cast %146 : vector<1x32x32xbf16> to vector<32x32xbf16>
    %cst_111 = arith.constant dense<0.000000e+00> : vector<40x32xf32>
    %148 = tpu.matmul %3, %147, %cst_111 {dimension_numbers = #tpu.dot_dimension_numbers<[1], [0], [0], [1], [0, 0, 1, 1], [], []>} : vector<40x32xbf16>, vector<32x32xbf16>, vector<40x32xf32> -> vector<40x32xf32>
    %c4_112 = arith.constant 4 : index
    %c0_113 = arith.constant 0 : index
    %c0_114 = arith.constant 0 : index
    %149 = vector.load %arg6[%c4_112, %c0_113, %c0_114] : memref<5x1x32xf32, #tpu.memory_space<vmem>>, vector<1x1x32xf32>
    %150 = vector.shape_cast %149 : vector<1x1x32xf32> to vector<1x32xf32>
    %151 = vector.broadcast %150 : vector<1x32xf32> to vector<40x32xf32>
    %152 = arith.addf %148, %151 : vector<40x32xf32>
    %153 = arith.truncf %145 : vector<24x32xf32> to vector<24x32xbf16>
    %cst_115 = arith.constant dense<0.000000e+00> : vector<40x32xf32>
    %154 = tpu.matmul %4, %153, %cst_115 {dimension_numbers = #tpu.dot_dimension_numbers<[1], [0], [0], [1], [0, 0, 1, 1], [], []>} : vector<40x24xbf16>, vector<24x32xbf16>, vector<40x32xf32> -> vector<40x32xf32>
    %155 = arith.addf %154, %152 : vector<40x32xf32>
    %cst_116 = arith.constant 0.000000e+00 : f32
    %156 = vector.broadcast %cst_116 : f32 to vector<40x32xf32>
    %157 = arith.maximumf %155, %156 : vector<40x32xf32>
    %158 = arith.truncf %157 : vector<40x32xf32> to vector<40x32xbf16>
    %cst_117 = arith.constant dense<0.000000e+00> : vector<24x32xf32>
    %159 = tpu.matmul %5, %158, %cst_117 {dimension_numbers = #tpu.dot_dimension_numbers<[1], [0], [0], [1], [0, 0, 1, 1], [], []>} : vector<24x40xbf16>, vector<40x32xbf16>, vector<24x32xf32> -> vector<24x32xf32>
    %160 = arith.addf %145, %159 : vector<24x32xf32>
    %161 = arith.truncf %160 : vector<24x32xf32> to vector<24x32xbf16>
    %c4_118 = arith.constant 4 : index
    %c0_119 = arith.constant 0 : index
    %c0_120 = arith.constant 0 : index
    %162 = vector.load %arg7[%c4_118, %c0_119, %c0_120] : memref<5x32x32xbf16, #tpu.memory_space<vmem>>, vector<1x32x32xbf16>
    %163 = vector.shape_cast %162 : vector<1x32x32xbf16> to vector<32x32xbf16>
    %cst_121 = arith.constant dense<0.000000e+00> : vector<24x32xf32>
    %164 = tpu.matmul %161, %163, %cst_121 {dimension_numbers = #tpu.dot_dimension_numbers<[1], [0], [0], [1], [0, 0, 1, 1], [], []>} : vector<24x32xbf16>, vector<32x32xbf16>, vector<24x32xf32> -> vector<24x32xf32>
    %c4_122 = arith.constant 4 : index
    %c0_123 = arith.constant 0 : index
    %c0_124 = arith.constant 0 : index
    %165 = vector.load %arg8[%c4_122, %c0_123, %c0_124] : memref<5x1x32xf32, #tpu.memory_space<vmem>>, vector<1x1x32xf32>
    %166 = vector.shape_cast %165 : vector<1x1x32xf32> to vector<1x32xf32>
    %167 = vector.broadcast %166 : vector<1x32xf32> to vector<24x32xf32>
    %168 = arith.addf %164, %167 : vector<24x32xf32>
    %cst_125 = arith.constant 0.000000e+00 : f32
    %169 = vector.broadcast %cst_125 : f32 to vector<24x32xf32>
    %170 = arith.maximumf %168, %169 : vector<24x32xf32>
    %171 = arith.truncf %170 : vector<24x32xf32> to vector<24x32xbf16>
    %c4_126 = arith.constant 4 : index
    %c0_127 = arith.constant 0 : index
    %c0_128 = arith.constant 0 : index
    %172 = vector.load %arg9[%c4_126, %c0_127, %c0_128] : memref<5x32x32xbf16, #tpu.memory_space<vmem>>, vector<1x32x32xbf16>
    %173 = vector.shape_cast %172 : vector<1x32x32xbf16> to vector<32x32xbf16>
    %cst_129 = arith.constant dense<0.000000e+00> : vector<24x32xf32>
    %174 = tpu.matmul %171, %173, %cst_129 {dimension_numbers = #tpu.dot_dimension_numbers<[1], [0], [0], [1], [0, 0, 1, 1], [], []>} : vector<24x32xbf16>, vector<32x32xbf16>, vector<24x32xf32> -> vector<24x32xf32>
    %c4_130 = arith.constant 4 : index
    %c0_131 = arith.constant 0 : index
    %c0_132 = arith.constant 0 : index
    %175 = vector.load %arg10[%c4_130, %c0_131, %c0_132] : memref<5x1x32xf32, #tpu.memory_space<vmem>>, vector<1x1x32xf32>
    %176 = vector.shape_cast %175 : vector<1x1x32xf32> to vector<1x32xf32>
    %177 = vector.broadcast %176 : vector<1x32xf32> to vector<24x32xf32>
    %178 = arith.addf %174, %177 : vector<24x32xf32>
    %cst_133 = arith.constant 0.000000e+00 : f32
    %179 = vector.broadcast %cst_133 : f32 to vector<24x32xf32>
    %180 = arith.maximumf %178, %179 : vector<24x32xf32>
    %c0_134 = arith.constant 0 : index
    %c0_135 = arith.constant 0 : index
    %c0_136 = arith.constant 0 : index
    %181 = vector.load %arg13[%c0_134, %c0_135, %c0_136] : memref<1x24x32xf32, #tpu.memory_space<vmem>>, vector<1x24x32xf32>
    %182 = vector.shape_cast %181 : vector<1x24x32xf32> to vector<24x32xf32>
    %183 = vector.shape_cast %180 : vector<24x32xf32> to vector<1x24x32xf32>
    tpu.vector_store %arg13[%c0_134, %c0_135, %c0_136], %183 {strides = array<i32>} : memref<1x24x32xf32, #tpu.memory_space<vmem>>, vector<1x24x32xf32>,
    %184 = arith.truncf %180 : vector<24x32xf32> to vector<24x32xbf16>
    %c0_137 = arith.constant 0 : index
    %c0_138 = arith.constant 0 : index
    %185 = vector.load %arg11[%c0_137, %c0_138] : memref<32x32xbf16, #tpu.memory_space<vmem>>, vector<32x32xbf16>
    %cst_139 = arith.constant dense<0.000000e+00> : vector<24x32xf32>
    %186 = tpu.matmul %184, %185, %cst_139 {dimension_numbers = #tpu.dot_dimension_numbers<[1], [0], [0], [1], [0, 0, 1, 1], [], []>} : vector<24x32xbf16>, vector<32x32xbf16>, vector<24x32xf32> -> vector<24x32xf32>
    %c0_140 = arith.constant 0 : index
    %c0_141 = arith.constant 0 : index
    %187 = vector.load %arg12[%c0_140, %c0_141] : memref<1x32xf32, #tpu.memory_space<vmem>>, vector<1x32xf32>
    %188 = vector.broadcast %187 : vector<1x32xf32> to vector<24x32xf32>
    %189 = arith.addf %186, %188 : vector<24x32xf32>
    %c0_142 = arith.constant 0 : index
    %c0_143 = arith.constant 0 : index
    %c0_144 = arith.constant 0 : index
    %190 = vector.load %arg14[%c0_142, %c0_143, %c0_144] : memref<1x24x32xf32, #tpu.memory_space<vmem>>, vector<1x24x32xf32>
    %191 = vector.shape_cast %190 : vector<1x24x32xf32> to vector<24x32xf32>
    %192 = vector.shape_cast %189 : vector<24x32xf32> to vector<1x24x32xf32>
    tpu.vector_store %arg14[%c0_142, %c0_143, %c0_144], %192 {strides = array<i32>} : memref<1x24x32xf32, #tpu.memory_space<vmem>>, vector<1x24x32xf32>,
    return
  }
  func.func @transform_0(%arg0: i32) -> (i32, i32, i32) {
    %c0_i32 = arith.constant 0 : i32
    %c0_i32_0 = arith.constant 0 : i32
    %c0_i32_1 = arith.constant 0 : i32
    return %arg0, %c0_i32, %c0_i32_0 : i32, i32, i32
  }
  func.func @transform_1(%arg0: i32) -> (i32, i32, i32) {
    %c0_i32 = arith.constant 0 : i32
    %c0_i32_0 = arith.constant 0 : i32
    %c0_i32_1 = arith.constant 0 : i32
    %c0_i32_2 = arith.constant 0 : i32
    return %c0_i32, %c0_i32_0, %c0_i32_1 : i32, i32, i32
  }
  func.func @transform_2(%arg0: i32) -> (i32, i32) {
    %c0_i32 = arith.constant 0 : i32
    %c0_i32_0 = arith.constant 0 : i32
    %c0_i32_1 = arith.constant 0 : i32
    return %c0_i32, %c0_i32_0 : i32, i32
  }
  func.func @transform_3(%arg0: i32) -> (i32, i32) {
    %c0_i32 = arith.constant 0 : i32
    %c0_i32_0 = arith.constant 0 : i32
    %c0_i32_1 = arith.constant 0 : i32
    return %c0_i32, %c0_i32_0 : i32, i32
  }
  func.func @transform_4(%arg0: i32) -> (i32, i32, i32) {
    %c0_i32 = arith.constant 0 : i32
    %c0_i32_0 = arith.constant 0 : i32
    %c0_i32_1 = arith.constant 0 : i32
    %c0_i32_2 = arith.constant 0 : i32
    return %c0_i32, %c0_i32_0, %c0_i32_1 : i32, i32, i32
  }
  func.func @transform_5(%arg0: i32) -> (i32, i32, i32) {
    %c0_i32 = arith.constant 0 : i32
    %c0_i32_0 = arith.constant 0 : i32
    %c0_i32_1 = arith.constant 0 : i32
    %c0_i32_2 = arith.constant 0 : i32
    return %c0_i32, %c0_i32_0, %c0_i32_1 : i32, i32, i32
  }
  func.func @transform_6(%arg0: i32) -> (i32, i32, i32) {
    %c0_i32 = arith.constant 0 : i32
    %c0_i32_0 = arith.constant 0 : i32
    %c0_i32_1 = arith.constant 0 : i32
    %c0_i32_2 = arith.constant 0 : i32
    return %c0_i32, %c0_i32_0, %c0_i32_1 : i32, i32, i32
  }
  func.func @transform_7(%arg0: i32) -> (i32, i32, i32) {
    %c0_i32 = arith.constant 0 : i32
    %c0_i32_0 = arith.constant 0 : i32
    %c0_i32_1 = arith.constant 0 : i32
    %c0_i32_2 = arith.constant 0 : i32
    return %c0_i32, %c0_i32_0, %c0_i32_1 : i32, i32, i32
  }
  func.func @transform_8(%arg0: i32) -> (i32, i32, i32) {
    %c0_i32 = arith.constant 0 : i32
    %c0_i32_0 = arith.constant 0 : i32
    %c0_i32_1 = arith.constant 0 : i32
    %c0_i32_2 = arith.constant 0 : i32
    return %c0_i32, %c0_i32_0, %c0_i32_1 : i32, i32, i32
  }
  func.func @transform_9(%arg0: i32) -> (i32, i32, i32) {
    %c0_i32 = arith.constant 0 : i32
    %c0_i32_0 = arith.constant 0 : i32
    %c0_i32_1 = arith.constant 0 : i32
    %c0_i32_2 = arith.constant 0 : i32
    return %c0_i32, %c0_i32_0, %c0_i32_1 : i32, i32, i32
  }
  func.func @transform_10(%arg0: i32) -> (i32, i32) {
    %c0_i32 = arith.constant 0 : i32
    %c0_i32_0 = arith.constant 0 : i32
    %c0_i32_1 = arith.constant 0 : i32
    return %c0_i32, %c0_i32_0 : i32, i32
  }
  func.func @transform_11(%arg0: i32) -> (i32, i32) {
    %c0_i32 = arith.constant 0 : i32
    %c0_i32_0 = arith.constant 0 : i32
    %c0_i32_1 = arith.constant 0 : i32
    return %c0_i32, %c0_i32_0 : i32, i32
  }
  func.func @transform_12(%arg0: i32) -> (i32, i32, i32) {
    %c0_i32 = arith.constant 0 : i32
    %c0_i32_0 = arith.constant 0 : i32
    %c0_i32_1 = arith.constant 0 : i32
    return %arg0, %c0_i32, %c0_i32_0 : i32, i32, i32
  }
  func.func @transform_13(%arg0: i32) -> (i32, i32, i32) {
    %c0_i32 = arith.constant 0 : i32
    %c0_i32_0 = arith.constant 0 : i32
    %c0_i32_1 = arith.constant 0 : i32
    return %arg0, %c0_i32, %c0_i32_0 : i32, i32, i32
  }
}

module attributes {stable_mosaic.version = 11 : i64} {
  func.func @_relabel_kernel(%arg0: i32, %arg1: memref<16x32xf32, #tpu.memory_space<vmem>>, %arg2: memref<32x32xbf16, #tpu.memory_space<vmem>>, %arg3: memref<1x32xf32, #tpu.memory_space<vmem>>, %arg4: memref<32x32xbf16, #tpu.memory_space<vmem>>, %arg5: memref<1x32xf32, #tpu.memory_space<vmem>>, %arg6: memref<16x32xf32, #tpu.memory_space<vmem>>) attributes {dimension_semantics = [#tpu.dimension_semantics<arbitrary>], iteration_bounds = array<i64: 1>, scalar_prefetch = 0 : i64, scratch_operands = 0 : i64, tpu.core_type = #tpu.core_type<tc>, window_params = [{pipeline_mode = #tpu.pipeline_mode<synchronous>, transform_indices = @transform_0, window_bounds = array<i64: 16, 32>}, {pipeline_mode = #tpu.pipeline_mode<synchronous>, transform_indices = @transform_1, window_bounds = array<i64: 32, 32>}, {pipeline_mode = #tpu.pipeline_mode<synchronous>, transform_indices = @transform_2, window_bounds = array<i64: 1, 32>}, {pipeline_mode = #tpu.pipeline_mode<synchronous>, transform_indices = @transform_3, window_bounds = array<i64: 32, 32>}, {pipeline_mode = #tpu.pipeline_mode<synchronous>, transform_indices = @transform_4, window_bounds = array<i64: 1, 32>}, {pipeline_mode = #tpu.pipeline_mode<synchronous>, transform_indices = @transform_5, window_bounds = array<i64: 16, 32>}]} {
    %c0 = arith.constant 0 : index
    %c0_0 = arith.constant 0 : index
    %0 = vector.load %arg1[%c0, %c0_0] : memref<16x32xf32, #tpu.memory_space<vmem>>, vector<16x32xf32>
    %1 = arith.truncf %0 : vector<16x32xf32> to vector<16x32xbf16>
    %c0_1 = arith.constant 0 : index
    %c0_2 = arith.constant 0 : index
    %2 = vector.load %arg2[%c0_1, %c0_2] : memref<32x32xbf16, #tpu.memory_space<vmem>>, vector<32x32xbf16>
    %cst = arith.constant dense<0.000000e+00> : vector<16x32xf32>
    %3 = tpu.matmul %1, %2, %cst {dimension_numbers = #tpu.dot_dimension_numbers<[1], [0], [0], [1], [0, 0, 1, 1], [], []>} : vector<16x32xbf16>, vector<32x32xbf16>, vector<16x32xf32> -> vector<16x32xf32>
    %c0_3 = arith.constant 0 : index
    %c0_4 = arith.constant 0 : index
    %4 = vector.load %arg3[%c0_3, %c0_4] : memref<1x32xf32, #tpu.memory_space<vmem>>, vector<1x32xf32>
    %5 = vector.broadcast %4 : vector<1x32xf32> to vector<16x32xf32>
    %6 = arith.addf %3, %5 : vector<16x32xf32>
    %cst_5 = arith.constant 0.000000e+00 : f32
    %7 = vector.broadcast %cst_5 : f32 to vector<16x32xf32>
    %8 = arith.maximumf %6, %7 : vector<16x32xf32>
    %9 = arith.truncf %8 : vector<16x32xf32> to vector<16x32xbf16>
    %c0_6 = arith.constant 0 : index
    %c0_7 = arith.constant 0 : index
    %10 = vector.load %arg4[%c0_6, %c0_7] : memref<32x32xbf16, #tpu.memory_space<vmem>>, vector<32x32xbf16>
    %cst_8 = arith.constant dense<0.000000e+00> : vector<16x32xf32>
    %11 = tpu.matmul %9, %10, %cst_8 {dimension_numbers = #tpu.dot_dimension_numbers<[1], [0], [0], [1], [0, 0, 1, 1], [], []>} : vector<16x32xbf16>, vector<32x32xbf16>, vector<16x32xf32> -> vector<16x32xf32>
    %c0_9 = arith.constant 0 : index
    %c0_10 = arith.constant 0 : index
    %12 = vector.load %arg5[%c0_9, %c0_10] : memref<1x32xf32, #tpu.memory_space<vmem>>, vector<1x32xf32>
    %13 = vector.broadcast %12 : vector<1x32xf32> to vector<16x32xf32>
    %14 = arith.addf %11, %13 : vector<16x32xf32>
    %cst_11 = arith.constant 0.000000e+00 : f32
    %15 = vector.broadcast %cst_11 : f32 to vector<16x32xf32>
    %16 = arith.maximumf %14, %15 : vector<16x32xf32>
    %c0_12 = arith.constant 0 : index
    %c0_13 = arith.constant 0 : index
    %17 = vector.load %arg6[%c0_12, %c0_13] : memref<16x32xf32, #tpu.memory_space<vmem>>, vector<16x32xf32>
    tpu.vector_store %arg6[%c0_12, %c0_13], %16 {strides = array<i32>} : memref<16x32xf32, #tpu.memory_space<vmem>>, vector<16x32xf32>,
    return
  }
  func.func @transform_0(%arg0: i32) -> (i32, i32) {
    %c0_i32 = arith.constant 0 : i32
    %c0_i32_0 = arith.constant 0 : i32
    %c0_i32_1 = arith.constant 0 : i32
    return %c0_i32, %c0_i32_0 : i32, i32
  }
  func.func @transform_1(%arg0: i32) -> (i32, i32) {
    %c0_i32 = arith.constant 0 : i32
    %c0_i32_0 = arith.constant 0 : i32
    %c0_i32_1 = arith.constant 0 : i32
    return %c0_i32, %c0_i32_0 : i32, i32
  }
  func.func @transform_2(%arg0: i32) -> (i32, i32) {
    %c0_i32 = arith.constant 0 : i32
    %c0_i32_0 = arith.constant 0 : i32
    %c0_i32_1 = arith.constant 0 : i32
    return %c0_i32, %c0_i32_0 : i32, i32
  }
  func.func @transform_3(%arg0: i32) -> (i32, i32) {
    %c0_i32 = arith.constant 0 : i32
    %c0_i32_0 = arith.constant 0 : i32
    %c0_i32_1 = arith.constant 0 : i32
    return %c0_i32, %c0_i32_0 : i32, i32
  }
  func.func @transform_4(%arg0: i32) -> (i32, i32) {
    %c0_i32 = arith.constant 0 : i32
    %c0_i32_0 = arith.constant 0 : i32
    %c0_i32_1 = arith.constant 0 : i32
    return %c0_i32, %c0_i32_0 : i32, i32
  }
  func.func @transform_5(%arg0: i32) -> (i32, i32) {
    %c0_i32 = arith.constant 0 : i32
    %c0_i32_0 = arith.constant 0 : i32
    %c0_i32_1 = arith.constant 0 : i32
    return %c0_i32, %c0_i32_0 : i32, i32
  }
}

module attributes {stable_mosaic.version = 11 : i64} {
  func.func @_gine_layers_kernel(%arg0: i32, %arg1: memref<1x24x32xf32, #tpu.memory_space<vmem>>, %arg2: memref<1x40x32xbf16, #tpu.memory_space<vmem>>, %arg3: memref<40x24xbf16, #tpu.memory_space<vmem>>, %arg4: memref<24x40xbf16, #tpu.memory_space<vmem>>, %arg5: memref<1x32x32xbf16, #tpu.memory_space<vmem>>, %arg6: memref<1x1x32xf32, #tpu.memory_space<vmem>>, %arg7: memref<1x32x32xbf16, #tpu.memory_space<vmem>>, %arg8: memref<1x1x32xf32, #tpu.memory_space<vmem>>, %arg9: memref<1x32x32xbf16, #tpu.memory_space<vmem>>, %arg10: memref<1x1x32xf32, #tpu.memory_space<vmem>>, %arg11: memref<32x32xbf16, #tpu.memory_space<vmem>>, %arg12: memref<1x32xf32, #tpu.memory_space<vmem>>, %arg13: memref<1x24x32xf32, #tpu.memory_space<vmem>>, %arg14: memref<1x24x32xf32, #tpu.memory_space<vmem>>) attributes {dimension_semantics = [#tpu.dimension_semantics<parallel>], iteration_bounds = array<i64: 4>, scalar_prefetch = 0 : i64, scratch_operands = 0 : i64, tpu.core_type = #tpu.core_type<tc>, window_params = [{transform_indices = @transform_0, window_bounds = array<i64: 1, 24, 32>}, {pipeline_mode = #tpu.pipeline_mode<synchronous>, transform_indices = @transform_1, window_bounds = array<i64: 1, 40, 32>}, {pipeline_mode = #tpu.pipeline_mode<synchronous>, transform_indices = @transform_2, window_bounds = array<i64: 40, 24>}, {pipeline_mode = #tpu.pipeline_mode<synchronous>, transform_indices = @transform_3, window_bounds = array<i64: 24, 40>}, {pipeline_mode = #tpu.pipeline_mode<synchronous>, transform_indices = @transform_4, window_bounds = array<i64: 1, 32, 32>}, {pipeline_mode = #tpu.pipeline_mode<synchronous>, transform_indices = @transform_5, window_bounds = array<i64: 1, 1, 32>}, {pipeline_mode = #tpu.pipeline_mode<synchronous>, transform_indices = @transform_6, window_bounds = array<i64: 1, 32, 32>}, {pipeline_mode = #tpu.pipeline_mode<synchronous>, transform_indices = @transform_7, window_bounds = array<i64: 1, 1, 32>}, {pipeline_mode = #tpu.pipeline_mode<synchronous>, transform_indices = @transform_8, window_bounds = array<i64: 1, 32, 32>}, {pipeline_mode = #tpu.pipeline_mode<synchronous>, transform_indices = @transform_9, window_bounds = array<i64: 1, 1, 32>}, {pipeline_mode = #tpu.pipeline_mode<synchronous>, transform_indices = @transform_10, window_bounds = array<i64: 32, 32>}, {pipeline_mode = #tpu.pipeline_mode<synchronous>, transform_indices = @transform_11, window_bounds = array<i64: 1, 32>}, {transform_indices = @transform_12, window_bounds = array<i64: 1, 24, 32>}, {transform_indices = @transform_13, window_bounds = array<i64: 1, 24, 32>}]} {
    %c0 = arith.constant 0 : index
    %c0_0 = arith.constant 0 : index
    %c0_1 = arith.constant 0 : index
    %0 = vector.load %arg1[%c0, %c0_0, %c0_1] : memref<1x24x32xf32, #tpu.memory_space<vmem>>, vector<1x24x32xf32>
    %1 = vector.shape_cast %0 : vector<1x24x32xf32> to vector<24x32xf32>
    %c0_2 = arith.constant 0 : index
    %c0_3 = arith.constant 0 : index
    %c0_4 = arith.constant 0 : index
    %2 = vector.load %arg2[%c0_2, %c0_3, %c0_4] : memref<1x40x32xbf16, #tpu.memory_space<vmem>>, vector<1x40x32xbf16>
    %3 = vector.shape_cast %2 : vector<1x40x32xbf16> to vector<40x32xbf16>
    %c0_5 = arith.constant 0 : index
    %c0_6 = arith.constant 0 : index
    %4 = vector.load %arg3[%c0_5, %c0_6] : memref<40x24xbf16, #tpu.memory_space<vmem>>, vector<40x24xbf16>
    %c0_7 = arith.constant 0 : index
    %c0_8 = arith.constant 0 : index
    %5 = vector.load %arg4[%c0_7, %c0_8] : memref<24x40xbf16, #tpu.memory_space<vmem>>, vector<24x40xbf16>
    %c0_9 = arith.constant 0 : index
    %c0_10 = arith.constant 0 : index
    %c0_11 = arith.constant 0 : index
    %6 = vector.load %arg5[%c0_9, %c0_10, %c0_11] : memref<1x32x32xbf16, #tpu.memory_space<vmem>>, vector<1x32x32xbf16>
    %7 = vector.shape_cast %6 : vector<1x32x32xbf16> to vector<32x32xbf16>
    %cst = arith.constant dense<0.000000e+00> : vector<40x32xf32>
    %8 = tpu.matmul %3, %7, %cst {dimension_numbers = #tpu.dot_dimension_numbers<[1], [0], [0], [1], [0, 0, 1, 1], [], []>} : vector<40x32xbf16>, vector<32x32xbf16>, vector<40x32xf32> -> vector<40x32xf32>
    %c0_12 = arith.constant 0 : index
    %c0_13 = arith.constant 0 : index
    %c0_14 = arith.constant 0 : index
    %9 = vector.load %arg6[%c0_12, %c0_13, %c0_14] : memref<1x1x32xf32, #tpu.memory_space<vmem>>, vector<1x1x32xf32>
    %10 = vector.shape_cast %9 : vector<1x1x32xf32> to vector<1x32xf32>
    %11 = vector.broadcast %10 : vector<1x32xf32> to vector<40x32xf32>
    %12 = arith.addf %8, %11 : vector<40x32xf32>
    %13 = arith.truncf %1 : vector<24x32xf32> to vector<24x32xbf16>
    %cst_15 = arith.constant dense<0.000000e+00> : vector<40x32xf32>
    %14 = tpu.matmul %4, %13, %cst_15 {dimension_numbers = #tpu.dot_dimension_numbers<[1], [0], [0], [1], [0, 0, 1, 1], [], []>} : vector<40x24xbf16>, vector<24x32xbf16>, vector<40x32xf32> -> vector<40x32xf32>
    %15 = arith.addf %14, %12 : vector<40x32xf32>
    %cst_16 = arith.constant 0.000000e+00 : f32
    %16 = vector.broadcast %cst_16 : f32 to vector<40x32xf32>
    %17 = arith.maximumf %15, %16 : vector<40x32xf32>
    %18 = arith.truncf %17 : vector<40x32xf32> to vector<40x32xbf16>
    %cst_17 = arith.constant dense<0.000000e+00> : vector<24x32xf32>
    %19 = tpu.matmul %5, %18, %cst_17 {dimension_numbers = #tpu.dot_dimension_numbers<[1], [0], [0], [1], [0, 0, 1, 1], [], []>} : vector<24x40xbf16>, vector<40x32xbf16>, vector<24x32xf32> -> vector<24x32xf32>
    %20 = arith.addf %1, %19 : vector<24x32xf32>
    %21 = arith.truncf %20 : vector<24x32xf32> to vector<24x32xbf16>
    %c0_18 = arith.constant 0 : index
    %c0_19 = arith.constant 0 : index
    %c0_20 = arith.constant 0 : index
    %22 = vector.load %arg7[%c0_18, %c0_19, %c0_20] : memref<1x32x32xbf16, #tpu.memory_space<vmem>>, vector<1x32x32xbf16>
    %23 = vector.shape_cast %22 : vector<1x32x32xbf16> to vector<32x32xbf16>
    %cst_21 = arith.constant dense<0.000000e+00> : vector<24x32xf32>
    %24 = tpu.matmul %21, %23, %cst_21 {dimension_numbers = #tpu.dot_dimension_numbers<[1], [0], [0], [1], [0, 0, 1, 1], [], []>} : vector<24x32xbf16>, vector<32x32xbf16>, vector<24x32xf32> -> vector<24x32xf32>
    %c0_22 = arith.constant 0 : index
    %c0_23 = arith.constant 0 : index
    %c0_24 = arith.constant 0 : index
    %25 = vector.load %arg8[%c0_22, %c0_23, %c0_24] : memref<1x1x32xf32, #tpu.memory_space<vmem>>, vector<1x1x32xf32>
    %26 = vector.shape_cast %25 : vector<1x1x32xf32> to vector<1x32xf32>
    %27 = vector.broadcast %26 : vector<1x32xf32> to vector<24x32xf32>
    %28 = arith.addf %24, %27 : vector<24x32xf32>
    %cst_25 = arith.constant 0.000000e+00 : f32
    %29 = vector.broadcast %cst_25 : f32 to vector<24x32xf32>
    %30 = arith.maximumf %28, %29 : vector<24x32xf32>
    %31 = arith.truncf %30 : vector<24x32xf32> to vector<24x32xbf16>
    %c0_26 = arith.constant 0 : index
    %c0_27 = arith.constant 0 : index
    %c0_28 = arith.constant 0 : index
    %32 = vector.load %arg9[%c0_26, %c0_27, %c0_28] : memref<1x32x32xbf16, #tpu.memory_space<vmem>>, vector<1x32x32xbf16>
    %33 = vector.shape_cast %32 : vector<1x32x32xbf16> to vector<32x32xbf16>
    %cst_29 = arith.constant dense<0.000000e+00> : vector<24x32xf32>
    %34 = tpu.matmul %31, %33, %cst_29 {dimension_numbers = #tpu.dot_dimension_numbers<[1], [0], [0], [1], [0, 0, 1, 1], [], []>} : vector<24x32xbf16>, vector<32x32xbf16>, vector<24x32xf32> -> vector<24x32xf32>
    %c0_30 = arith.constant 0 : index
    %c0_31 = arith.constant 0 : index
    %c0_32 = arith.constant 0 : index
    %35 = vector.load %arg10[%c0_30, %c0_31, %c0_32] : memref<1x1x32xf32, #tpu.memory_space<vmem>>, vector<1x1x32xf32>
    %36 = vector.shape_cast %35 : vector<1x1x32xf32> to vector<1x32xf32>
    %37 = vector.broadcast %36 : vector<1x32xf32> to vector<24x32xf32>
    %38 = arith.addf %34, %37 : vector<24x32xf32>
    %cst_33 = arith.constant 0.000000e+00 : f32
    %39 = vector.broadcast %cst_33 : f32 to vector<24x32xf32>
    %40 = arith.maximumf %38, %39 : vector<24x32xf32>
    %c0_34 = arith.constant 0 : index
    %c0_35 = arith.constant 0 : index
    %c0_36 = arith.constant 0 : index
    %41 = vector.load %arg13[%c0_34, %c0_35, %c0_36] : memref<1x24x32xf32, #tpu.memory_space<vmem>>, vector<1x24x32xf32>
    %42 = vector.shape_cast %41 : vector<1x24x32xf32> to vector<24x32xf32>
    %43 = vector.shape_cast %40 : vector<24x32xf32> to vector<1x24x32xf32>
    tpu.vector_store %arg13[%c0_34, %c0_35, %c0_36], %43 {strides = array<i32>} : memref<1x24x32xf32, #tpu.memory_space<vmem>>, vector<1x24x32xf32>,
    %44 = arith.truncf %40 : vector<24x32xf32> to vector<24x32xbf16>
    %c0_37 = arith.constant 0 : index
    %c0_38 = arith.constant 0 : index
    %45 = vector.load %arg11[%c0_37, %c0_38] : memref<32x32xbf16, #tpu.memory_space<vmem>>, vector<32x32xbf16>
    %cst_39 = arith.constant dense<0.000000e+00> : vector<24x32xf32>
    %46 = tpu.matmul %44, %45, %cst_39 {dimension_numbers = #tpu.dot_dimension_numbers<[1], [0], [0], [1], [0, 0, 1, 1], [], []>} : vector<24x32xbf16>, vector<32x32xbf16>, vector<24x32xf32> -> vector<24x32xf32>
    %c0_40 = arith.constant 0 : index
    %c0_41 = arith.constant 0 : index
    %47 = vector.load %arg12[%c0_40, %c0_41] : memref<1x32xf32, #tpu.memory_space<vmem>>, vector<1x32xf32>
    %48 = vector.broadcast %47 : vector<1x32xf32> to vector<24x32xf32>
    %49 = arith.addf %46, %48 : vector<24x32xf32>
    %c0_42 = arith.constant 0 : index
    %c0_43 = arith.constant 0 : index
    %c0_44 = arith.constant 0 : index
    %50 = vector.load %arg14[%c0_42, %c0_43, %c0_44] : memref<1x24x32xf32, #tpu.memory_space<vmem>>, vector<1x24x32xf32>
    %51 = vector.shape_cast %50 : vector<1x24x32xf32> to vector<24x32xf32>
    %52 = vector.shape_cast %49 : vector<24x32xf32> to vector<1x24x32xf32>
    tpu.vector_store %arg14[%c0_42, %c0_43, %c0_44], %52 {strides = array<i32>} : memref<1x24x32xf32, #tpu.memory_space<vmem>>, vector<1x24x32xf32>,
    return
  }
  func.func @transform_0(%arg0: i32) -> (i32, i32, i32) {
    %c0_i32 = arith.constant 0 : i32
    %c0_i32_0 = arith.constant 0 : i32
    %c0_i32_1 = arith.constant 0 : i32
    return %arg0, %c0_i32, %c0_i32_0 : i32, i32, i32
  }
  func.func @transform_1(%arg0: i32) -> (i32, i32, i32) {
    %c0_i32 = arith.constant 0 : i32
    %c0_i32_0 = arith.constant 0 : i32
    %c0_i32_1 = arith.constant 0 : i32
    %c0_i32_2 = arith.constant 0 : i32
    return %c0_i32, %c0_i32_0, %c0_i32_1 : i32, i32, i32
  }
  func.func @transform_2(%arg0: i32) -> (i32, i32) {
    %c0_i32 = arith.constant 0 : i32
    %c0_i32_0 = arith.constant 0 : i32
    %c0_i32_1 = arith.constant 0 : i32
    return %c0_i32, %c0_i32_0 : i32, i32
  }
  func.func @transform_3(%arg0: i32) -> (i32, i32) {
    %c0_i32 = arith.constant 0 : i32
    %c0_i32_0 = arith.constant 0 : i32
    %c0_i32_1 = arith.constant 0 : i32
    return %c0_i32, %c0_i32_0 : i32, i32
  }
  func.func @transform_4(%arg0: i32) -> (i32, i32, i32) {
    %c0_i32 = arith.constant 0 : i32
    %c0_i32_0 = arith.constant 0 : i32
    %c0_i32_1 = arith.constant 0 : i32
    %c0_i32_2 = arith.constant 0 : i32
    return %c0_i32, %c0_i32_0, %c0_i32_1 : i32, i32, i32
  }
  func.func @transform_5(%arg0: i32) -> (i32, i32, i32) {
    %c0_i32 = arith.constant 0 : i32
    %c0_i32_0 = arith.constant 0 : i32
    %c0_i32_1 = arith.constant 0 : i32
    %c0_i32_2 = arith.constant 0 : i32
    return %c0_i32, %c0_i32_0, %c0_i32_1 : i32, i32, i32
  }
  func.func @transform_6(%arg0: i32) -> (i32, i32, i32) {
    %c0_i32 = arith.constant 0 : i32
    %c0_i32_0 = arith.constant 0 : i32
    %c0_i32_1 = arith.constant 0 : i32
    %c0_i32_2 = arith.constant 0 : i32
    return %c0_i32, %c0_i32_0, %c0_i32_1 : i32, i32, i32
  }
  func.func @transform_7(%arg0: i32) -> (i32, i32, i32) {
    %c0_i32 = arith.constant 0 : i32
    %c0_i32_0 = arith.constant 0 : i32
    %c0_i32_1 = arith.constant 0 : i32
    %c0_i32_2 = arith.constant 0 : i32
    return %c0_i32, %c0_i32_0, %c0_i32_1 : i32, i32, i32
  }
  func.func @transform_8(%arg0: i32) -> (i32, i32, i32) {
    %c0_i32 = arith.constant 0 : i32
    %c0_i32_0 = arith.constant 0 : i32
    %c0_i32_1 = arith.constant 0 : i32
    %c0_i32_2 = arith.constant 0 : i32
    return %c0_i32, %c0_i32_0, %c0_i32_1 : i32, i32, i32
  }
  func.func @transform_9(%arg0: i32) -> (i32, i32, i32) {
    %c0_i32 = arith.constant 0 : i32
    %c0_i32_0 = arith.constant 0 : i32
    %c0_i32_1 = arith.constant 0 : i32
    %c0_i32_2 = arith.constant 0 : i32
    return %c0_i32, %c0_i32_0, %c0_i32_1 : i32, i32, i32
  }
  func.func @transform_10(%arg0: i32) -> (i32, i32) {
    %c0_i32 = arith.constant 0 : i32
    %c0_i32_0 = arith.constant 0 : i32
    %c0_i32_1 = arith.constant 0 : i32
    return %c0_i32, %c0_i32_0 : i32, i32
  }
  func.func @transform_11(%arg0: i32) -> (i32, i32) {
    %c0_i32 = arith.constant 0 : i32
    %c0_i32_0 = arith.constant 0 : i32
    %c0_i32_1 = arith.constant 0 : i32
    return %c0_i32, %c0_i32_0 : i32, i32
  }
  func.func @transform_12(%arg0: i32) -> (i32, i32, i32) {
    %c0_i32 = arith.constant 0 : i32
    %c0_i32_0 = arith.constant 0 : i32
    %c0_i32_1 = arith.constant 0 : i32
    return %arg0, %c0_i32, %c0_i32_0 : i32, i32, i32
  }
  func.func @transform_13(%arg0: i32) -> (i32, i32, i32) {
    %c0_i32 = arith.constant 0 : i32
    %c0_i32_0 = arith.constant 0 : i32
    %c0_i32_1 = arith.constant 0 : i32
    return %arg0, %c0_i32, %c0_i32_0 : i32, i32, i32
  }
}

module attributes {stable_mosaic.version = 11 : i64} {
  func.func @_gine_layers_kernel(%arg0: i32, %arg1: memref<1x24x32xf32, #tpu.memory_space<vmem>>, %arg2: memref<1x40x32xbf16, #tpu.memory_space<vmem>>, %arg3: memref<40x24xbf16, #tpu.memory_space<vmem>>, %arg4: memref<24x40xbf16, #tpu.memory_space<vmem>>, %arg5: memref<1x32x32xbf16, #tpu.memory_space<vmem>>, %arg6: memref<1x1x32xf32, #tpu.memory_space<vmem>>, %arg7: memref<1x32x32xbf16, #tpu.memory_space<vmem>>, %arg8: memref<1x1x32xf32, #tpu.memory_space<vmem>>, %arg9: memref<1x32x32xbf16, #tpu.memory_space<vmem>>, %arg10: memref<1x1x32xf32, #tpu.memory_space<vmem>>, %arg11: memref<32x32xbf16, #tpu.memory_space<vmem>>, %arg12: memref<1x32xf32, #tpu.memory_space<vmem>>, %arg13: memref<1x24x32xf32, #tpu.memory_space<vmem>>, %arg14: memref<1x24x32xf32, #tpu.memory_space<vmem>>) attributes {dimension_semantics = [#tpu.dimension_semantics<parallel>], iteration_bounds = array<i64: 4>, scalar_prefetch = 0 : i64, scratch_operands = 0 : i64, tpu.core_type = #tpu.core_type<tc>, window_params = [{transform_indices = @transform_0, window_bounds = array<i64: 1, 24, 32>}, {pipeline_mode = #tpu.pipeline_mode<synchronous>, transform_indices = @transform_1, window_bounds = array<i64: 1, 40, 32>}, {pipeline_mode = #tpu.pipeline_mode<synchronous>, transform_indices = @transform_2, window_bounds = array<i64: 40, 24>}, {pipeline_mode = #tpu.pipeline_mode<synchronous>, transform_indices = @transform_3, window_bounds = array<i64: 24, 40>}, {pipeline_mode = #tpu.pipeline_mode<synchronous>, transform_indices = @transform_4, window_bounds = array<i64: 1, 32, 32>}, {pipeline_mode = #tpu.pipeline_mode<synchronous>, transform_indices = @transform_5, window_bounds = array<i64: 1, 1, 32>}, {pipeline_mode = #tpu.pipeline_mode<synchronous>, transform_indices = @transform_6, window_bounds = array<i64: 1, 32, 32>}, {pipeline_mode = #tpu.pipeline_mode<synchronous>, transform_indices = @transform_7, window_bounds = array<i64: 1, 1, 32>}, {pipeline_mode = #tpu.pipeline_mode<synchronous>, transform_indices = @transform_8, window_bounds = array<i64: 1, 32, 32>}, {pipeline_mode = #tpu.pipeline_mode<synchronous>, transform_indices = @transform_9, window_bounds = array<i64: 1, 1, 32>}, {pipeline_mode = #tpu.pipeline_mode<synchronous>, transform_indices = @transform_10, window_bounds = array<i64: 32, 32>}, {pipeline_mode = #tpu.pipeline_mode<synchronous>, transform_indices = @transform_11, window_bounds = array<i64: 1, 32>}, {transform_indices = @transform_12, window_bounds = array<i64: 1, 24, 32>}, {transform_indices = @transform_13, window_bounds = array<i64: 1, 24, 32>}]} {
    %c0 = arith.constant 0 : index
    %c0_0 = arith.constant 0 : index
    %c0_1 = arith.constant 0 : index
    %0 = vector.load %arg1[%c0, %c0_0, %c0_1] : memref<1x24x32xf32, #tpu.memory_space<vmem>>, vector<1x24x32xf32>
    %1 = vector.shape_cast %0 : vector<1x24x32xf32> to vector<24x32xf32>
    %c0_2 = arith.constant 0 : index
    %c0_3 = arith.constant 0 : index
    %c0_4 = arith.constant 0 : index
    %2 = vector.load %arg2[%c0_2, %c0_3, %c0_4] : memref<1x40x32xbf16, #tpu.memory_space<vmem>>, vector<1x40x32xbf16>
    %3 = vector.shape_cast %2 : vector<1x40x32xbf16> to vector<40x32xbf16>
    %c0_5 = arith.constant 0 : index
    %c0_6 = arith.constant 0 : index
    %4 = vector.load %arg3[%c0_5, %c0_6] : memref<40x24xbf16, #tpu.memory_space<vmem>>, vector<40x24xbf16>
    %c0_7 = arith.constant 0 : index
    %c0_8 = arith.constant 0 : index
    %5 = vector.load %arg4[%c0_7, %c0_8] : memref<24x40xbf16, #tpu.memory_space<vmem>>, vector<24x40xbf16>
    %c0_9 = arith.constant 0 : index
    %c0_10 = arith.constant 0 : index
    %c0_11 = arith.constant 0 : index
    %6 = vector.load %arg5[%c0_9, %c0_10, %c0_11] : memref<1x32x32xbf16, #tpu.memory_space<vmem>>, vector<1x32x32xbf16>
    %7 = vector.shape_cast %6 : vector<1x32x32xbf16> to vector<32x32xbf16>
    %cst = arith.constant dense<0.000000e+00> : vector<40x32xf32>
    %8 = tpu.matmul %3, %7, %cst {dimension_numbers = #tpu.dot_dimension_numbers<[1], [0], [0], [1], [0, 0, 1, 1], [], []>} : vector<40x32xbf16>, vector<32x32xbf16>, vector<40x32xf32> -> vector<40x32xf32>
    %c0_12 = arith.constant 0 : index
    %c0_13 = arith.constant 0 : index
    %c0_14 = arith.constant 0 : index
    %9 = vector.load %arg6[%c0_12, %c0_13, %c0_14] : memref<1x1x32xf32, #tpu.memory_space<vmem>>, vector<1x1x32xf32>
    %10 = vector.shape_cast %9 : vector<1x1x32xf32> to vector<1x32xf32>
    %11 = vector.broadcast %10 : vector<1x32xf32> to vector<40x32xf32>
    %12 = arith.addf %8, %11 : vector<40x32xf32>
    %13 = arith.truncf %1 : vector<24x32xf32> to vector<24x32xbf16>
    %cst_15 = arith.constant dense<0.000000e+00> : vector<40x32xf32>
    %14 = tpu.matmul %4, %13, %cst_15 {dimension_numbers = #tpu.dot_dimension_numbers<[1], [0], [0], [1], [0, 0, 1, 1], [], []>} : vector<40x24xbf16>, vector<24x32xbf16>, vector<40x32xf32> -> vector<40x32xf32>
    %15 = arith.addf %14, %12 : vector<40x32xf32>
    %cst_16 = arith.constant 0.000000e+00 : f32
    %16 = vector.broadcast %cst_16 : f32 to vector<40x32xf32>
    %17 = arith.maximumf %15, %16 : vector<40x32xf32>
    %18 = arith.truncf %17 : vector<40x32xf32> to vector<40x32xbf16>
    %cst_17 = arith.constant dense<0.000000e+00> : vector<24x32xf32>
    %19 = tpu.matmul %5, %18, %cst_17 {dimension_numbers = #tpu.dot_dimension_numbers<[1], [0], [0], [1], [0, 0, 1, 1], [], []>} : vector<24x40xbf16>, vector<40x32xbf16>, vector<24x32xf32> -> vector<24x32xf32>
    %20 = arith.addf %1, %19 : vector<24x32xf32>
    %21 = arith.truncf %20 : vector<24x32xf32> to vector<24x32xbf16>
    %c0_18 = arith.constant 0 : index
    %c0_19 = arith.constant 0 : index
    %c0_20 = arith.constant 0 : index
    %22 = vector.load %arg7[%c0_18, %c0_19, %c0_20] : memref<1x32x32xbf16, #tpu.memory_space<vmem>>, vector<1x32x32xbf16>
    %23 = vector.shape_cast %22 : vector<1x32x32xbf16> to vector<32x32xbf16>
    %cst_21 = arith.constant dense<0.000000e+00> : vector<24x32xf32>
    %24 = tpu.matmul %21, %23, %cst_21 {dimension_numbers = #tpu.dot_dimension_numbers<[1], [0], [0], [1], [0, 0, 1, 1], [], []>} : vector<24x32xbf16>, vector<32x32xbf16>, vector<24x32xf32> -> vector<24x32xf32>
    %c0_22 = arith.constant 0 : index
    %c0_23 = arith.constant 0 : index
    %c0_24 = arith.constant 0 : index
    %25 = vector.load %arg8[%c0_22, %c0_23, %c0_24] : memref<1x1x32xf32, #tpu.memory_space<vmem>>, vector<1x1x32xf32>
    %26 = vector.shape_cast %25 : vector<1x1x32xf32> to vector<1x32xf32>
    %27 = vector.broadcast %26 : vector<1x32xf32> to vector<24x32xf32>
    %28 = arith.addf %24, %27 : vector<24x32xf32>
    %cst_25 = arith.constant 0.000000e+00 : f32
    %29 = vector.broadcast %cst_25 : f32 to vector<24x32xf32>
    %30 = arith.maximumf %28, %29 : vector<24x32xf32>
    %31 = arith.truncf %30 : vector<24x32xf32> to vector<24x32xbf16>
    %c0_26 = arith.constant 0 : index
    %c0_27 = arith.constant 0 : index
    %c0_28 = arith.constant 0 : index
    %32 = vector.load %arg9[%c0_26, %c0_27, %c0_28] : memref<1x32x32xbf16, #tpu.memory_space<vmem>>, vector<1x32x32xbf16>
    %33 = vector.shape_cast %32 : vector<1x32x32xbf16> to vector<32x32xbf16>
    %cst_29 = arith.constant dense<0.000000e+00> : vector<24x32xf32>
    %34 = tpu.matmul %31, %33, %cst_29 {dimension_numbers = #tpu.dot_dimension_numbers<[1], [0], [0], [1], [0, 0, 1, 1], [], []>} : vector<24x32xbf16>, vector<32x32xbf16>, vector<24x32xf32> -> vector<24x32xf32>
    %c0_30 = arith.constant 0 : index
    %c0_31 = arith.constant 0 : index
    %c0_32 = arith.constant 0 : index
    %35 = vector.load %arg10[%c0_30, %c0_31, %c0_32] : memref<1x1x32xf32, #tpu.memory_space<vmem>>, vector<1x1x32xf32>
    %36 = vector.shape_cast %35 : vector<1x1x32xf32> to vector<1x32xf32>
    %37 = vector.broadcast %36 : vector<1x32xf32> to vector<24x32xf32>
    %38 = arith.addf %34, %37 : vector<24x32xf32>
    %cst_33 = arith.constant 0.000000e+00 : f32
    %39 = vector.broadcast %cst_33 : f32 to vector<24x32xf32>
    %40 = arith.maximumf %38, %39 : vector<24x32xf32>
    %c0_34 = arith.constant 0 : index
    %c0_35 = arith.constant 0 : index
    %c0_36 = arith.constant 0 : index
    %41 = vector.load %arg13[%c0_34, %c0_35, %c0_36] : memref<1x24x32xf32, #tpu.memory_space<vmem>>, vector<1x24x32xf32>
    %42 = vector.shape_cast %41 : vector<1x24x32xf32> to vector<24x32xf32>
    %43 = vector.shape_cast %40 : vector<24x32xf32> to vector<1x24x32xf32>
    tpu.vector_store %arg13[%c0_34, %c0_35, %c0_36], %43 {strides = array<i32>} : memref<1x24x32xf32, #tpu.memory_space<vmem>>, vector<1x24x32xf32>,
    %44 = arith.truncf %40 : vector<24x32xf32> to vector<24x32xbf16>
    %c0_37 = arith.constant 0 : index
    %c0_38 = arith.constant 0 : index
    %45 = vector.load %arg11[%c0_37, %c0_38] : memref<32x32xbf16, #tpu.memory_space<vmem>>, vector<32x32xbf16>
    %cst_39 = arith.constant dense<0.000000e+00> : vector<24x32xf32>
    %46 = tpu.matmul %44, %45, %cst_39 {dimension_numbers = #tpu.dot_dimension_numbers<[1], [0], [0], [1], [0, 0, 1, 1], [], []>} : vector<24x32xbf16>, vector<32x32xbf16>, vector<24x32xf32> -> vector<24x32xf32>
    %c0_40 = arith.constant 0 : index
    %c0_41 = arith.constant 0 : index
    %47 = vector.load %arg12[%c0_40, %c0_41] : memref<1x32xf32, #tpu.memory_space<vmem>>, vector<1x32xf32>
    %48 = vector.broadcast %47 : vector<1x32xf32> to vector<24x32xf32>
    %49 = arith.addf %46, %48 : vector<24x32xf32>
    %c0_42 = arith.constant 0 : index
    %c0_43 = arith.constant 0 : index
    %c0_44 = arith.constant 0 : index
    %50 = vector.load %arg14[%c0_42, %c0_43, %c0_44] : memref<1x24x32xf32, #tpu.memory_space<vmem>>, vector<1x24x32xf32>
    %51 = vector.shape_cast %50 : vector<1x24x32xf32> to vector<24x32xf32>
    %52 = vector.shape_cast %49 : vector<24x32xf32> to vector<1x24x32xf32>
    tpu.vector_store %arg14[%c0_42, %c0_43, %c0_44], %52 {strides = array<i32>} : memref<1x24x32xf32, #tpu.memory_space<vmem>>, vector<1x24x32xf32>,
    return
  }
  func.func @transform_0(%arg0: i32) -> (i32, i32, i32) {
    %c0_i32 = arith.constant 0 : i32
    %c0_i32_0 = arith.constant 0 : i32
    %c0_i32_1 = arith.constant 0 : i32
    return %arg0, %c0_i32, %c0_i32_0 : i32, i32, i32
  }
  func.func @transform_1(%arg0: i32) -> (i32, i32, i32) {
    %c0_i32 = arith.constant 0 : i32
    %c0_i32_0 = arith.constant 0 : i32
    %c0_i32_1 = arith.constant 0 : i32
    %c0_i32_2 = arith.constant 0 : i32
    return %c0_i32, %c0_i32_0, %c0_i32_1 : i32, i32, i32
  }
  func.func @transform_2(%arg0: i32) -> (i32, i32) {
    %c0_i32 = arith.constant 0 : i32
    %c0_i32_0 = arith.constant 0 : i32
    %c0_i32_1 = arith.constant 0 : i32
    return %c0_i32, %c0_i32_0 : i32, i32
  }
  func.func @transform_3(%arg0: i32) -> (i32, i32) {
    %c0_i32 = arith.constant 0 : i32
    %c0_i32_0 = arith.constant 0 : i32
    %c0_i32_1 = arith.constant 0 : i32
    return %c0_i32, %c0_i32_0 : i32, i32
  }
  func.func @transform_4(%arg0: i32) -> (i32, i32, i32) {
    %c0_i32 = arith.constant 0 : i32
    %c0_i32_0 = arith.constant 0 : i32
    %c0_i32_1 = arith.constant 0 : i32
    %c0_i32_2 = arith.constant 0 : i32
    return %c0_i32, %c0_i32_0, %c0_i32_1 : i32, i32, i32
  }
  func.func @transform_5(%arg0: i32) -> (i32, i32, i32) {
    %c0_i32 = arith.constant 0 : i32
    %c0_i32_0 = arith.constant 0 : i32
    %c0_i32_1 = arith.constant 0 : i32
    %c0_i32_2 = arith.constant 0 : i32
    return %c0_i32, %c0_i32_0, %c0_i32_1 : i32, i32, i32
  }
  func.func @transform_6(%arg0: i32) -> (i32, i32, i32) {
    %c0_i32 = arith.constant 0 : i32
    %c0_i32_0 = arith.constant 0 : i32
    %c0_i32_1 = arith.constant 0 : i32
    %c0_i32_2 = arith.constant 0 : i32
    return %c0_i32, %c0_i32_0, %c0_i32_1 : i32, i32, i32
  }
  func.func @transform_7(%arg0: i32) -> (i32, i32, i32) {
    %c0_i32 = arith.constant 0 : i32
    %c0_i32_0 = arith.constant 0 : i32
    %c0_i32_1 = arith.constant 0 : i32
    %c0_i32_2 = arith.constant 0 : i32
    return %c0_i32, %c0_i32_0, %c0_i32_1 : i32, i32, i32
  }
  func.func @transform_8(%arg0: i32) -> (i32, i32, i32) {
    %c0_i32 = arith.constant 0 : i32
    %c0_i32_0 = arith.constant 0 : i32
    %c0_i32_1 = arith.constant 0 : i32
    %c0_i32_2 = arith.constant 0 : i32
    return %c0_i32, %c0_i32_0, %c0_i32_1 : i32, i32, i32
  }
  func.func @transform_9(%arg0: i32) -> (i32, i32, i32) {
    %c0_i32 = arith.constant 0 : i32
    %c0_i32_0 = arith.constant 0 : i32
    %c0_i32_1 = arith.constant 0 : i32
    %c0_i32_2 = arith.constant 0 : i32
    return %c0_i32, %c0_i32_0, %c0_i32_1 : i32, i32, i32
  }
  func.func @transform_10(%arg0: i32) -> (i32, i32) {
    %c0_i32 = arith.constant 0 : i32
    %c0_i32_0 = arith.constant 0 : i32
    %c0_i32_1 = arith.constant 0 : i32
    return %c0_i32, %c0_i32_0 : i32, i32
  }
  func.func @transform_11(%arg0: i32) -> (i32, i32) {
    %c0_i32 = arith.constant 0 : i32
    %c0_i32_0 = arith.constant 0 : i32
    %c0_i32_1 = arith.constant 0 : i32
    return %c0_i32, %c0_i32_0 : i32, i32
  }
  func.func @transform_12(%arg0: i32) -> (i32, i32, i32) {
    %c0_i32 = arith.constant 0 : i32
    %c0_i32_0 = arith.constant 0 : i32
    %c0_i32_1 = arith.constant 0 : i32
    return %arg0, %c0_i32, %c0_i32_0 : i32, i32, i32
  }
  func.func @transform_13(%arg0: i32) -> (i32, i32, i32) {
    %c0_i32 = arith.constant 0 : i32
    %c0_i32_0 = arith.constant 0 : i32
    %c0_i32_1 = arith.constant 0 : i32
    return %arg0, %c0_i32, %c0_i32_0 : i32, i32, i32
  }
}

module attributes {stable_mosaic.version = 11 : i64} {
  func.func @_mlp3_kernel(%arg0: i32, %arg1: memref<8x96xf32, #tpu.memory_space<vmem>>, %arg2: memref<96x64xbf16, #tpu.memory_space<vmem>>, %arg3: memref<1x64xf32, #tpu.memory_space<vmem>>, %arg4: memref<64x32xbf16, #tpu.memory_space<vmem>>, %arg5: memref<1x32xf32, #tpu.memory_space<vmem>>, %arg6: memref<32x1xbf16, #tpu.memory_space<vmem>>, %arg7: memref<1x1xf32, #tpu.memory_space<vmem>>, %arg8: memref<8x1xf32, #tpu.memory_space<vmem>>) attributes {dimension_semantics = [#tpu.dimension_semantics<arbitrary>], iteration_bounds = array<i64: 1>, scalar_prefetch = 0 : i64, scratch_operands = 0 : i64, tpu.core_type = #tpu.core_type<tc>, window_params = [{pipeline_mode = #tpu.pipeline_mode<synchronous>, transform_indices = @transform_0, window_bounds = array<i64: 8, 96>}, {pipeline_mode = #tpu.pipeline_mode<synchronous>, transform_indices = @transform_1, window_bounds = array<i64: 96, 64>}, {pipeline_mode = #tpu.pipeline_mode<synchronous>, transform_indices = @transform_2, window_bounds = array<i64: 1, 64>}, {pipeline_mode = #tpu.pipeline_mode<synchronous>, transform_indices = @transform_3, window_bounds = array<i64: 64, 32>}, {pipeline_mode = #tpu.pipeline_mode<synchronous>, transform_indices = @transform_4, window_bounds = array<i64: 1, 32>}, {pipeline_mode = #tpu.pipeline_mode<synchronous>, transform_indices = @transform_5, window_bounds = array<i64: 32, 1>}, {pipeline_mode = #tpu.pipeline_mode<synchronous>, transform_indices = @transform_6, window_bounds = array<i64: 1, 1>}, {pipeline_mode = #tpu.pipeline_mode<synchronous>, transform_indices = @transform_7, window_bounds = array<i64: 8, 1>}]} {
    %c0 = arith.constant 0 : index
    %c0_0 = arith.constant 0 : index
    %0 = vector.load %arg1[%c0, %c0_0] : memref<8x96xf32, #tpu.memory_space<vmem>>, vector<8x96xf32>
    %1 = arith.truncf %0 : vector<8x96xf32> to vector<8x96xbf16>
    %c0_1 = arith.constant 0 : index
    %c0_2 = arith.constant 0 : index
    %2 = vector.load %arg2[%c0_1, %c0_2] : memref<96x64xbf16, #tpu.memory_space<vmem>>, vector<96x64xbf16>
    %cst = arith.constant dense<0.000000e+00> : vector<8x64xf32>
    %3 = tpu.matmul %1, %2, %cst {dimension_numbers = #tpu.dot_dimension_numbers<[1], [0], [0], [1], [0, 0, 1, 1], [], []>} : vector<8x96xbf16>, vector<96x64xbf16>, vector<8x64xf32> -> vector<8x64xf32>
    %c0_3 = arith.constant 0 : index
    %c0_4 = arith.constant 0 : index
    %4 = vector.load %arg3[%c0_3, %c0_4] : memref<1x64xf32, #tpu.memory_space<vmem>>, vector<1x64xf32>
    %5 = vector.broadcast %4 : vector<1x64xf32> to vector<8x64xf32>
    %6 = arith.addf %3, %5 : vector<8x64xf32>
    %cst_5 = arith.constant 0.000000e+00 : f32
    %7 = vector.broadcast %cst_5 : f32 to vector<8x64xf32>
    %8 = arith.maximumf %6, %7 : vector<8x64xf32>
    %9 = arith.truncf %8 : vector<8x64xf32> to vector<8x64xbf16>
    %c0_6 = arith.constant 0 : index
    %c0_7 = arith.constant 0 : index
    %10 = vector.load %arg4[%c0_6, %c0_7] : memref<64x32xbf16, #tpu.memory_space<vmem>>, vector<64x32xbf16>
    %cst_8 = arith.constant dense<0.000000e+00> : vector<8x32xf32>
    %11 = tpu.matmul %9, %10, %cst_8 {dimension_numbers = #tpu.dot_dimension_numbers<[1], [0], [0], [1], [0, 0, 1, 1], [], []>} : vector<8x64xbf16>, vector<64x32xbf16>, vector<8x32xf32> -> vector<8x32xf32>
    %c0_9 = arith.constant 0 : index
    %c0_10 = arith.constant 0 : index
    %12 = vector.load %arg5[%c0_9, %c0_10] : memref<1x32xf32, #tpu.memory_space<vmem>>, vector<1x32xf32>
    %13 = vector.broadcast %12 : vector<1x32xf32> to vector<8x32xf32>
    %14 = arith.addf %11, %13 : vector<8x32xf32>
    %cst_11 = arith.constant 0.000000e+00 : f32
    %15 = vector.broadcast %cst_11 : f32 to vector<8x32xf32>
    %16 = arith.maximumf %14, %15 : vector<8x32xf32>
    %17 = arith.truncf %16 : vector<8x32xf32> to vector<8x32xbf16>
    %c0_12 = arith.constant 0 : index
    %c0_13 = arith.constant 0 : index
    %18 = vector.load %arg6[%c0_12, %c0_13] : memref<32x1xbf16, #tpu.memory_space<vmem>>, vector<32x1xbf16>
    %cst_14 = arith.constant dense<0.000000e+00> : vector<8x1xf32>
    %19 = tpu.matmul %17, %18, %cst_14 {dimension_numbers = #tpu.dot_dimension_numbers<[1], [0], [0], [1], [0, 0, 1, 1], [], []>} : vector<8x32xbf16>, vector<32x1xbf16>, vector<8x1xf32> -> vector<8x1xf32>
    %c0_15 = arith.constant 0 : index
    %c0_16 = arith.constant 0 : index
    %20 = vector.load %arg7[%c0_15, %c0_16] : memref<1x1xf32, #tpu.memory_space<vmem>>, vector<1x1xf32>
    %21 = vector.broadcast %20 : vector<1x1xf32> to vector<8x1xf32>
    %22 = arith.addf %19, %21 : vector<8x1xf32>
    %c0_17 = arith.constant 0 : index
    %c0_18 = arith.constant 0 : index
    %23 = vector.load %arg8[%c0_17, %c0_18] : memref<8x1xf32, #tpu.memory_space<vmem>>, vector<8x1xf32>
    tpu.vector_store %arg8[%c0_17, %c0_18], %22 {strides = array<i32>} : memref<8x1xf32, #tpu.memory_space<vmem>>, vector<8x1xf32>,
    return
  }
  func.func @transform_0(%arg0: i32) -> (i32, i32) {
    %c0_i32 = arith.constant 0 : i32
    %c0_i32_0 = arith.constant 0 : i32
    %c0_i32_1 = arith.constant 0 : i32
    return %c0_i32, %c0_i32_0 : i32, i32
  }
  func.func @transform_1(%arg0: i32) -> (i32, i32) {
    %c0_i32 = arith.constant 0 : i32
    %c0_i32_0 = arith.constant 0 : i32
    %c0_i32_1 = arith.constant 0 : i32
    return %c0_i32, %c0_i32_0 : i32, i32
  }
  func.func @transform_2(%arg0: i32) -> (i32, i32) {
    %c0_i32 = arith.constant 0 : i32
    %c0_i32_0 = arith.constant 0 : i32
    %c0_i32_1 = arith.constant 0 : i32
    return %c0_i32, %c0_i32_0 : i32, i32
  }
  func.func @transform_3(%arg0: i32) -> (i32, i32) {
    %c0_i32 = arith.constant 0 : i32
    %c0_i32_0 = arith.constant 0 : i32
    %c0_i32_1 = arith.constant 0 : i32
    return %c0_i32, %c0_i32_0 : i32, i32
  }
  func.func @transform_4(%arg0: i32) -> (i32, i32) {
    %c0_i32 = arith.constant 0 : i32
    %c0_i32_0 = arith.constant 0 : i32
    %c0_i32_1 = arith.constant 0 : i32
    return %c0_i32, %c0_i32_0 : i32, i32
  }
  func.func @transform_5(%arg0: i32) -> (i32, i32) {
    %c0_i32 = arith.constant 0 : i32
    %c0_i32_0 = arith.constant 0 : i32
    %c0_i32_1 = arith.constant 0 : i32
    return %c0_i32, %c0_i32_0 : i32, i32
  }
  func.func @transform_6(%arg0: i32) -> (i32, i32) {
    %c0_i32 = arith.constant 0 : i32
    %c0_i32_0 = arith.constant 0 : i32
    %c0_i32_1 = arith.constant 0 : i32
    return %c0_i32, %c0_i32_0 : i32, i32
  }
  func.func @transform_7(%arg0: i32) -> (i32, i32) {
    %c0_i32 = arith.constant 0 : i32
    %c0_i32_0 = arith.constant 0 : i32
    %c0_i32_1 = arith.constant 0 : i32
    return %c0_i32, %c0_i32_0 : i32, i32
  }
}

</mosaic_0001>

<bundles_post_ra>
// kernel: pfgnn_forward.9
= control target key start
LH: loop header
LB: loop body
LE: loop exit
PB: predicated region body
PF: predicated region fallthrough
CT: control target
= control target key end

     0   :  { %s692_s26 = smov 0   ;;  %s741_s0 = inlined_call_operand.vmem [shape: f32[4,24,32], index: 0, kind: input, shape index: {}]   ;;  %s742_s1 = inlined_call_operand.vmem [shape: bf16[32,32], index: 1, kind: input, shape index: {}]   ;;  %s743_s2 = inlined_call_operand.vmem [shape: f32[1,32], index: 2, kind: input, shape index: {}]   ;;  %s744_s3 = inlined_call_operand.vmem [shape: bf16[32,32], index: 3, kind: input, shape index: {}]   ;;  %s745_s4 = inlined_call_operand.vmem [shape: f32[1,32], index: 4, kind: input, shape index: {}]   ;;  %s746_s5 = inlined_call_operand.vmem [shape: bf16[8,32], index: 5, kind: input, shape index: {}]   ;;  %s747_s6 = inlined_call_operand.<no memory space> [shape: f32[1,1], index: 6, kind: input, shape index: {}]   ;;  %s748_s7 = inlined_call_operand.vmem [shape: f32[4,8,24], index: 7, kind: output, shape index: {}]  }
   0x1   :  { %v12_v0 = vstv %s747_s6 }
   0x2   :  { %13 = vst [vmem:[#allocation2] sm:$0x1] %v12_v0 }
   0x3 LB: > { %s565_s27 = sadd.s32 4294967295, %s644_s26   ;;  %p569_p0 = scmp.ge.s32.totalorder %s644_s26, 1  ;;  %s644_s26 = sphi %s692_s26, %s19_s26  }
   0x4   : > { %p239_p1 = scmp.lt.s32.totalorder %s644_s26, 5 }
   0x6   : > { %p240_p2 = pnand %p569_p0, %p239_p1 }
   0x7   : > { %v634_v1 = vld [vmem:[%s742_s1] sm:$0xff] (!%p240_p2)   ;;  %p270_p3 = scmp.lt.s32.totalorder (!%p240_p2), %s565_s27, 3  ;;  %v635_v2 = vld [vmem:[%s742_s1 + $0x8] sm:$0xff] (!%p240_p2)   ;;  %vm308_vm0 = vcmask (!%p240_p2), 261120   ;;  %v646_v23 = vmov (!%p240_p2), 0.0   ;;  %vm647_vm1 = vmmov (!%p240_p2), 0  }
   0x8   : > { %243 = sbr.rel (%p240_p2) target bundleno = 697 (0x2b9), region = 48  ;;  %597 = vmatprep.subr.bf16.mxu1 (!%p240_p2), %v634_v1  ;;  %v636_v8 = vld [vmem:[%s744_s3] sm:$0xff] (!%p240_p2)   ;;  %v637_v9 = vld [vmem:[%s744_s3 + $0x8] sm:$0xff] (!%p240_p2)   ;;  %613 = vmatprep.subr.bf16.mxu0 (!%p240_p2), %v646_v23  ;;  %v648_v25 = vmov (!%p240_p2), 0   ;;  %vm510_vm2 = vcmask (!%p240_p2), 195584  }
   0x9   : > { %598 = vmatpush3.bf16.msra.mxu1 (!%p240_p2), %v634_v1  ;;  %v572_v10 = vld [vmem:[%s743_s2] ss:$0 sm:$0xff] (!%p240_p2)  ;;  %617 = vmatprep.mubr.msk.bf16.mxu0 (!%p240_p2), %vm647_vm1, %v646_v23 }
   0xa   : > { %599 = vmatprep.subr.bf16.mxu1 (!%p240_p2), %v635_v2  ;;  %v582_v24 = vld [vmem:[#allocation2] ss:$0 sm:$0xff] (!%p240_p2)  ;;  %633 = vset.pattern.permute.xlu0 (!%p240_p2), %v648_v25 }
   0xb   : > { %458 = vperm.xlu0 (!%p240_p2), %633, %v582_v24   ;;  %v577_v26 = vld [vmem:[%s745_s4] ss:$0 sm:$0xff] (!%p240_p2) }
   0xc   : > { %v448_v41 = vld [vmem:[%s746_s5] sm:$0xf] (!%p240_p2) }
   0xd   : > { %600 = vmatpush3.bf16.msra.mxu1 (!%p240_p2), %v635_v2 }
   0xe   : > { %605 = vmatprep.subr.bf16.mxu1 (!%p240_p2), %v636_v8 }
   0xf   : > { %s750_s27 = smov (!%p270_p3, %s565_s27), 3 }
  0x10   : > { %s621_s8 = smul.u32 24, %s750_s27  ;;  %s571_s22 = sshll.u32 %s750_s27, 3 }
  0x11   : > { %s278_s25 = scalar_lea.vmem %s748_s7, %s571_s22 }
  0x12   : > { %s274_s11 = scalar_lea.vmem %s741_s0, %s621_s8 }
  0x13   : > { %v280_v3 = vld [vmem:[%s274_s11] sm:$0xff]  ;;  %v281_v4 = vld [vmem:[%s274_s11 + $0x8] sm:$0xff]  ;;  %v282_v5 = vld [vmem:[%s274_s11 + $0x10] sm:$0xff] }
  0x14   : > { %v283_v6 = vpack.c.bf16 %v281_v4, %v280_v3  ;;  %v284_v7 = vpack.c.bf16 %v282_v5, %v282_v5 }
  0x16   : > { %601 = vmatprep.mubr.msk.bf16.mxu1 %vm308_vm0, %v283_v6 }
  0x17   : > { %602 = vmatmul.mubr.msk.bf16.vlgmr.msra.gmra.mrb[0].mxu1 %vm308_vm0, %v284_v7 }
  0x18   : > { %606 = vmatpush3.bf16.msra.mxu1 %v636_v8 }
  0x19   : > { %607 = vmatprep.subr.bf16.mxu1 %v637_v9 }
  0x1c   : > { %608 = vmatpush3.bf16.msra.mxu1 %v637_v9 }
  0x8a   : > { %v459_v42 = vpop.permute.xlu0 %458 }
  0xea   : > { %v603_v11 = vpop.f32.mrb[0].mxu1 }
  0xeb   : > { %v358_v12 = vadd.f32 %v603_v11, %v572_v10  ;;  %v349_v13 = vpop.f32.mrb[1].mxu1 }
  0xec   : > { %v350_v14 = vadd.f32 %v572_v10, %v349_v13  ;;  %v604_v15 = vpop.f32.mrb[2].mxu1 }
  0xed   : > { %v352_v16 = vpop.f32.mrb[3].mxu1  ;;  %v365_v18 = vmax.f32 %v358_v12, 0.0 }
  0xee   : > { %v353_v17 = vadd.f32 %v572_v10, %v352_v16  ;;  %v363_v19 = vmax.f32 %v350_v14, 0.0 }
  0xef   : > { %v367_v22 = vpack.c.bf16 %v365_v18, %v365_v18 }
  0xf0   : > { %v364_v20 = vmax.f32 %v353_v17, 0.0 }
  0xf2   : > { %v366_v21 = vpack.c.bf16 %v364_v20, %v363_v19 }
  0xf4   : > { %609 = vmatprep.mubr.msk.bf16.mxu1 %vm308_vm0, %v366_v21 }
  0xf5   : > { %610 = vmatmul.mubr.msk.bf16.vlgmr.msra.gmra.mrb[4].mxu1 %vm308_vm0, %v367_v22 }
 0x1c8   : > { %v611_v27 = vpop.f32.mrb[4].mxu1 }
 0x1c9   : > { %v431_v28 = vpop.f32.mrb[5].mxu1  ;;  %v440_v33 = vadd.f32 %v611_v27, %v577_v26 }
 0x1ca   : > { %v432_v29 = vadd.f32 %v577_v26, %v431_v28  ;;  %v612_v30 = vpop.f32.mrb[6].mxu1 }
 0x1cb   : > { %v434_v31 = vpop.f32.mrb[7].mxu1  ;;  %v447_v37 = vmax.f32 %v440_v33, 0.0 }
 0x1cc   : > { %v435_v32 = vadd.f32 %v577_v26, %v434_v31  ;;  %v445_v34 = vmax.f32 %v432_v29, 0.0 }
 0x1cd   : > { %v450_v39 = vpack.c.bf16 %v447_v37, %v447_v37 }
 0x1ce   : > { %v446_v35 = vmax.f32 %v435_v32, 0.0 }
 0x1cf   : > { %v468_v40 = vsel %vm308_vm0, %v450_v39, 0 }
 0x1d0   : > { %v449_v36 = vpack.c.bf16 %v446_v35, %v445_v34 }
 0x1d2   : > { %v465_v38 = vsel %vm308_vm0, %v449_v36, 0 }
 0x1d3   : > { %614 = vmatpush3.bf16.xpose.msra.mxu0 %v465_v38 }
 0x1d4   : > { %615 = vmatprep.subr.bf16.mxu0 %v646_v23 }
 0x1db   : > { %616 = vmatpush3.bf16.xpose.msra.mxu0 %v468_v40 }
 0x1e2   : > { %618 = vmatmul.mubr.msk.bf16.vlgmr.msra.gmra.mrb[0].mxu0 %vm308_vm0, %v448_v41 }
 0x2b5   : > { %v504_v43 = vpop.f32.mrb[0].mxu0 }
 0x2b6   : > { %v505_v44 = vadd.f32 %v504_v43, %v459_v42  ;;  %v619_v45 = vpop.f32.mrb[1].mxu0 }
 0x2b7   : > { %v507_v46 = vpop.f32.mrb[2].mxu0 }
 0x2b8   : > { %511 = vst.msk [vmem:[%s278_s25] sm:$0xff] %vm510_vm2, %v505_v44  ;;  %v620_v47 = vpop.f32.mrb[3].mxu0 }
 0x2b9 PF: > { %s19_s26 = sadd.s32 1, %s644_s26  }
 0x2ba   : > { %p16_p4 = scmp.ge.s32.totalorder %s19_s26, 6  }
 0x2bc   :  { %18 = sbr.rel (!%p16_p4) target bundleno = 3 (0x3), region = 78 }

// kernel: pfgnn_forward.8
= control target key start
LH: loop header
LB: loop body
LE: loop exit
PB: predicated region body
PF: predicated region fallthrough
CT: control target
= control target key end

     0   :  { %v2799_v0 = vmov 0.0   ;;  %vm2800_vm0 = vmmov 0   ;;  %vm187_vm1 = vcmask 1043456   ;;  %vm96_vm2 = vcmask 261120   ;;  %s3328_s4 = inlined_call_operand.vmem [shape: bf16[5,32,32], index: 4, kind: input, shape index: {}]   ;;  %s3329_s1 = inlined_call_operand.vmem [shape: bf16[1,40,32], index: 1, kind: input, shape index: {}]   ;;  %s3330_s0 = inlined_call_operand.vmem [shape: f32[1,24,32], index: 0, kind: input, shape index: {}]   ;;  %s3331_s2 = inlined_call_operand.vmem [shape: bf16[40,24], index: 2, kind: input, shape index: {}]   ;;  %s3332_s3 = inlined_call_operand.vmem [shape: bf16[24,40], index: 3, kind: input, shape index: {}]   ;;  %s3333_s5 = inlined_call_operand.vmem [shape: f32[5,1,32], index: 5, kind: input, shape index: {}]   ;;  %s3334_s6 = inlined_call_operand.vmem [shape: bf16[5,32,32], index: 6, kind: input, shape index: {}]   ;;  %s3335_s8 = inlined_call_operand.vmem [shape: bf16[5,32,32], index: 8, kind: input, shape index: {}]   ;;  %s3336_s7 = inlined_call_operand.vmem [shape: f32[5,1,32], index: 7, kind: input, shape index: {}]   ;;  %s3337_s9 = inlined_call_operand.vmem [shape: f32[5,1,32], index: 9, kind: input, shape index: {}]   ;;  %s3338_s10 = inlined_call_operand.vmem [shape: bf16[32,32], index: 10, kind: input, shape index: {}]   ;;  %s3339_s12 = inlined_call_operand.vmem [shape: f32[1,24,32], index: 12, kind: output, shape index: {0}]   ;;  %s3340_s11 = inlined_call_operand.vmem [shape: f32[1,32], index: 11, kind: input, shape index: {}]   ;;  %s3341_s13 = inlined_call_operand.vmem [shape: f32[1,24,32], index: 13, kind: output, shape index: {1}]  }
   0x1   :  { %2366 = vmatprep.subr.bf16.mxu0 %v2799_v0  ;;  %v2757_v1 = vld [vmem:[%s3328_s4] sm:$0xff]   ;;  %2370 = vmatprep.mubr.msk.bf16.mxu0 %vm2800_vm0, %v2799_v0  ;;  %v2758_v2 = vld [vmem:[%s3328_s4 + $0x8] sm:$0xff]   ;;  %v2897_v5 = vld [vmem:[%s3330_s0 + $0x10] sm:$0xff]  ;;  %vm177_vm3 = vcmask 195584   ;;  %vm263_vm4 = vcmask 326656  }
   0x2   :  { %2664 = vmatprep.subr.bf16.mxu1 %v2799_v0  ;;  %2394 = vmatprep.mubr.msk.bf16.mxu1 %vm2800_vm0, %v2799_v0  ;;  %v2887_v3 = vld [vmem:[%s3330_s0] sm:$0xff]  ;;  %v2892_v4 = vld [vmem:[%s3330_s0 + $0x8] sm:$0xff]  ;;  %v163_v8 = vpack.c.bf16 %v2897_v5, %v2897_v5  ;;  %v2914_v10 = vld [vmem:[%s3331_s2 + $0x10] ss:$0 sps:$4 sm:$0xff]  }
   0x3   :  { %2367 = vmatpush3.bf16.msra.mxu0 %v2757_v1  ;;  %v2902_v6 = vld [vmem:[%s3329_s1] sm:$0xff]   ;;  %v162_v7 = vpack.c.bf16 %v2892_v4, %v2887_v3  ;;  %v2923_v11 = vld [vmem:[%s3329_s1 + $0x8] sm:$0xff]   ;;  %v2935_v12 = vld [vmem:[%s3329_s1 + $0x10] ss:$0 sps:$4 sm:$0xff]  }
   0x4   :  { %2368 = vmatprep.subr.bf16.mxu0 %v2799_v0  ;;  %v189_v9 = vsel %vm187_vm1, %v163_v8, 0  ;;  %v2944_v13 = vld [vmem:[%s3331_s2] sm:$0xff]   ;;  %v2953_v14 = vld [vmem:[%s3331_s2 + $0x8] sm:$0xff]  }
   0x5   :  { %2666 = vmatpush3.bf16.msra.mxu1 %v162_v7  ;;  %v2960_v15 = vld [vmem:[%s3332_s3] sm:$0xff]   ;;  %v2974_v48 = vld [vmem:[%s3332_s3 + $0x8] ss:$0 sps:$4 sm:$0xff]  }
   0x6   :  { %2665 = vmatprep.subr.bf16.mxu1 %v2799_v0  ;;  %v2069_v20 = vld [vmem:[%s3333_s5] ss:$0 sm:$0xff]  ;;  %v2768_v50 = vld [vmem:[%s3334_s6 + $0x8] sm:$0xff]  }
   0x7   :  { %2369 = vmatpush3.bf16.msra.mxu0 %v2758_v2  ;;  %v2767_v49 = vld [vmem:[%s3334_s6] sm:$0xff]   ;;  %v2770_v61 = vld [vmem:[%s3335_s8 + $0x8] sm:$0xff]  }
   0x8   :  { %2382 = vmatprep.subr.bf16.mxu0 %v2799_v0  ;;  %v2769_v60 = vld [vmem:[%s3335_s8] sm:$0xff]  }
   0x9   :  { %2667 = vmatpush3.bf16.msra.mxu1 %v189_v9  ;;  %v2088_v62 = vld [vmem:[%s3336_s7] ss:$0 sm:$0xff] }
   0xa   :  { %2371 = vmatmul.mubr.msk.bf16.vlgmr.msra.gmra.mrb[0].mxu0 %vm96_vm2, %v2902_v6 }
   0xb   :  { %2374 = vmatprep.mubr.msk.bf16.mxu0 %vm2800_vm0, %v2799_v0  ;;  %2383 = vmatpush3.bf16.msra.mxu0 %v162_v7 }
   0xc   :  { %2384 = vmatprep.subr.bf16.mxu0 %v2799_v0  ;;  %2395 = vmatmul.mubr.msk.bf16.vlgmr.msra.gmra.mrb[0].mxu1 %vm177_vm3, %v2914_v10 }
   0xd   :  { %2404 = vmatprep.mubr.msk.bf16.mxu1 %vm263_vm4, %v2960_v15 }
   0xf   :  { %2385 = vmatpush3.bf16.msra.mxu0 %v189_v9 }
  0x12   :  { %2375 = vmatmul.mubr.msk.bf16.gmra.mrb[4].mxu0 %vm96_vm2, %v2923_v11 }
  0x13   :  { %2378 = vmatprep.mubr.msk.bf16.mxu0 %vm2800_vm0, %v2799_v0 }
  0x1a   :  { %2379 = vmatmul.mubr.msk.bf16.gmra.mrb[8].mxu0 %vm96_vm2, %v2935_v12 }
  0x1b   :  { %2386 = vmatprep.mubr.msk.bf16.mxu0 %vm2800_vm0, %v2799_v0 }
  0x22   :  { %2387 = vmatmul.mubr.msk.bf16.vlgmr.msra.gmra.mrb[0].mxu0 %vm177_vm3, %v2944_v13 }
  0x23   :  { %2390 = vmatprep.mubr.msk.bf16.mxu0 %vm2800_vm0, %v2799_v0 }
  0x2a   :  { %2391 = vmatmul.mubr.msk.bf16.gmra.mrb[4].mxu0 %vm177_vm3, %v2953_v14 }
  0x2b   :  { %2462 = vmatprep.mubr.msk.bf16.mxu0 %vm263_vm4, %v2960_v15 }
  0xdf   :  { %v241_v16 = vpop.f32.mrb[0].mxu1 }
  0xe0   :  { %v2396_v17 = vpop.f32.mrb[1].mxu1 }
  0xe1   :  { %v244_v18 = vpop.f32.mrb[2].mxu1 }
  0xe2   :  { %v2397_v19 = vpop.f32.mrb[3].mxu1  ;;  %v2771_v18 = vld [vmem:[%s3328_s4 + $0x10] sm:$0xff]  }
  0xed   :  { %v156_v21 = vpop.f32.mrb[8].mxu0 }
  0xee   :  { %v157_v22 = vadd.f32 %v2069_v20, %v156_v21  ;;  %v2380_v23 = vpop.f32.mrb[9].mxu0  ;;  %v2093_v21 = vld [vmem:[%s3337_s9] ss:$0 sm:$0xff] }
  0xef   :  { %v159_v24 = vpop.f32.mrb[10].mxu0 }
  0xf0   :  { %v242_v25 = vadd.f32 %v241_v16, %v157_v22  ;;  %v2381_v26 = vpop.f32.mrb[11].mxu0 }
  0xf2   :  { %v251_v42 = vmax.f32 %v242_v25, 0.0 }
  0xf4   :  { %v254_v46 = vpack.c.bf16 %v251_v42, %v251_v42 }
  0xf5   :  { %v225_v27 = vpop.f32.mrb[0].mxu0 }
  0xf6   :  { %v2668_v28 = vadd.f32 %v2069_v20, %v225_v27  ;;  %v2388_v29 = vpop.f32.mrb[1].mxu0  ;;  %v271_v47 = vsel %vm187_vm1, %v254_v46, 0 }
  0xf7   :  { %v228_v30 = vpop.f32.mrb[2].mxu0 }
  0xf8   :  { %v2669_v31 = vadd.f32 %v2069_v20, %v228_v30  ;;  %v2389_v32 = vpop.f32.mrb[3].mxu0  ;;  %v247_v33 = vmax.f32 %v2668_v28, 0.0 }
  0xfa   :  { %v248_v34 = vmax.f32 %v2669_v31, 0.0 }
  0xfc   :  { %v252_v35 = vpack.c.bf16 %v248_v34, %v247_v33 }
  0xfd   :  { %v233_v36 = vpop.f32.mrb[4].mxu0 }
  0xfe   :  { %v2670_v37 = vadd.f32 %v2069_v20, %v233_v36  ;;  %v2392_v38 = vpop.f32.mrb[5].mxu0  ;;  %2398 = vmatprep.subr.bf16.mxu1 %v252_v35 }
  0xff   :  { %v236_v39 = vpop.f32.mrb[6].mxu0  ;;  %2399 = vmatpush3.bf16.msra.mxu1 %v252_v35  ;;  %v2103_v35 = vld [vmem:[%s3333_s5 + $0x1] ss:$0 sm:$0xff] }
 0x100   :  { %v2671_v40 = vadd.f32 %v2069_v20, %v236_v39  ;;  %v2393_v41 = vpop.f32.mrb[7].mxu0  ;;  %v249_v43 = vmax.f32 %v2670_v37, 0.0  ;;  %v2772_v20 = vld [vmem:[%s3328_s4 + $0x18] sm:$0xff]  }
 0x102   :  { %v250_v44 = vmax.f32 %v2671_v40, 0.0 }
 0x104   :  { %v253_v45 = vpack.c.bf16 %v250_v44, %v249_v43 }
 0x106   :  { %2400 = vmatprep.subr.bf16.mxu1 %v253_v45 }
 0x107   :  { %2401 = vmatpush3.bf16.msra.mxu1 %v253_v45 }
 0x108   :  { %2750 = vmatprep.subr.msk.bf16.mxu1 %vm187_vm1, %v254_v46 }
 0x10b   :  { %2403 = vmatpush3.bf16.msra.mxu1 %v271_v47 }
 0x10c   :  { %2408 = vmatprep.subr.bf16.mxu1 %v2767_v49 }
 0x10e   :  { %2405 = vmatmul.mubr.msk.bf16.vlgmr.msra.gmra.mrb[4].mxu1 %vm263_vm4, %v2974_v48 }
 0x10f   :  { %2409 = vmatpush3.bf16.msra.mxu1 %v2767_v49 }
 0x110   :  { %2410 = vmatprep.subr.bf16.mxu1 %v2768_v50 }
 0x113   :  { %2411 = vmatpush3.bf16.msra.mxu1 %v2768_v50 }
 0x114   :  { %2416 = vmatprep.subr.bf16.mxu1 %v2769_v60 }
 0x1e1   :  { %v2406_v51 = vpop.f32.mrb[4].mxu1 }
 0x1e2   :  { %v307_v52 = vpop.f32.mrb[5].mxu1  ;;  %v323_v54 = vadd.f32 %v2406_v51, %v2897_v5 }
 0x1e3   :  { %v2407_v53 = vpop.f32.mrb[6].mxu1  ;;  %v321_v56 = vadd.f32 %v307_v52, %v2887_v3 }
 0x1e4   :  { %v310_v55 = vpop.f32.mrb[7].mxu1  ;;  %v325_v59 = vpack.c.bf16 %v323_v54, %v323_v54 }
 0x1e5   :  { %v322_v57 = vadd.f32 %v310_v55, %v2892_v4 }
 0x1e7   :  { %v324_v58 = vpack.c.bf16 %v322_v57, %v321_v56 }
 0x1e9   :  { %2412 = vmatprep.mubr.msk.bf16.mxu1 %vm96_vm2, %v324_v58 }
 0x1ea   :  { %2413 = vmatmul.mubr.msk.bf16.vlgmr.msra.gmra.mrb[8].mxu1 %vm96_vm2, %v325_v59 }
 0x1eb   :  { %2417 = vmatpush3.bf16.msra.mxu1 %v2769_v60 }
 0x1ec   :  { %2418 = vmatprep.subr.bf16.mxu1 %v2770_v61 }
 0x1ef   :  { %2419 = vmatpush3.bf16.msra.mxu1 %v2770_v61 }
 0x1f0   :  { %2424 = vmatprep.subr.bf16.mxu1 %v2799_v0 }
 0x2bd   :  { %v2414_v63 = vpop.f32.mrb[8].mxu1 }
 0x2be   :  { %v398_v1 = vadd.f32 %v2414_v63, %v2088_v62  ;;  %v389_v2 = vpop.f32.mrb[9].mxu1  ;;  %v2773_v63 = vld [vmem:[%s3334_s6 + $0x10] sm:$0xff]  }
 0x2bf   :  { %v390_v3 = vadd.f32 %v2088_v62, %v389_v2  ;;  %v2415_v4 = vpop.f32.mrb[10].mxu1 }
 0x2c0   :  { %v392_v5 = vpop.f32.mrb[11].mxu1  ;;  %v405_v8 = vmax.f32 %v398_v1, 0.0  ;;  %v2774_v1 = vld [vmem:[%s3334_s6 + $0x18] sm:$0xff]  }
 0x2c1   :  { %v393_v7 = vadd.f32 %v2088_v62, %v392_v5  ;;  %v403_v9 = vmax.f32 %v390_v3, 0.0 }
 0x2c2   :  { %v407_v19 = vpack.c.bf16 %v405_v8, %v405_v8 }
 0x2c3   :  { %v404_v16 = vmax.f32 %v393_v7, 0.0 }
 0x2c5   :  { %v406_v17 = vpack.c.bf16 %v404_v16, %v403_v9 }
 0x2c7   :  { %2420 = vmatprep.mubr.msk.bf16.mxu1 %vm96_vm2, %v406_v17 }
 0x2c8   :  { %2421 = vmatmul.mubr.msk.bf16.vlgmr.msra.gmra.mrb[12].mxu1 %vm96_vm2, %v407_v19  ;;  %v2776_v19 = vld [vmem:[%s3335_s8 + $0x18] sm:$0xff]  }
 0x2c9   :  { %2425 = vmatpush3.bf16.msra.mxu1 %v2771_v18  ;;  %2428 = vmatprep.mubr.msk.bf16.mxu1 %vm2800_vm0, %v2799_v0  ;;  %v2775_v18 = vld [vmem:[%s3335_s8 + $0x10] sm:$0xff]  }
 0x2ca   :  { %2426 = vmatprep.subr.bf16.mxu1 %v2799_v0 }
 0x2cd   :  { %2427 = vmatpush3.bf16.msra.mxu1 %v2772_v20  ;;  %v2119_v20 = vld [vmem:[%s3336_s7 + $0x1] ss:$0 sm:$0xff] }
 0x2ce   :  { %2440 = vmatprep.subr.bf16.mxu1 %v2799_v0 }
 0x2d0   :  { %2429 = vmatmul.mubr.msk.bf16.vlgmr.msra.gmra.mrb[16].mxu1 %vm96_vm2, %v2902_v6 }
 0x2d1   :  { %2432 = vmatprep.mubr.msk.bf16.mxu1 %vm2800_vm0, %v2799_v0 }
 0x2d8   :  { %2433 = vmatmul.mubr.msk.bf16.gmra.mrb[20].mxu1 %vm96_vm2, %v2923_v11 }
 0x2d9   :  { %2436 = vmatprep.mubr.msk.bf16.mxu1 %vm2800_vm0, %v2799_v0 }
 0x2e0   :  { %2437 = vmatmul.mubr.msk.bf16.gmra.mrb[24].mxu1 %vm96_vm2, %v2935_v12 }
 0x2e1   :  { %2444 = vmatprep.mubr.msk.bf16.mxu1 %vm2800_vm0, %v2799_v0 }
 0x39b   :  { %v2422_v22 = vpop.f32.mrb[12].mxu1 }
 0x39c   :  { %v480_v23 = vadd.f32 %v2422_v22, %v2093_v21  ;;  %v471_v24 = vpop.f32.mrb[13].mxu1 }
 0x39d   :  { %v3026_v25 = vadd.f32 %v2093_v21, %v471_v24  ;;  %v2423_v26 = vpop.f32.mrb[14].mxu1 }
 0x39e   :  { %v474_v27 = vpop.f32.mrb[15].mxu1  ;;  %v487_v29 = vmax.f32 %v480_v23, 0.0 }
 0x39f   :  { %v3028_v28 = vadd.f32 %v2093_v21, %v474_v27  ;;  %v485_v30 = vmax.f32 %v3026_v25, 0.0 }
 0x3a0   :  { %v570_v33 = vpack.c.bf16 %v487_v29, %v487_v29 }
 0x3a1   :  { %v486_v31 = vmax.f32 %v3028_v28, 0.0 }
 0x3a2   :  { %v572_v34 = vsel %vm187_vm1, %v570_v33, 0 }
 0x3a3   :  { %v569_v32 = vpack.c.bf16 %v486_v31, %v485_v30 }
 0x3a5   :  { %2441 = vmatpush3.bf16.msra.mxu1 %v569_v32  ;;  %v2777_v32 = vld [vmem:[%s3328_s4 + $0x20] sm:$0xff]  }
 0x3a6   :  { %2442 = vmatprep.subr.bf16.mxu1 %v2799_v0 }
 0x3a9   :  { %2443 = vmatpush3.bf16.msra.mxu1 %v572_v34  ;;  %v2778_v34 = vld [vmem:[%s3328_s4 + $0x28] sm:$0xff]  }
 0x3ac   :  { %2445 = vmatmul.mubr.msk.bf16.vlgmr.msra.gmra.mrb[16].mxu1 %vm177_vm3, %v2944_v13 }
 0x3ad   :  { %2448 = vmatprep.mubr.msk.bf16.mxu1 %vm2800_vm0, %v2799_v0 }
 0x3b4   :  { %2449 = vmatmul.mubr.msk.bf16.gmra.mrb[20].mxu1 %vm177_vm3, %v2953_v14 }
 0x3b5   :  { %2452 = vmatprep.mubr.msk.bf16.mxu1 %vm2800_vm0, %v2799_v0 }
 0x3bc   :  { %2453 = vmatmul.mubr.msk.bf16.gmra.mrb[24].mxu1 %vm177_vm3, %v2914_v10 }
 0x3bd   :  { %2520 = vmatprep.mubr.msk.bf16.mxu1 %vm263_vm4, %v2960_v15 }
 0x47f   :  { %v608_v36 = vpop.f32.mrb[16].mxu1 }
 0x480   :  { %v2674_v37 = vadd.f32 %v2103_v35, %v608_v36  ;;  %v2446_v38 = vpop.f32.mrb[17].mxu1 }
 0x481   :  { %v611_v39 = vpop.f32.mrb[18].mxu1 }
 0x482   :  { %v2675_v40 = vadd.f32 %v2103_v35, %v611_v39  ;;  %v2447_v41 = vpop.f32.mrb[19].mxu1  ;;  %v630_v42 = vmax.f32 %v2674_v37, 0.0 }
 0x484   :  { %v631_v43 = vmax.f32 %v2675_v40, 0.0 }
 0x486   :  { %v635_v44 = vpack.c.bf16 %v631_v43, %v630_v42 }
 0x487   :  { %v616_v45 = vpop.f32.mrb[20].mxu1 }
 0x488   :  { %v2676_v46 = vadd.f32 %v2103_v35, %v616_v45  ;;  %v2450_v47 = vpop.f32.mrb[21].mxu1  ;;  %2456 = vmatprep.subr.bf16.mxu0 %v635_v44 }
 0x489   :  { %v619_v49 = vpop.f32.mrb[22].mxu1  ;;  %2457 = vmatpush3.bf16.msra.mxu0 %v635_v44 }
 0x48a   :  { %v2677_v50 = vadd.f32 %v2103_v35, %v619_v49  ;;  %v2451_v51 = vpop.f32.mrb[23].mxu1  ;;  %v632_v52 = vmax.f32 %v2676_v46, 0.0 }
 0x48c   :  { %v633_v53 = vmax.f32 %v2677_v50, 0.0  ;;  %v2139_v50 = vld [vmem:[%s3333_s5 + $0x2] ss:$0 sm:$0xff] }
 0x48e   :  { %v636_v54 = vpack.c.bf16 %v633_v53, %v632_v52 }
 0x48f   :  { %v624_v55 = vpop.f32.mrb[24].mxu1 }
 0x490   :  { %v2678_v56 = vadd.f32 %v2103_v35, %v624_v55  ;;  %v2454_v57 = vpop.f32.mrb[25].mxu1  ;;  %2458 = vmatprep.subr.bf16.mxu0 %v636_v54  ;;  %v2129_v35 = vld [vmem:[%s3337_s9 + $0x1] ss:$0 sm:$0xff] }
 0x491   :  { %v627_v58 = vpop.f32.mrb[26].mxu1  ;;  %2459 = vmatpush3.bf16.msra.mxu0 %v636_v54 }
 0x492   :  { %v634_v59 = vmax.f32 %v2678_v56, 0.0  ;;  %v2455_v60 = vpop.f32.mrb[27].mxu1 }
 0x494   :  { %v637_v61 = vpack.c.bf16 %v634_v59, %v634_v59 }
 0x496   :  { %2751 = vmatprep.subr.msk.bf16.mxu0 %vm187_vm1, %v637_v61  ;;  %v639_v62 = vsel %vm187_vm1, %v637_v61, 0 }
 0x497   :  { %2461 = vmatpush3.bf16.msra.mxu0 %v639_v62 }
 0x498   :  { %2466 = vmatprep.subr.bf16.mxu0 %v2773_v63 }
 0x49a   :  { %2463 = vmatmul.mubr.msk.bf16.vlgmr.msra.gmra.mrb[12].mxu0 %vm263_vm4, %v2974_v48 }
 0x49b   :  { %2467 = vmatpush3.bf16.msra.mxu0 %v2773_v63 }
 0x49c   :  { %2468 = vmatprep.subr.bf16.mxu0 %v2774_v1 }
 0x49f   :  { %2469 = vmatpush3.bf16.msra.mxu0 %v2774_v1 }
 0x4a0   :  { %2474 = vmatprep.subr.bf16.mxu0 %v2775_v18 }
 0x56d   :  { %v2464_v2 = vpop.f32.mrb[12].mxu0 }
 0x56e   :  { %v675_v3 = vpop.f32.mrb[13].mxu0  ;;  %v691_v5 = vadd.f32 %v2464_v2, %v487_v29 }
 0x56f   :  { %v2465_v4 = vpop.f32.mrb[14].mxu0  ;;  %v689_v8 = vadd.f32 %v675_v3, %v485_v30 }
 0x570   :  { %v678_v7 = vpop.f32.mrb[15].mxu0  ;;  %v693_v17 = vpack.c.bf16 %v691_v5, %v691_v5 }
 0x571   :  { %v690_v9 = vadd.f32 %v678_v7, %v486_v31 }
 0x573   :  { %v692_v16 = vpack.c.bf16 %v690_v9, %v689_v8 }
 0x575   :  { %2470 = vmatprep.mubr.msk.bf16.mxu0 %vm96_vm2, %v692_v16 }
 0x576   :  { %2471 = vmatmul.mubr.msk.bf16.vlgmr.msra.gmra.mrb[16].mxu0 %vm96_vm2, %v693_v17 }
 0x577   :  { %2475 = vmatpush3.bf16.msra.mxu0 %v2775_v18 }
 0x578   :  { %2476 = vmatprep.subr.bf16.mxu0 %v2776_v19 }
 0x57b   :  { %2477 = vmatpush3.bf16.msra.mxu0 %v2776_v19 }
 0x57c   :  { %2482 = vmatprep.subr.bf16.mxu0 %v2799_v0 }
 0x649   :  { %v2472_v21 = vpop.f32.mrb[16].mxu0 }
 0x64a   :  { %v768_v22 = vadd.f32 %v2472_v21, %v2119_v20  ;;  %v759_v23 = vpop.f32.mrb[17].mxu0  ;;  %v2779_v21 = vld [vmem:[%s3334_s6 + $0x20] sm:$0xff]  }
 0x64b   :  { %v760_v24 = vadd.f32 %v2119_v20, %v759_v23  ;;  %v2473_v25 = vpop.f32.mrb[18].mxu0 }
 0x64c   :  { %v762_v26 = vpop.f32.mrb[19].mxu0  ;;  %v775_v28 = vmax.f32 %v768_v22, 0.0  ;;  %v2780_v22 = vld [vmem:[%s3334_s6 + $0x28] sm:$0xff]  }
 0x64d   :  { %v763_v27 = vadd.f32 %v2119_v20, %v762_v26  ;;  %v773_v29 = vmax.f32 %v760_v24, 0.0 }
 0x64e   :  { %v777_v33 = vpack.c.bf16 %v775_v28, %v775_v28 }
 0x64f   :  { %v774_v30 = vmax.f32 %v763_v27, 0.0 }
 0x651   :  { %v776_v31 = vpack.c.bf16 %v774_v30, %v773_v29 }
 0x653   :  { %2478 = vmatprep.mubr.msk.bf16.mxu0 %vm96_vm2, %v776_v31 }
 0x654   :  { %2479 = vmatmul.mubr.msk.bf16.vlgmr.msra.gmra.mrb[20].mxu0 %vm96_vm2, %v777_v33  ;;  %v2782_v33 = vld [vmem:[%s3335_s8 + $0x28] sm:$0xff]  }
 0x655   :  { %2483 = vmatpush3.bf16.msra.mxu0 %v2777_v32  ;;  %2486 = vmatprep.mubr.msk.bf16.mxu0 %vm2800_vm0, %v2799_v0  ;;  %v2781_v32 = vld [vmem:[%s3335_s8 + $0x20] sm:$0xff]  }
 0x656   :  { %2484 = vmatprep.subr.bf16.mxu0 %v2799_v0 }
 0x659   :  { %2485 = vmatpush3.bf16.msra.mxu0 %v2778_v34  ;;  %v2155_v34 = vld [vmem:[%s3336_s7 + $0x2] ss:$0 sm:$0xff] }
 0x65a   :  { %2498 = vmatprep.subr.bf16.mxu0 %v2799_v0 }
 0x65c   :  { %2487 = vmatmul.mubr.msk.bf16.vlgmr.msra.gmra.mrb[24].mxu0 %vm96_vm2, %v2902_v6 }
 0x65d   :  { %2490 = vmatprep.mubr.msk.bf16.mxu0 %vm2800_vm0, %v2799_v0 }
 0x664   :  { %2491 = vmatmul.mubr.msk.bf16.gmra.mrb[28].mxu0 %vm96_vm2, %v2923_v11 }
 0x665   :  { %2494 = vmatprep.mubr.msk.bf16.mxu0 %vm2800_vm0, %v2799_v0 }
 0x66c   :  { %2495 = vmatmul.mubr.msk.bf16.gmra.mrb[32].mxu0 %vm96_vm2, %v2935_v12 }
 0x66d   :  { %2502 = vmatprep.mubr.msk.bf16.mxu0 %vm2800_vm0, %v2799_v0 }
 0x727   :  { %v2480_v36 = vpop.f32.mrb[20].mxu0 }
 0x728   :  { %v852_v37 = vadd.f32 %v2480_v36, %v2129_v35  ;;  %v843_v38 = vpop.f32.mrb[21].mxu0 }
 0x729   :  { %v3098_v39 = vadd.f32 %v2129_v35, %v843_v38  ;;  %v2481_v40 = vpop.f32.mrb[22].mxu0 }
 0x72a   :  { %v846_v41 = vpop.f32.mrb[23].mxu0  ;;  %v859_v43 = vmax.f32 %v852_v37, 0.0 }
 0x72b   :  { %v3100_v42 = vadd.f32 %v2129_v35, %v846_v41  ;;  %v857_v44 = vmax.f32 %v3098_v39, 0.0 }
 0x72c   :  { %v942_v47 = vpack.c.bf16 %v859_v43, %v859_v43 }
 0x72d   :  { %v858_v45 = vmax.f32 %v3100_v42, 0.0 }
 0x72e   :  { %v944_v49 = vsel %vm187_vm1, %v942_v47, 0 }
 0x72f   :  { %v941_v46 = vpack.c.bf16 %v858_v45, %v857_v44 }
 0x731   :  { %2499 = vmatpush3.bf16.msra.mxu0 %v941_v46  ;;  %v2783_v46 = vld [vmem:[%s3328_s4 + $0x30] sm:$0xff]  }
 0x732   :  { %2500 = vmatprep.subr.bf16.mxu0 %v2799_v0 }
 0x735   :  { %2501 = vmatpush3.bf16.msra.mxu0 %v944_v49  ;;  %v2784_v49 = vld [vmem:[%s3328_s4 + $0x38] sm:$0xff]  }
 0x738   :  { %2503 = vmatmul.mubr.msk.bf16.vlgmr.msra.gmra.mrb[24].mxu0 %vm177_vm3, %v2944_v13 }
 0x739   :  { %2506 = vmatprep.mubr.msk.bf16.mxu0 %vm2800_vm0, %v2799_v0 }
 0x740   :  { %2507 = vmatmul.mubr.msk.bf16.gmra.mrb[28].mxu0 %vm177_vm3, %v2953_v14 }
 0x741   :  { %2510 = vmatprep.mubr.msk.bf16.mxu0 %vm2800_vm0, %v2799_v0 }
 0x748   :  { %2511 = vmatmul.mubr.msk.bf16.gmra.mrb[32].mxu0 %vm177_vm3, %v2914_v10 }
 0x749   :  { %2578 = vmatprep.mubr.msk.bf16.mxu0 %vm263_vm4, %v2960_v15 }
 0x80b   :  { %v980_v51 = vpop.f32.mrb[24].mxu0 }
 0x80c   :  { %v2679_v52 = vadd.f32 %v2139_v50, %v980_v51  ;;  %v2504_v53 = vpop.f32.mrb[25].mxu0 }
 0x80d   :  { %v983_v54 = vpop.f32.mrb[26].mxu0 }
 0x80e   :  { %v2680_v55 = vadd.f32 %v2139_v50, %v983_v54  ;;  %v2505_v56 = vpop.f32.mrb[27].mxu0  ;;  %v1002_v57 = vmax.f32 %v2679_v52, 0.0 }
 0x810   :  { %v1003_v58 = vmax.f32 %v2680_v55, 0.0 }
 0x812   :  { %v1007_v59 = vpack.c.bf16 %v1003_v58, %v1002_v57 }
 0x813   :  { %v988_v60 = vpop.f32.mrb[28].mxu0 }
 0x814   :  { %v2681_v61 = vadd.f32 %v2139_v50, %v988_v60  ;;  %v2508_v62 = vpop.f32.mrb[29].mxu0  ;;  %2514 = vmatprep.subr.bf16.mxu1 %v1007_v59 }
 0x815   :  { %v991_v63 = vpop.f32.mrb[30].mxu0  ;;  %2515 = vmatpush3.bf16.msra.mxu1 %v1007_v59 }
 0x816   :  { %v2682_v1 = vadd.f32 %v2139_v50, %v991_v63  ;;  %v2509_v2 = vpop.f32.mrb[31].mxu0  ;;  %v1004_v3 = vmax.f32 %v2681_v61, 0.0  ;;  %v2175_v63 = vld [vmem:[%s3333_s5 + $0x3] ss:$0 sm:$0xff] }
 0x818   :  { %v1005_v4 = vmax.f32 %v2682_v1, 0.0 }
 0x81a   :  { %v1008_v5 = vpack.c.bf16 %v1005_v4, %v1004_v3 }
 0x81b   :  { %v996_v7 = vpop.f32.mrb[32].mxu0 }
 0x81c   :  { %v2683_v8 = vadd.f32 %v2139_v50, %v996_v7  ;;  %v2512_v9 = vpop.f32.mrb[33].mxu0  ;;  %2516 = vmatprep.subr.bf16.mxu1 %v1008_v5  ;;  %v2165_v50 = vld [vmem:[%s3337_s9 + $0x2] ss:$0 sm:$0xff] }
 0x81d   :  { %v999_v16 = vpop.f32.mrb[34].mxu0  ;;  %2517 = vmatpush3.bf16.msra.mxu1 %v1008_v5 }
 0x81e   :  { %v1006_v17 = vmax.f32 %v2683_v8, 0.0  ;;  %v2513_v18 = vpop.f32.mrb[35].mxu0 }
 0x820   :  { %v1009_v19 = vpack.c.bf16 %v1006_v17, %v1006_v17 }
 0x822   :  { %2752 = vmatprep.subr.msk.bf16.mxu1 %vm187_vm1, %v1009_v19  ;;  %v1011_v20 = vsel %vm187_vm1, %v1009_v19, 0 }
 0x823   :  { %2519 = vmatpush3.bf16.msra.mxu1 %v1011_v20 }
 0x824   :  { %2524 = vmatprep.subr.bf16.mxu1 %v2779_v21 }
 0x826   :  { %2521 = vmatmul.mubr.msk.bf16.vlgmr.msra.gmra.mrb[28].mxu1 %vm263_vm4, %v2974_v48 }
 0x827   :  { %2525 = vmatpush3.bf16.msra.mxu1 %v2779_v21 }
 0x828   :  { %2526 = vmatprep.subr.bf16.mxu1 %v2780_v22 }
 0x82b   :  { %2527 = vmatpush3.bf16.msra.mxu1 %v2780_v22 }
 0x82c   :  { %2532 = vmatprep.subr.bf16.mxu1 %v2781_v32 }
 0x8f9   :  { %v2522_v23 = vpop.f32.mrb[28].mxu1 }
 0x8fa   :  { %v1047_v24 = vpop.f32.mrb[29].mxu1  ;;  %v1063_v26 = vadd.f32 %v2522_v23, %v859_v43 }
 0x8fb   :  { %v2523_v25 = vpop.f32.mrb[30].mxu1  ;;  %v1061_v28 = vadd.f32 %v1047_v24, %v857_v44 }
 0x8fc   :  { %v1050_v27 = vpop.f32.mrb[31].mxu1  ;;  %v1065_v31 = vpack.c.bf16 %v1063_v26, %v1063_v26 }
 0x8fd   :  { %v1062_v29 = vadd.f32 %v1050_v27, %v858_v45 }
 0x8ff   :  { %v1064_v30 = vpack.c.bf16 %v1062_v29, %v1061_v28 }
 0x901   :  { %2528 = vmatprep.mubr.msk.bf16.mxu1 %vm96_vm2, %v1064_v30 }
 0x902   :  { %2529 = vmatmul.mubr.msk.bf16.vlgmr.msra.gmra.mrb[32].mxu1 %vm96_vm2, %v1065_v31 }
 0x903   :  { %2533 = vmatpush3.bf16.msra.mxu1 %v2781_v32  ;;  %v2785_v32 = vld [vmem:[%s3334_s6 + $0x30] sm:$0xff]  }
 0x904   :  { %2534 = vmatprep.subr.bf16.mxu1 %v2782_v33 }
 0x907   :  { %2535 = vmatpush3.bf16.msra.mxu1 %v2782_v33  ;;  %v2786_v33 = vld [vmem:[%s3334_s6 + $0x38] sm:$0xff]  }
 0x908   :  { %2540 = vmatprep.subr.bf16.mxu1 %v2799_v0 }
 0x9d5   :  { %v2530_v35 = vpop.f32.mrb[32].mxu1 }
 0x9d6   :  { %v1140_v36 = vadd.f32 %v2530_v35, %v2155_v34  ;;  %v1131_v37 = vpop.f32.mrb[33].mxu1 }
 0x9d7   :  { %v1132_v38 = vadd.f32 %v2155_v34, %v1131_v37  ;;  %v2531_v39 = vpop.f32.mrb[34].mxu1 }
 0x9d8   :  { %v1134_v40 = vpop.f32.mrb[35].mxu1  ;;  %v1147_v42 = vmax.f32 %v1140_v36, 0.0 }
 0x9d9   :  { %v1135_v41 = vadd.f32 %v2155_v34, %v1134_v40  ;;  %v1145_v43 = vmax.f32 %v1132_v38, 0.0 }
 0x9da   :  { %v1149_v47 = vpack.c.bf16 %v1147_v42, %v1147_v42 }
 0x9db   :  { %v1146_v44 = vmax.f32 %v1135_v41, 0.0 }
 0x9dd   :  { %v1148_v45 = vpack.c.bf16 %v1146_v44, %v1145_v43  ;;  %v2787_v43 = vld [vmem:[%s3335_s8 + $0x30] sm:$0xff]   ;;  %v2788_v44 = vld [vmem:[%s3335_s8 + $0x38] sm:$0xff]  }
 0x9df   :  { %2536 = vmatprep.mubr.msk.bf16.mxu1 %vm96_vm2, %v1148_v45  ;;  %v2191_v45 = vld [vmem:[%s3336_s7 + $0x3] ss:$0 sm:$0xff] }
 0x9e0   :  { %2537 = vmatmul.mubr.msk.bf16.vlgmr.msra.gmra.mrb[36].mxu1 %vm96_vm2, %v1149_v47 }
 0x9e1   :  { %2541 = vmatpush3.bf16.msra.mxu1 %v2783_v46  ;;  %2544 = vmatprep.mubr.msk.bf16.mxu1 %vm2800_vm0, %v2799_v0 }
 0x9e2   :  { %2542 = vmatprep.subr.bf16.mxu1 %v2799_v0 }
 0x9e5   :  { %2543 = vmatpush3.bf16.msra.mxu1 %v2784_v49 }
 0x9e6   :  { %2556 = vmatprep.subr.bf16.mxu1 %v2799_v0 }
 0x9e8   :  { %2545 = vmatmul.mubr.msk.bf16.vlgmr.msra.gmra.mrb[40].mxu1 %vm96_vm2, %v2902_v6 }
 0x9e9   :  { %2548 = vmatprep.mubr.msk.bf16.mxu1 %vm2800_vm0, %v2799_v0 }
 0x9f0   :  { %2549 = vmatmul.mubr.msk.bf16.gmra.mrb[44].mxu1 %vm96_vm2, %v2923_v11 }
 0x9f1   :  { %2552 = vmatprep.mubr.msk.bf16.mxu1 %vm2800_vm0, %v2799_v0 }
 0x9f8   :  { %2553 = vmatmul.mubr.msk.bf16.gmra.mrb[48].mxu1 %vm96_vm2, %v2935_v12 }
 0x9f9   :  { %2560 = vmatprep.mubr.msk.bf16.mxu1 %vm2800_vm0, %v2799_v0 }
 0xab3   :  { %v2538_v6 = vpop.f32.mrb[36].mxu1 }
 0xab4   :  { %v1224_v51 = vadd.f32 %v2538_v6, %v2165_v50  ;;  %v1215_v52 = vpop.f32.mrb[37].mxu1 }
 0xab5   :  { %v3170_v53 = vadd.f32 %v2165_v50, %v1215_v52  ;;  %v2539_v54 = vpop.f32.mrb[38].mxu1 }
 0xab6   :  { %v1218_v55 = vpop.f32.mrb[39].mxu1  ;;  %v1231_v57 = vmax.f32 %v1224_v51, 0.0 }
 0xab7   :  { %v3172_v56 = vadd.f32 %v2165_v50, %v1218_v55  ;;  %v1229_v58 = vmax.f32 %v3170_v53, 0.0 }
 0xab8   :  { %v1314_v61 = vpack.c.bf16 %v1231_v57, %v1231_v57 }
 0xab9   :  { %v1230_v59 = vmax.f32 %v3172_v56, 0.0 }
 0xaba   :  { %v1316_v62 = vsel %vm187_vm1, %v1314_v61, 0  ;;  %v2201_v61 = vld [vmem:[%s3337_s9 + $0x3] ss:$0 sm:$0xff] }
 0xabb   :  { %v1313_v60 = vpack.c.bf16 %v1230_v59, %v1229_v58 }
 0xabd   :  { %2557 = vmatpush3.bf16.msra.mxu1 %v1313_v60  ;;  %v2797_v60 = vld [vmem:[%s3329_s1] sm:$0xff]  }
 0xabe   :  { %2558 = vmatprep.subr.bf16.mxu1 %v2799_v0 }
 0xac1   :  { %2559 = vmatpush3.bf16.msra.mxu1 %v1316_v62 }
 0xac4   :  { %2561 = vmatmul.mubr.msk.bf16.vlgmr.msra.gmra.mrb[40].mxu1 %vm177_vm3, %v2944_v13 }
 0xac5   :  { %2564 = vmatprep.mubr.msk.bf16.mxu1 %vm2800_vm0, %v2799_v0 }
 0xacc   :  { %2565 = vmatmul.mubr.msk.bf16.gmra.mrb[44].mxu1 %vm177_vm3, %v2953_v14 }
 0xacd   :  { %2568 = vmatprep.mubr.msk.bf16.mxu1 %vm2800_vm0, %v2799_v0 }
 0xad4   :  { %2569 = vmatmul.mubr.msk.bf16.gmra.mrb[48].mxu1 %vm177_vm3, %v2914_v10 }
 0xad5   :  { %2636 = vmatprep.mubr.msk.bf16.mxu1 %vm263_vm4, %v2960_v15 }
 0xb97   :  { %v1352_v1 = vpop.f32.mrb[40].mxu1 }
 0xb98   :  { %v2684_v2 = vadd.f32 %v2175_v63, %v1352_v1  ;;  %v2562_v3 = vpop.f32.mrb[41].mxu1 }
 0xb99   :  { %v1355_v4 = vpop.f32.mrb[42].mxu1 }
 0xb9a   :  { %v2685_v5 = vadd.f32 %v2175_v63, %v1355_v4  ;;  %v2563_v7 = vpop.f32.mrb[43].mxu1  ;;  %v1374_v8 = vmax.f32 %v2684_v2, 0.0 }
 0xb9c   :  { %v1375_v9 = vmax.f32 %v2685_v5, 0.0 }
 0xb9e   :  { %v1379_v16 = vpack.c.bf16 %v1375_v9, %v1374_v8 }
 0xb9f   :  { %v1360_v17 = vpop.f32.mrb[44].mxu1 }
 0xba0   :  { %v2686_v18 = vadd.f32 %v2175_v63, %v1360_v17  ;;  %v2566_v19 = vpop.f32.mrb[45].mxu1  ;;  %2572 = vmatprep.subr.bf16.mxu0 %v1379_v16  ;;  %v2798_v17 = vld [vmem:[%s3331_s2 + $0x10] ss:$0 sps:$4 sm:$0xff]  }
 0xba1   :  { %v1363_v10 = vpop.f32.mrb[46].mxu1  ;;  %2573 = vmatpush3.bf16.msra.mxu0 %v1379_v16 }
 0xba2   :  { %v2687_v15 = vadd.f32 %v2175_v63, %v1363_v10  ;;  %v2567_v20 = vpop.f32.mrb[47].mxu1  ;;  %v1376_v21 = vmax.f32 %v2686_v18, 0.0  ;;  %v2211_v18 = vld [vmem:[%s3333_s5 + $0x4] ss:$0 sm:$0xff] }
 0xba4   :  { %v1377_v22 = vmax.f32 %v2687_v15, 0.0 }
 0xba6   :  { %v1380_v23 = vpack.c.bf16 %v1377_v22, %v1376_v21 }
 0xba7   :  { %v1368_v24 = vpop.f32.mrb[48].mxu1 }
 0xba8   :  { %v2688_v25 = vadd.f32 %v2175_v63, %v1368_v24  ;;  %v2570_v26 = vpop.f32.mrb[49].mxu1  ;;  %2574 = vmatprep.subr.bf16.mxu0 %v1380_v23 }
 0xba9   :  { %v1371_v27 = vpop.f32.mrb[50].mxu1  ;;  %2575 = vmatpush3.bf16.msra.mxu0 %v1380_v23 }
 0xbaa   :  { %v1378_v28 = vmax.f32 %v2688_v25, 0.0  ;;  %v2571_v29 = vpop.f32.mrb[51].mxu1 }
 0xbac   :  { %v1381_v30 = vpack.c.bf16 %v1378_v28, %v1378_v28 }
 0xbae   :  { %2753 = vmatprep.subr.msk.bf16.mxu0 %vm187_vm1, %v1381_v30  ;;  %v1383_v31 = vsel %vm187_vm1, %v1381_v30, 0 }
 0xbaf   :  { %2577 = vmatpush3.bf16.msra.mxu0 %v1383_v31 }
 0xbb0   :  { %2582 = vmatprep.subr.bf16.mxu0 %v2785_v32 }
 0xbb2   :  { %2579 = vmatmul.mubr.msk.bf16.vlgmr.msra.gmra.mrb[36].mxu0 %vm263_vm4, %v2974_v48 }
 0xbb3   :  { %2583 = vmatpush3.bf16.msra.mxu0 %v2785_v32 }
 0xbb4   :  { %2584 = vmatprep.subr.bf16.mxu0 %v2786_v33 }
 0xbb7   :  { %2585 = vmatpush3.bf16.msra.mxu0 %v2786_v33 }
 0xbb8   :  { %2590 = vmatprep.subr.bf16.mxu0 %v2787_v43 }
 0xc85   :  { %v2580_v34 = vpop.f32.mrb[36].mxu0 }
 0xc86   :  { %v1419_v35 = vpop.f32.mrb[37].mxu0  ;;  %v1435_v37 = vadd.f32 %v2580_v34, %v1231_v57  ;;  %v2789_v57 = vld [vmem:[%s3328_s4 + $0x40] sm:$0xff]  }
 0xc87   :  { %v2581_v36 = vpop.f32.mrb[38].mxu0  ;;  %v1433_v39 = vadd.f32 %v1419_v35, %v1229_v58 }
 0xc88   :  { %v1422_v38 = vpop.f32.mrb[39].mxu0  ;;  %v1437_v42 = vpack.c.bf16 %v1435_v37, %v1435_v37 }
 0xc89   :  { %v1434_v40 = vadd.f32 %v1422_v38, %v1230_v59  ;;  %v2790_v59 = vld [vmem:[%s3328_s4 + $0x48] sm:$0xff]  }
 0xc8b   :  { %v1436_v41 = vpack.c.bf16 %v1434_v40, %v1433_v39  ;;  %v2791_v40 = vld [vmem:[%s3334_s6 + $0x40] sm:$0xff]  }
 0xc8d   :  { %2586 = vmatprep.mubr.msk.bf16.mxu0 %vm96_vm2, %v1436_v41  ;;  %v2792_v41 = vld [vmem:[%s3334_s6 + $0x48] sm:$0xff]  }
 0xc8e   :  { %2587 = vmatmul.mubr.msk.bf16.vlgmr.msra.gmra.mrb[40].mxu0 %vm96_vm2, %v1437_v42 }
 0xc8f   :  { %2591 = vmatpush3.bf16.msra.mxu0 %v2787_v43 }
 0xc90   :  { %2592 = vmatprep.subr.bf16.mxu0 %v2788_v44 }
 0xc93   :  { %2593 = vmatpush3.bf16.msra.mxu0 %v2788_v44 }
 0xc94   :  { %2598 = vmatprep.subr.bf16.mxu0 %v2799_v0 }
 0xd61   :  { %v2588_v46 = vpop.f32.mrb[40].mxu0 }
 0xd62   :  { %v1512_v47 = vadd.f32 %v2588_v46, %v2191_v45  ;;  %v1503_v49 = vpop.f32.mrb[41].mxu0 }
 0xd63   :  { %v1504_v50 = vadd.f32 %v2191_v45, %v1503_v49  ;;  %v2589_v6 = vpop.f32.mrb[42].mxu0 }
 0xd64   :  { %v1506_v51 = vpop.f32.mrb[43].mxu0  ;;  %v1519_v53 = vmax.f32 %v1512_v47, 0.0  ;;  %v2793_v6 = vld [vmem:[%s3335_s8 + $0x40] sm:$0xff]  }
 0xd65   :  { %v1507_v52 = vadd.f32 %v2191_v45, %v1506_v51  ;;  %v1517_v54 = vmax.f32 %v1504_v50, 0.0  ;;  %v2794_v51 = vld [vmem:[%s3335_s8 + $0x48] sm:$0xff]  }
 0xd66   :  { %v1521_v58 = vpack.c.bf16 %v1519_v53, %v1519_v53 }
 0xd67   :  { %v1518_v55 = vmax.f32 %v1507_v52, 0.0  ;;  %v2227_v52 = vld [vmem:[%s3336_s7 + $0x4] ss:$0 sm:$0xff] }
 0xd69   :  { %v1520_v56 = vpack.c.bf16 %v1518_v55, %v1517_v54 }
 0xd6b   :  { %2594 = vmatprep.mubr.msk.bf16.mxu0 %vm96_vm2, %v1520_v56 }
 0xd6c   :  { %2595 = vmatmul.mubr.msk.bf16.vlgmr.msra.gmra.mrb[44].mxu0 %vm96_vm2, %v1521_v58 }
 0xd6d   :  { %2599 = vmatpush3.bf16.msra.mxu0 %v2789_v57  ;;  %2602 = vmatprep.mubr.msk.bf16.mxu0 %vm2800_vm0, %v2799_v0 }
 0xd6e   :  { %2600 = vmatprep.subr.bf16.mxu0 %v2799_v0 }
 0xd71   :  { %2601 = vmatpush3.bf16.msra.mxu0 %v2790_v59 }
 0xd72   :  { %2614 = vmatprep.subr.bf16.mxu0 %v2799_v0 }
 0xd74   :  { %2603 = vmatmul.mubr.msk.bf16.vlgmr.msra.gmra.mrb[48].mxu0 %vm96_vm2, %v2797_v60 }
 0xd75   :  { %2606 = vmatprep.mubr.msk.bf16.mxu0 %vm2800_vm0, %v2799_v0 }
 0xd7c   :  { %2607 = vmatmul.mubr.msk.bf16.gmra.mrb[52].mxu0 %vm96_vm2, %v2923_v11 }
 0xd7d   :  { %2610 = vmatprep.mubr.msk.bf16.mxu0 %vm2800_vm0, %v2799_v0 }
 0xd84   :  { %2611 = vmatmul.mubr.msk.bf16.gmra.mrb[56].mxu0 %vm96_vm2, %v2935_v12 }
 0xd85   :  { %2618 = vmatprep.mubr.msk.bf16.mxu0 %vm2800_vm0, %v2799_v0 }
 0xe3f   :  { %v2596_v62 = vpop.f32.mrb[44].mxu0 }
 0xe40   :  { %v1596_v63 = vadd.f32 %v2596_v62, %v2201_v61  ;;  %v1587_v1 = vpop.f32.mrb[45].mxu0 }
 0xe41   :  { %v3244_v2 = vadd.f32 %v2201_v61, %v1587_v1  ;;  %v2597_v3 = vpop.f32.mrb[46].mxu0 }
 0xe42   :  { %v1590_v11 = vpop.f32.mrb[47].mxu0  ;;  %v1603_v5 = vmax.f32 %v1596_v63, 0.0  ;;  %v2796_v3 = vld [vmem:[%s3338_s10 + $0x8] sm:$0xff]  }
 0xe43   :  { %v3246_v4 = vadd.f32 %v2201_v61, %v1590_v11  ;;  %v1601_v7 = vmax.f32 %v3244_v2, 0.0  ;;  %v2795_v2 = vld [vmem:[%s3338_s10] sm:$0xff]  }
 0xe44   :  { %v1686_v9 = vpack.c.bf16 %v1603_v5, %v1603_v5  ;;  %v2237_v11 = vld [vmem:[%s3337_s9 + $0x4] ss:$0 sm:$0xff] }
 0xe45   :  { %v1602_v12 = vmax.f32 %v3246_v4, 0.0 }
 0xe46   :  { %v1688_v16 = vsel %vm187_vm1, %v1686_v9, 0 }
 0xe47   :  { %v1685_v8 = vpack.c.bf16 %v1602_v12, %v1601_v7 }
 0xe49   :  { %2615 = vmatpush3.bf16.msra.mxu0 %v1685_v8 }
 0xe4a   :  { %2616 = vmatprep.subr.bf16.mxu0 %v2799_v0 }
 0xe4d   :  { %2617 = vmatpush3.bf16.msra.mxu0 %v1688_v16 }
 0xe50   :  { %2619 = vmatmul.mubr.msk.bf16.vlgmr.msra.gmra.mrb[48].mxu0 %vm177_vm3, %v2944_v13 }
 0xe51   :  { %2622 = vmatprep.mubr.msk.bf16.mxu0 %vm2800_vm0, %v2799_v0 }
 0xe58   :  { %2623 = vmatmul.mubr.msk.bf16.gmra.mrb[52].mxu0 %vm177_vm3, %v2953_v14 }
 0xe59   :  { %2626 = vmatprep.mubr.msk.bf16.mxu0 %vm2800_vm0, %v2799_v0 }
 0xe60   :  { %2627 = vmatmul.mubr.msk.bf16.gmra.mrb[56].mxu0 %vm177_vm3, %v2798_v17 }
 0xf23   :  { %v1724_v13 = vpop.f32.mrb[48].mxu0 }
 0xf24   :  { %v2689_v19 = vadd.f32 %v2211_v18, %v1724_v13  ;;  %v2620_v10 = vpop.f32.mrb[49].mxu0 }
 0xf25   :  { %v1727_v15 = vpop.f32.mrb[50].mxu0 }
 0xf26   :  { %v2690_v20 = vadd.f32 %v2211_v18, %v1727_v15  ;;  %v2621_v21 = vpop.f32.mrb[51].mxu0  ;;  %v1746_v14 = vmax.f32 %v2689_v19, 0.0  ;;  %v2242_v15 = vld [vmem:[%s3340_s11] ss:$0 sm:$0xff] }
 0xf28   :  { %v1747_v22 = vmax.f32 %v2690_v20, 0.0 }
 0xf2a   :  { %v1751_v23 = vpack.c.bf16 %v1747_v22, %v1746_v14 }
 0xf2b   :  { %v1732_v0 = vpop.f32.mrb[52].mxu0 }
 0xf2c   :  { %v2691_v24 = vadd.f32 %v2211_v18, %v1732_v0  ;;  %v2624_v25 = vpop.f32.mrb[53].mxu0  ;;  %2630 = vmatprep.subr.bf16.mxu1 %v1751_v23 }
 0xf2d   :  { %v1735_v26 = vpop.f32.mrb[54].mxu0  ;;  %2631 = vmatpush3.bf16.msra.mxu1 %v1751_v23 }
 0xf2e   :  { %v2692_v27 = vadd.f32 %v2211_v18, %v1735_v26  ;;  %v2625_v28 = vpop.f32.mrb[55].mxu0  ;;  %v1748_v29 = vmax.f32 %v2691_v24, 0.0 }
 0xf30   :  { %v1749_v30 = vmax.f32 %v2692_v27, 0.0 }
 0xf32   :  { %v1752_v31 = vpack.c.bf16 %v1749_v30, %v1748_v29 }
 0xf33   :  { %v1740_v32 = vpop.f32.mrb[56].mxu0 }
 0xf34   :  { %v2693_v33 = vadd.f32 %v2211_v18, %v1740_v32  ;;  %v2628_v34 = vpop.f32.mrb[57].mxu0  ;;  %2632 = vmatprep.subr.bf16.mxu1 %v1752_v31 }
 0xf35   :  { %v1743_v35 = vpop.f32.mrb[58].mxu0  ;;  %2633 = vmatpush3.bf16.msra.mxu1 %v1752_v31 }
 0xf36   :  { %v1750_v36 = vmax.f32 %v2693_v33, 0.0  ;;  %v2629_v37 = vpop.f32.mrb[59].mxu0 }
 0xf38   :  { %v1753_v38 = vpack.c.bf16 %v1750_v36, %v1750_v36 }
 0xf3a   :  { %2754 = vmatprep.subr.msk.bf16.mxu1 %vm187_vm1, %v1753_v38  ;;  %v1755_v39 = vsel %vm187_vm1, %v1753_v38, 0 }
 0xf3b   :  { %2635 = vmatpush3.bf16.msra.mxu1 %v1755_v39 }
 0xf3c   :  { %2640 = vmatprep.subr.bf16.mxu1 %v2791_v40 }
 0xf3e   :  { %2637 = vmatmul.mubr.msk.bf16.vlgmr.msra.gmra.mrb[52].mxu1 %vm263_vm4, %v2974_v48 }
 0xf3f   :  { %2641 = vmatpush3.bf16.msra.mxu1 %v2791_v40 }
 0xf40   :  { %2642 = vmatprep.subr.bf16.mxu1 %v2792_v41 }
 0xf43   :  { %2643 = vmatpush3.bf16.msra.mxu1 %v2792_v41 }
 0xf44   :  { %2648 = vmatprep.subr.bf16.mxu1 %v2793_v6 }
0x1011   :  { %v2638_v42 = vpop.f32.mrb[52].mxu1 }
0x1012   :  { %v1791_v43 = vpop.f32.mrb[53].mxu1  ;;  %v1807_v45 = vadd.f32 %v2638_v42, %v1603_v5 }
0x1013   :  { %v2639_v44 = vpop.f32.mrb[54].mxu1  ;;  %v1805_v47 = vadd.f32 %v1791_v43, %v1601_v7 }
0x1014   :  { %v1794_v46 = vpop.f32.mrb[55].mxu1  ;;  %v1809_v50 = vpack.c.bf16 %v1807_v45, %v1807_v45 }
0x1015   :  { %v1806_v49 = vadd.f32 %v1794_v46, %v1602_v12 }
0x1017   :  { %v1808_v48 = vpack.c.bf16 %v1806_v49, %v1805_v47 }
0x1019   :  { %2644 = vmatprep.mubr.msk.bf16.mxu1 %vm96_vm2, %v1808_v48 }
0x101a   :  { %2645 = vmatmul.mubr.msk.bf16.vlgmr.msra.gmra.mrb[56].mxu1 %vm96_vm2, %v1809_v50 }
0x101b   :  { %2649 = vmatpush3.bf16.msra.mxu1 %v2793_v6 }
0x101c   :  { %2650 = vmatprep.subr.bf16.mxu1 %v2794_v51 }
0x101f   :  { %2651 = vmatpush3.bf16.msra.mxu1 %v2794_v51 }
0x1020   :  { %2656 = vmatprep.subr.bf16.mxu1 %v2795_v2 }
0x10ed   :  { %v2646_v53 = vpop.f32.mrb[56].mxu1 }
0x10ee   :  { %v1884_v54 = vadd.f32 %v2646_v53, %v2227_v52  ;;  %v1875_v55 = vpop.f32.mrb[57].mxu1 }
0x10ef   :  { %v1876_v56 = vadd.f32 %v2227_v52, %v1875_v55  ;;  %v2647_v57 = vpop.f32.mrb[58].mxu1 }
0x10f0   :  { %v1878_v58 = vpop.f32.mrb[59].mxu1  ;;  %v1891_v60 = vmax.f32 %v1884_v54, 0.0 }
0x10f1   :  { %v1879_v59 = vadd.f32 %v2227_v52, %v1878_v58  ;;  %v1889_v61 = vmax.f32 %v1876_v56, 0.0 }
0x10f2   :  { %v1893_v1 = vpack.c.bf16 %v1891_v60, %v1891_v60 }
0x10f3   :  { %v1890_v62 = vmax.f32 %v1879_v59, 0.0 }
0x10f5   :  { %v1892_v63 = vpack.c.bf16 %v1890_v62, %v1889_v61 }
0x10f7   :  { %2652 = vmatprep.mubr.msk.bf16.mxu1 %vm96_vm2, %v1892_v63 }
0x10f8   :  { %2653 = vmatmul.mubr.msk.bf16.vlgmr.msra.gmra.mrb[60].mxu1 %vm96_vm2, %v1893_v1 }
0x10f9   :  { %2657 = vmatpush3.bf16.msra.mxu1 %v2795_v2 }
0x10fa   :  { %2658 = vmatprep.subr.bf16.mxu1 %v2796_v3 }
0x10fd   :  { %2659 = vmatpush3.bf16.msra.mxu1 %v2796_v3 }
0x11cb   :  { %v2654_v4 = vpop.f32.mrb[60].mxu1 }
0x11cc   :  { %v1968_v5 = vadd.f32 %v2654_v4, %v2237_v11  ;;  %v1959_v7 = vpop.f32.mrb[61].mxu1 }
0x11cd   :  { %v1960_v12 = vadd.f32 %v2237_v11, %v1959_v7  ;;  %v2655_v8 = vpop.f32.mrb[62].mxu1 }
0x11ce   :  { %v1975_v9 = vmax.f32 %v1968_v5, 0.0  ;;  %v1962_v16 = vpop.f32.mrb[63].mxu1 }
0x11cf   :  { %v1973_v17 = vmax.f32 %v1960_v12, 0.0  ;;  %v1963_v18 = vadd.f32 %v2237_v11, %v1962_v16 }
0x11d0   :  { %1978 = vst.msk [vmem:[%s3339_s12 + $0x10] sm:$0xff] %vm96_vm2, %v1975_v9  ;;  %v1980_v10 = vpack.c.bf16 %v1975_v9, %v1975_v9 }
0x11d1   :  { %1976 = vst.msk [vmem:[%s3339_s12] sm:$0xff] %vm96_vm2, %v1973_v17  ;;  %v1974_v13 = vmax.f32 %v1963_v18, 0.0 }
0x11d3   :  { %1977 = vst.msk [vmem:[%s3339_s12 + $0x8] sm:$0xff] %vm96_vm2, %v1974_v13  ;;  %v1979_v19 = vpack.c.bf16 %v1974_v13, %v1973_v17 }
0x11d5   :  { %2660 = vmatprep.mubr.msk.bf16.mxu1 %vm96_vm2, %v1979_v19 }
0x11d6   :  { %2661 = vmatmul.mubr.msk.bf16.vlgmr.msra.gmra.mrb[64].mxu1 %vm96_vm2, %v1980_v10 }
0x12a9   :  { %v2662_v20 = vpop.f32.mrb[64].mxu1 }
0x12aa   :  { %v2053_v21 = vadd.f32 %v2662_v20, %v2242_v15  ;;  %v2044_v14 = vpop.f32.mrb[65].mxu1 }
0x12ab   :  { %v2045_v22 = vadd.f32 %v2242_v15, %v2044_v14  ;;  %v2663_v23 = vpop.f32.mrb[66].mxu1 }
0x12ac   :  { %2060 = vst.msk [vmem:[%s3341_s13 + $0x10] sm:$0xff] %vm96_vm2, %v2053_v21  ;;  %v2047_v0 = vpop.f32.mrb[67].mxu1 }
0x12ad   :  { %2058 = vst.msk [vmem:[%s3341_s13] sm:$0xff] %vm96_vm2, %v2045_v22  ;;  %v2048_v24 = vadd.f32 %v2242_v15, %v2047_v0 }
0x12af   :  { %2059 = vst.msk [vmem:[%s3341_s13 + $0x8] sm:$0xff] %vm96_vm2, %v2048_v24 }

// kernel: pfgnn_forward.10
= control target key start
LH: loop header
LB: loop body
LE: loop exit
PB: predicated region body
PF: predicated region fallthrough
CT: control target
= control target key end

     0   :  { %v206_v0 = vmov 0.0   ;;  %vm207_vm0 = vmmov 0   ;;  %vm47_vm1 = vcmask 261120   ;;  %s272_s1 = inlined_call_operand.vmem [shape: bf16[32,32], index: 1, kind: input, shape index: {}]   ;;  %s273_s0 = inlined_call_operand.vmem [shape: f32[16,32], index: 0, kind: input, shape index: {}]   ;;  %s274_s3 = inlined_call_operand.vmem [shape: bf16[32,32], index: 3, kind: input, shape index: {}]   ;;  %s275_s2 = inlined_call_operand.vmem [shape: f32[1,32], index: 2, kind: input, shape index: {}]   ;;  %s276_s4 = inlined_call_operand.vmem [shape: f32[1,32], index: 4, kind: input, shape index: {}]   ;;  %s277_s5 = inlined_call_operand.vmem [shape: f32[16,32], index: 5, kind: output, shape index: {}]  }
   0x1   :  { %184 = vmatprep.subr.bf16.mxu0 %v206_v0  ;;  %v202_v1 = vld [vmem:[%s272_s1] sm:$0xff]   ;;  %188 = vmatprep.mubr.msk.bf16.mxu0 %vm207_vm0, %v206_v0  ;;  %v203_v2 = vld [vmem:[%s272_s1 + $0x8] sm:$0xff]  }
   0x2   :  { %192 = vmatprep.subr.bf16.mxu1 %v206_v0  ;;  %196 = vmatprep.mubr.msk.bf16.mxu1 %vm207_vm0, %v206_v0  ;;  %v21_v3 = vld [vmem:[%s273_s0] sm:$0xff]  ;;  %v22_v4 = vld [vmem:[%s273_s0 + $0x8] sm:$0xff] }
   0x3   :  { %185 = vmatpush3.bf16.msra.mxu0 %v202_v1  ;;  %v23_v5 = vpack.c.bf16 %v22_v4, %v21_v3  ;;  %v204_v6 = vld [vmem:[%s274_s3] sm:$0xff]   ;;  %v205_v7 = vld [vmem:[%s274_s3 + $0x8] sm:$0xff]  }
   0x4   :  { %186 = vmatprep.subr.bf16.mxu0 %v206_v0  ;;  %193 = vmatpush3.bf16.msra.mxu1 %v204_v6  ;;  %v170_v8 = vld [vmem:[%s275_s2] ss:$0 sm:$0xff] }
   0x5   :  { %194 = vmatprep.subr.bf16.mxu1 %v206_v0  ;;  %v174_v18 = vld [vmem:[%s276_s4] ss:$0 sm:$0xff] }
   0x7   :  { %187 = vmatpush3.bf16.msra.mxu0 %v203_v2 }
   0x8   :  { %195 = vmatpush3.bf16.msra.mxu1 %v205_v7 }
   0xa   :  { %189 = vmatmul.mubr.msk.bf16.vlgmr.msra.gmra.mrb[0].mxu0 %vm47_vm1, %v23_v5 }
  0xdd   :  { %v85_v9 = vpop.f32.mrb[0].mxu0 }
  0xde   :  { %v86_v10 = vadd.f32 %v170_v8, %v85_v9  ;;  %v190_v11 = vpop.f32.mrb[1].mxu0 }
  0xdf   :  { %v88_v12 = vpop.f32.mrb[2].mxu0 }
  0xe0   :  { %v89_v13 = vadd.f32 %v170_v8, %v88_v12  ;;  %v191_v14 = vpop.f32.mrb[3].mxu0  ;;  %v92_v15 = vmax.f32 %v86_v10, 0.0 }
  0xe2   :  { %v93_v16 = vmax.f32 %v89_v13, 0.0 }
  0xe4   :  { %v94_v17 = vpack.c.bf16 %v93_v16, %v92_v15 }
  0xe6   :  { %197 = vmatmul.mubr.msk.bf16.vlgmr.msra.gmra.mrb[0].mxu1 %vm47_vm1, %v94_v17 }
 0x1b9   :  { %v155_v19 = vpop.f32.mrb[0].mxu1 }
 0x1ba   :  { %v156_v20 = vadd.f32 %v174_v18, %v155_v19  ;;  %v198_v21 = vpop.f32.mrb[1].mxu1 }
 0x1bb   :  { %v158_v22 = vpop.f32.mrb[2].mxu1 }
 0x1bc   :  { %v162_v23 = vmax.f32 %v156_v20, 0.0  ;;  %v159_v24 = vadd.f32 %v174_v18, %v158_v22  ;;  %v199_v25 = vpop.f32.mrb[3].mxu1 }
 0x1be   :  { %164 = vst.msk [vmem:[%s277_s5] sm:$0xff] %vm47_vm1, %v162_v23  ;;  %v163_v26 = vmax.f32 %v159_v24, 0.0 }
 0x1c0   :  { %165 = vst.msk [vmem:[%s277_s5 + $0x8] sm:$0xff] %vm47_vm1, %v163_v26 }

// kernel: pfgnn_forward.11
= control target key start
LH: loop header
LB: loop body
LE: loop exit
PB: predicated region body
PF: predicated region fallthrough
CT: control target
= control target key end

     0   :  { %s1334_s25 = smov 0   ;;  %s1458_s0 = inlined_call_operand.vmem [shape: f32[4,24,32], index: 0, kind: input, shape index: {}]   ;;  %s1459_s1 = inlined_call_operand.vmem [shape: bf16[1,40,32], index: 1, kind: input, shape index: {}]   ;;  %s1460_s2 = inlined_call_operand.vmem [shape: bf16[40,24], index: 2, kind: input, shape index: {}]   ;;  %s1461_s3 = inlined_call_operand.vmem [shape: bf16[24,40], index: 3, kind: input, shape index: {}]   ;;  %s1462_s4 = inlined_call_operand.vmem [shape: bf16[1,32,32], index: 4, kind: input, shape index: {}]   ;;  %s1463_s5 = inlined_call_operand.vmem [shape: f32[1,1,32], index: 5, kind: input, shape index: {}]   ;;  %s1464_s6 = inlined_call_operand.vmem [shape: bf16[1,32,32], index: 6, kind: input, shape index: {}]   ;;  %s1465_s7 = inlined_call_operand.vmem [shape: f32[1,1,32], index: 7, kind: input, shape index: {}]   ;;  %s1466_s8 = inlined_call_operand.vmem [shape: bf16[1,32,32], index: 8, kind: input, shape index: {}]   ;;  %s1467_s9 = inlined_call_operand.vmem [shape: f32[1,1,32], index: 9, kind: input, shape index: {}]   ;;  %s1468_s10 = inlined_call_operand.vmem [shape: bf16[32,32], index: 10, kind: input, shape index: {}]   ;;  %s1469_s11 = inlined_call_operand.vmem [shape: f32[1,32], index: 11, kind: input, shape index: {}]   ;;  %s1470_s12 = inlined_call_operand.vmem [shape: f32[4,24,32], index: 12, kind: output, shape index: {0}]   ;;  %s1471_s13 = inlined_call_operand.vmem [shape: f32[4,24,32], index: 13, kind: output, shape index: {1}]  }
   0x1 LB: > { %s1072_s26 = sadd.s32 4294967295, %s1260_s25   ;;  %p1076_p0 = scmp.ge.s32.totalorder %s1260_s25, 1  ;;  %s1260_s25 = sphi %s1334_s25, %s24_s25  }
   0x2   : > { %p390_p1 = scmp.lt.s32.totalorder %s1260_s25, 5 }
   0x4   : > { %p391_p2 = pnand %p1076_p0, %p390_p1 }
   0x5   : > { %v1238_v0 = vld [vmem:[%s1462_s4] sm:$0xff] (!%p391_p2)   ;;  %v1262_v1 = vmov (!%p391_p2), 0.0   ;;  %v1239_v2 = vld [vmem:[%s1462_s4 + $0x8] sm:$0xff] (!%p391_p2)   ;;  %vm1263_vm0 = vmmov (!%p391_p2), 0   ;;  %p439_p3 = scmp.lt.s32.totalorder (!%p391_p2), %s1072_s26, 3  ;;  %vm507_vm1 = vcmask (!%p391_p2), 261120  }
   0x6   : > { %394 = sbr.rel (%p391_p2) target bundleno = 1158 (0x486), region = 68  ;;  %1143 = vmatprep.subr.bf16.mxu0 (!%p391_p2), %v1262_v1  ;;  %1147 = vmatprep.mubr.msk.bf16.mxu0 (!%p391_p2), %vm1263_vm0, %v1262_v1  ;;  %v1240_v3 = vld [vmem:[%s1459_s1] sm:$0xff] (!%p391_p2)   ;;  %vm598_vm2 = vcmask (!%p391_p2), 1043456   ;;  %v1241_v9 = vld [vmem:[%s1459_s1 + $0x8] sm:$0xff] (!%p391_p2)   ;;  %v1242_v11 = vld [vmem:[%s1459_s1 + $0x10] ss:$0 sps:$4 sm:$0xff] (!%p391_p2)  }
   0x7   : > { %1144 = vmatpush3.bf16.msra.mxu0 (!%p391_p2), %v1238_v0  ;;  %v1243_v12 = vld [vmem:[%s1460_s2] sm:$0xff] (!%p391_p2)   ;;  %vm588_vm3 = vcmask (!%p391_p2), 195584   ;;  %v1244_v13 = vld [vmem:[%s1460_s2 + $0x8] sm:$0xff] (!%p391_p2)   ;;  %v1245_v14 = vld [vmem:[%s1460_s2 + $0x10] ss:$0 sps:$4 sm:$0xff] (!%p391_p2)   ;;  %vm674_vm4 = vcmask (!%p391_p2), 326656  }
   0x8   : > { %1145 = vmatprep.subr.bf16.mxu0 (!%p391_p2), %v1262_v1  ;;  %v1246_v15 = vld [vmem:[%s1461_s3] sm:$0xff] (!%p391_p2)   ;;  %v1247_v43 = vld [vmem:[%s1461_s3 + $0x8] ss:$0 sps:$4 sm:$0xff] (!%p391_p2)  }
   0x9   : > { %1181 = vmatprep.mubr.msk.bf16.mxu1 (!%p391_p2), %vm674_vm4, %v1246_v15  ;;  %v1080_v16 = vld [vmem:[%s1463_s5] ss:$0 sm:$0xff] (!%p391_p2)  ;;  %v1249_v45 = vld [vmem:[%s1464_s6 + $0x8] sm:$0xff] (!%p391_p2)  }
   0xa   : > { %v1248_v44 = vld [vmem:[%s1464_s6] sm:$0xff] (!%p391_p2)   ;;  %v1251_v56 = vld [vmem:[%s1466_s8 + $0x8] sm:$0xff] (!%p391_p2)  }
   0xb   : > { %1146 = vmatpush3.bf16.msra.mxu0 (!%p391_p2), %v1239_v2  ;;  %v1250_v55 = vld [vmem:[%s1466_s8] sm:$0xff] (!%p391_p2)  }
   0xc   : > { %1159 = vmatprep.subr.bf16.mxu0 (!%p391_p2), %v1262_v1  ;;  %v1099_v57 = vld [vmem:[%s1465_s7] ss:$0 sm:$0xff] (!%p391_p2) }
   0xd   : > { %s1473_s26 = smov (!%p439_p3, %s1072_s26), 3 }
   0xe   : > { %s1352_s16 = smul.u32 24, %s1473_s26  ;;  %1148 = vmatmul.mubr.msk.bf16.vlgmr.msra.gmra.mrb[0].mxu0 %vm507_vm1, %v1240_v3 }
   0xf   : > { %1151 = vmatprep.mubr.msk.bf16.mxu0 %vm1263_vm0, %v1262_v1 }
  0x10   : > { %s443_s19 = scalar_lea.vmem %s1458_s0, %s1352_s16  ;;  %s448_s24 = scalar_lea.vmem %s1470_s12, %s1352_s16 }
  0x11   : > { %v1359_v4 = vld [vmem:[%s443_s19] sm:$0xff]  ;;  %v1361_v5 = vld [vmem:[%s443_s19 + $0x8] sm:$0xff]  ;;  %v1364_v6 = vld [vmem:[%s443_s19 + $0x10] sm:$0xff]  ;;  %s453_s30 = scalar_lea.vmem %s1471_s13, %s1352_s16 }
  0x12   : > { %v573_v7 = vpack.c.bf16 %v1361_v5, %v1359_v4  ;;  %v574_v8 = vpack.c.bf16 %v1364_v6, %v1364_v6 }
  0x14   : > { %1160 = vmatpush3.bf16.msra.mxu0 %v573_v7  ;;  %v600_v10 = vsel %vm598_vm2, %v574_v8, 0  ;;  %v1253_v7 = vld [vmem:[%s1468_s10 + $0x8] sm:$0xff]   ;;  %v1104_v8 = vld [vmem:[%s1467_s9] ss:$0 sm:$0xff] }
  0x15   : > { %1161 = vmatprep.subr.bf16.mxu0 %v1262_v1 }
  0x16   : > { %1152 = vmatmul.mubr.msk.bf16.gmra.mrb[4].mxu0 %vm507_vm1, %v1241_v9 }
  0x17   : > { %1155 = vmatprep.mubr.msk.bf16.mxu0 %vm1263_vm0, %v1262_v1 }
  0x18   : > { %1162 = vmatpush3.bf16.msra.mxu0 %v600_v10 }
  0x1e   : > { %1156 = vmatmul.mubr.msk.bf16.gmra.mrb[8].mxu0 %vm507_vm1, %v1242_v11 }
  0x1f   : > { %1163 = vmatprep.mubr.msk.bf16.mxu0 %vm1263_vm0, %v1262_v1 }
  0x26   : > { %1164 = vmatmul.mubr.msk.bf16.vlgmr.msra.gmra.mrb[0].mxu0 %vm588_vm3, %v1243_v12 }
  0x27   : > { %1167 = vmatprep.mubr.msk.bf16.mxu0 %vm1263_vm0, %v1262_v1 }
  0x2e   : > { %1168 = vmatmul.mubr.msk.bf16.gmra.mrb[4].mxu0 %vm588_vm3, %v1244_v13 }
  0x2f   : > { %1171 = vmatprep.mubr.msk.bf16.mxu0 %vm1263_vm0, %v1262_v1 }
  0x36   : > { %1172 = vmatmul.mubr.msk.bf16.gmra.mrb[8].mxu0 %vm588_vm3, %v1245_v14 }
  0xf9   : > { %v636_v17 = vpop.f32.mrb[0].mxu0 }
  0xfa   : > { %v1209_v18 = vadd.f32 %v1080_v16, %v636_v17  ;;  %v1165_v19 = vpop.f32.mrb[1].mxu0 }
  0xfb   : > { %v639_v20 = vpop.f32.mrb[2].mxu0 }
  0xfc   : > { %v1210_v21 = vadd.f32 %v1080_v16, %v639_v20  ;;  %v1166_v22 = vpop.f32.mrb[3].mxu0  ;;  %v658_v23 = vmax.f32 %v1209_v18, 0.0 }
  0xfe   : > { %v659_v24 = vmax.f32 %v1210_v21, 0.0  ;;  %v1109_v21 = vld [vmem:[%s1469_s11] ss:$0 sm:$0xff] }
 0x100   : > { %v663_v25 = vpack.c.bf16 %v659_v24, %v658_v23 }
 0x101   : > { %v644_v26 = vpop.f32.mrb[4].mxu0 }
 0x102   : > { %v1211_v27 = vadd.f32 %v1080_v16, %v644_v26  ;;  %v1169_v28 = vpop.f32.mrb[5].mxu0  ;;  %1175 = vmatprep.subr.bf16.mxu1 %v663_v25 }
 0x103   : > { %v647_v29 = vpop.f32.mrb[6].mxu0  ;;  %1176 = vmatpush3.bf16.msra.mxu1 %v663_v25 }
 0x104   : > { %v1212_v30 = vadd.f32 %v1080_v16, %v647_v29  ;;  %v1170_v31 = vpop.f32.mrb[7].mxu0  ;;  %v660_v32 = vmax.f32 %v1211_v27, 0.0 }
 0x106   : > { %v661_v33 = vmax.f32 %v1212_v30, 0.0 }
 0x108   : > { %v664_v34 = vpack.c.bf16 %v661_v33, %v660_v32 }
 0x109   : > { %v652_v35 = vpop.f32.mrb[8].mxu0 }
 0x10a   : > { %v1213_v36 = vadd.f32 %v1080_v16, %v652_v35  ;;  %v1173_v37 = vpop.f32.mrb[9].mxu0  ;;  %1177 = vmatprep.subr.bf16.mxu1 %v664_v34 }
 0x10b   : > { %v655_v38 = vpop.f32.mrb[10].mxu0  ;;  %1178 = vmatpush3.bf16.msra.mxu1 %v664_v34 }
 0x10c   : > { %v662_v39 = vmax.f32 %v1213_v36, 0.0  ;;  %v1174_v40 = vpop.f32.mrb[11].mxu0 }
 0x10e   : > { %v665_v41 = vpack.c.bf16 %v662_v39, %v662_v39 }
 0x110   : > { %1226 = vmatprep.subr.msk.bf16.mxu1 %vm598_vm2, %v665_v41  ;;  %v682_v42 = vsel %vm598_vm2, %v665_v41, 0 }
 0x111   : > { %1180 = vmatpush3.bf16.msra.mxu1 %v682_v42 }
 0x112   : > { %1185 = vmatprep.subr.bf16.mxu1 %v1248_v44 }
 0x114   : > { %1182 = vmatmul.mubr.msk.bf16.vlgmr.msra.gmra.mrb[0].mxu1 %vm674_vm4, %v1247_v43 }
 0x115   : > { %1186 = vmatpush3.bf16.msra.mxu1 %v1248_v44 }
 0x116   : > { %1187 = vmatprep.subr.bf16.mxu1 %v1249_v45 }
 0x119   : > { %1188 = vmatpush3.bf16.msra.mxu1 %v1249_v45 }
 0x11a   : > { %1193 = vmatprep.subr.bf16.mxu1 %v1250_v55 }
 0x1e7   : > { %v1183_v46 = vpop.f32.mrb[0].mxu1 }
 0x1e8   : > { %v718_v47 = vpop.f32.mrb[1].mxu1  ;;  %v734_v49 = vadd.f32 %v1183_v46, %v1364_v6  ;;  %v1252_v6 = vld [vmem:[%s1468_s10] sm:$0xff]  }
 0x1e9   : > { %v1184_v48 = vpop.f32.mrb[2].mxu1  ;;  %v732_v51 = vadd.f32 %v718_v47, %v1359_v4 }
 0x1ea   : > { %v721_v50 = vpop.f32.mrb[3].mxu1  ;;  %v736_v54 = vpack.c.bf16 %v734_v49, %v734_v49 }
 0x1eb   : > { %v733_v52 = vadd.f32 %v721_v50, %v1361_v5 }
 0x1ed   : > { %v735_v53 = vpack.c.bf16 %v733_v52, %v732_v51 }
 0x1ef   : > { %1189 = vmatprep.mubr.msk.bf16.mxu1 %vm507_vm1, %v735_v53 }
 0x1f0   : > { %1190 = vmatmul.mubr.msk.bf16.vlgmr.msra.gmra.mrb[4].mxu1 %vm507_vm1, %v736_v54 }
 0x1f1   : > { %1194 = vmatpush3.bf16.msra.mxu1 %v1250_v55 }
 0x1f2   : > { %1195 = vmatprep.subr.bf16.mxu1 %v1251_v56 }
 0x1f5   : > { %1196 = vmatpush3.bf16.msra.mxu1 %v1251_v56 }
 0x1f6   : > { %1201 = vmatprep.subr.bf16.mxu1 %v1252_v6 }
 0x2c3   : > { %v1191_v58 = vpop.f32.mrb[4].mxu1 }
 0x2c4   : > { %v809_v59 = vadd.f32 %v1191_v58, %v1099_v57  ;;  %v800_v60 = vpop.f32.mrb[5].mxu1 }
 0x2c5   : > { %v801_v61 = vadd.f32 %v1099_v57, %v800_v60  ;;  %v1192_v62 = vpop.f32.mrb[6].mxu1 }
 0x2c6   : > { %v803_v63 = vpop.f32.mrb[7].mxu1  ;;  %v816_v1 = vmax.f32 %v809_v59, 0.0 }
 0x2c7   : > { %v804_v0 = vadd.f32 %v1099_v57, %v803_v63  ;;  %v814_v2 = vmax.f32 %v801_v61, 0.0 }
 0x2c8   : > { %v818_v5 = vpack.c.bf16 %v816_v1, %v816_v1 }
 0x2c9   : > { %v815_v3 = vmax.f32 %v804_v0, 0.0 }
 0x2cb   : > { %v817_v4 = vpack.c.bf16 %v815_v3, %v814_v2 }
 0x2cd   : > { %1197 = vmatprep.mubr.msk.bf16.mxu1 %vm507_vm1, %v817_v4 }
 0x2ce   : > { %1198 = vmatmul.mubr.msk.bf16.vlgmr.msra.gmra.mrb[8].mxu1 %vm507_vm1, %v818_v5 }
 0x2cf   : > { %1202 = vmatpush3.bf16.msra.mxu1 %v1252_v6 }
 0x2d0   : > { %1203 = vmatprep.subr.bf16.mxu1 %v1253_v7 }
 0x2d3   : > { %1204 = vmatpush3.bf16.msra.mxu1 %v1253_v7 }
 0x3a1   : > { %v1199_v9 = vpop.f32.mrb[8].mxu1 }
 0x3a2   : > { %v891_v10 = vadd.f32 %v1199_v9, %v1104_v8  ;;  %v882_v11 = vpop.f32.mrb[9].mxu1 }
 0x3a3   : > { %v883_v12 = vadd.f32 %v1104_v8, %v882_v11  ;;  %v1200_v13 = vpop.f32.mrb[10].mxu1 }
 0x3a4   : > { %v898_v14 = vmax.f32 %v891_v10, 0.0  ;;  %v885_v15 = vpop.f32.mrb[11].mxu1 }
 0x3a5   : > { %v896_v16 = vmax.f32 %v883_v12, 0.0  ;;  %v886_v17 = vadd.f32 %v1104_v8, %v885_v15 }
 0x3a6   : > { %901 = vst.msk [vmem:[%s448_s24 + $0x10] sm:$0xff] %vm507_vm1, %v898_v14  ;;  %v903_v20 = vpack.c.bf16 %v898_v14, %v898_v14 }
 0x3a7   : > { %899 = vst.msk [vmem:[%s448_s24] sm:$0xff] %vm507_vm1, %v896_v16  ;;  %v897_v18 = vmax.f32 %v886_v17, 0.0 }
 0x3a9   : > { %900 = vst.msk [vmem:[%s448_s24 + $0x8] sm:$0xff] %vm507_vm1, %v897_v18  ;;  %v902_v19 = vpack.c.bf16 %v897_v18, %v896_v16 }
 0x3ab   : > { %1205 = vmatprep.mubr.msk.bf16.mxu1 %vm507_vm1, %v902_v19 }
 0x3ac   : > { %1206 = vmatmul.mubr.msk.bf16.vlgmr.msra.gmra.mrb[12].mxu1 %vm507_vm1, %v903_v20 }
 0x47f   : > { %v1207_v22 = vpop.f32.mrb[12].mxu1 }
 0x480   : > { %v976_v23 = vadd.f32 %v1207_v22, %v1109_v21  ;;  %v967_v24 = vpop.f32.mrb[13].mxu1 }
 0x481   : > { %v968_v25 = vadd.f32 %v1109_v21, %v967_v24  ;;  %v1208_v26 = vpop.f32.mrb[14].mxu1 }
 0x482   : > { %983 = vst.msk [vmem:[%s453_s30 + $0x10] sm:$0xff] %vm507_vm1, %v976_v23  ;;  %v970_v27 = vpop.f32.mrb[15].mxu1 }
 0x483   : > { %981 = vst.msk [vmem:[%s453_s30] sm:$0xff] %vm507_vm1, %v968_v25  ;;  %v971_v28 = vadd.f32 %v1109_v21, %v970_v27 }
 0x485   : > { %982 = vst.msk [vmem:[%s453_s30 + $0x8] sm:$0xff] %vm507_vm1, %v971_v28 }
 0x486 PF: > { %s24_s25 = sadd.s32 1, %s1260_s25  }
 0x487   : > { %p21_p4 = scmp.ge.s32.totalorder %s24_s25, 6  }
 0x489   :  { %23 = sbr.rel (!%p21_p4) target bundleno = 1 (0x1), region = 110 }

// kernel: mul.32
= control target key start
LH: loop header
LB: loop body
LE: loop exit
PB: predicated region body
PF: predicated region fallthrough
CT: control target
= control target key end

     0   :  { %s276_s0 = inlined_call_operand.vmem [shape: f32[4,24,32], index: 0, kind: input, shape index: {}]   ;;  %s277_s1 = inlined_call_operand.vmem [shape: f32[4,24,32], index: 1, kind: input, shape index: {}]   ;;  %s278_s2 = inlined_call_operand.vmem [shape: f32[4,24,32], index: 2, kind: output, shape index: {}]  }
   0x1   :  { %v3_v0 = vld [vmem:[%s276_s0] sm:$0xff]  ;;  %v120_v2 = vld [vmem:[%s276_s0 + $0x18] sm:$0xff]  ;;  %v123_v5 = vld [vmem:[%s276_s0 + $0x30] sm:$0xff] }
   0x2   :  { %v4_v1 = vld [vmem:[%s277_s1] sm:$0xff]  ;;  %v121_v4 = vld [vmem:[%s277_s1 + $0x18] sm:$0xff]  ;;  %v124_v6 = vld [vmem:[%s277_s1 + $0x30] sm:$0xff] }
   0x3   :  { %v7_v3 = vmul.f32 %v4_v1, %v3_v0  ;;  %v16_v7 = vmul.f32 %v121_v4, %v120_v2  ;;  %v26_v8 = vmul.f32 %v124_v6, %v123_v5  ;;  %v126_v9 = vld [vmem:[%s276_s0 + $0x48] sm:$0xff]  ;;  %v132_v14 = vld [vmem:[%s276_s0 + $0x20] sm:$0xff]  ;;  %v135_v18 = vld [vmem:[%s276_s0 + $0x38] sm:$0xff] }
   0x4   :  { %v127_v10 = vld [vmem:[%s277_s1 + $0x48] sm:$0xff]  ;;  %v133_v15 = vld [vmem:[%s277_s1 + $0x20] sm:$0xff]  ;;  %v136_v19 = vld [vmem:[%s277_s1 + $0x38] sm:$0xff] }
   0x5   :  { %v129_v11 = vld [vmem:[%s276_s0 + $0x8] sm:$0xff]  ;;  %9 = vst [vmem:[%s278_s2] sm:$0xff] %v7_v3  ;;  %v36_v12 = vmul.f32 %v127_v10, %v126_v9  ;;  %122 = vst [vmem:[%s278_s2 + $0x18] sm:$0xff] %v16_v7  ;;  %v56_v17 = vmul.f32 %v133_v15, %v132_v14  ;;  %v138_v20 = vld [vmem:[%s276_s0 + $0x50] sm:$0xff]  ;;  %v66_v21 = vmul.f32 %v136_v19, %v135_v18 }
   0x6   :  { %v130_v13 = vld [vmem:[%s277_s1 + $0x8] sm:$0xff]  ;;  %125 = vst [vmem:[%s278_s2 + $0x30] sm:$0xff] %v26_v8  ;;  %v139_v22 = vld [vmem:[%s277_s1 + $0x50] sm:$0xff]  ;;  %v147_v29 = vld [vmem:[%s276_s0 + $0x40] sm:$0xff] }
   0x7   :  { %v46_v16 = vmul.f32 %v130_v13, %v129_v11  ;;  %128 = vst [vmem:[%s278_s2 + $0x48] sm:$0xff] %v36_v12  ;;  %v141_v23 = vld [vmem:[%s276_s0 + $0x10] sm:$0xff]  ;;  %134 = vst [vmem:[%s278_s2 + $0x20] sm:$0xff] %v56_v17  ;;  %v76_v25 = vmul.f32 %v139_v22, %v138_v20  ;;  %v144_v27 = vld [vmem:[%s276_s0 + $0x28] sm:$0xff] }
   0x8   :  { %v142_v24 = vld [vmem:[%s277_s1 + $0x10] sm:$0xff]  ;;  %v145_v28 = vld [vmem:[%s277_s1 + $0x28] sm:$0xff]  ;;  %137 = vst [vmem:[%s278_s2 + $0x38] sm:$0xff] %v66_v21  ;;  %v148_v31 = vld [vmem:[%s277_s1 + $0x40] sm:$0xff] }
   0x9   :  { %131 = vst [vmem:[%s278_s2 + $0x8] sm:$0xff] %v46_v16  ;;  %v86_v26 = vmul.f32 %v142_v24, %v141_v23  ;;  %v96_v30 = vmul.f32 %v145_v28, %v144_v27  ;;  %v150_v32 = vld [vmem:[%s276_s0 + $0x58] sm:$0xff]  ;;  %140 = vst [vmem:[%s278_s2 + $0x50] sm:$0xff] %v76_v25  ;;  %v106_v34 = vmul.f32 %v148_v31, %v147_v29 }
   0xa   :  { %v151_v33 = vld [vmem:[%s277_s1 + $0x58] sm:$0xff] }
   0xb   :  { %143 = vst [vmem:[%s278_s2 + $0x10] sm:$0xff] %v86_v26  ;;  %v116_v35 = vmul.f32 %v151_v33, %v150_v32  ;;  %146 = vst [vmem:[%s278_s2 + $0x28] sm:$0xff] %v96_v30 }
   0xc   :  { %149 = vst [vmem:[%s278_s2 + $0x40] sm:$0xff] %v106_v34 }
   0xd   :  { %152 = vst [vmem:[%s278_s2 + $0x58] sm:$0xff] %v116_v35 }

// kernel: pfgnn_forward.16
= control target key start
LH: loop header
LB: loop body
LE: loop exit
PB: predicated region body
PF: predicated region fallthrough
CT: control target
= control target key end

     0   :  { %s1658_s0 = inlined_call_operand.vmem [shape: f32[4,24,32], index: 0, kind: input, shape index: {}]   ;;  %s1659_s1 = inlined_call_operand.vmem [shape: bf16[1,40,32], index: 1, kind: input, shape index: {}]   ;;  %s1660_s2 = inlined_call_operand.vmem [shape: bf16[40,24], index: 2, kind: input, shape index: {}]   ;;  %s1661_s3 = inlined_call_operand.vmem [shape: bf16[24,40], index: 3, kind: input, shape index: {}]   ;;  %s1662_s4 = inlined_call_operand.vmem [shape: bf16[1,32,32], index: 4, kind: input, shape index: {}]   ;;  %s1663_s5 = inlined_call_operand.vmem [shape: f32[1,1,32], index: 5, kind: input, shape index: {}]   ;;  %s1664_s6 = inlined_call_operand.vmem [shape: bf16[1,32,32], index: 6, kind: input, shape index: {}]   ;;  %s1665_s7 = inlined_call_operand.vmem [shape: f32[1,1,32], index: 7, kind: input, shape index: {}]   ;;  %s1666_s8 = inlined_call_operand.vmem [shape: bf16[1,32,32], index: 8, kind: input, shape index: {}]   ;;  %s1667_s9 = inlined_call_operand.vmem [shape: f32[1,1,32], index: 9, kind: input, shape index: {}]   ;;  %s1668_s10 = inlined_call_operand.vmem [shape: bf16[32,32], index: 10, kind: input, shape index: {}]   ;;  %s1669_s11 = inlined_call_operand.vmem [shape: f32[1,32], index: 11, kind: input, shape index: {}]   ;;  %s1670_s12 = inlined_call_operand.hbm [shape: f32[4,24,32], index: 12, kind: output, shape index: {0}]   ;;  %s1671_s13 = inlined_call_operand.vmem [shape: f32[4,24,32], index: 13, kind: output, shape index: {1}]  }
   0x1   :  { %1673 = sst [smem:[#allocation5_spill]] %s1658_s0 }
   0x2   :  { %1674 = sst [smem:[#allocation6_spill]] %s1659_s1 }
   0x3   :  { %1675 = sst [smem:[#allocation7_spill]] %s1660_s2 }
   0x4   :  { %19 = vsyncpa [#allocation3], 0 }
   0x5   :  { %21 = vsyncpa [#allocation3 + $0x1], 0  ;;  %s1446_s25 = smov 0   ;;  %s1448_s26 = smov 0  }
   0x6   :  { %s1450_s27 = smov 0   ;;  %s1452_s28 = smov 0  }
   0x7 LB: > { %s1467_s29 = sadd.s32 4294967295, %s1369_s28   ;;  %s1091_s30 = sadd.s32 4294967294, %s1369_s28   ;;  %s1369_s28 = sphi %s1452_s28, %s1685_s28   ;;  %s1365_s27 = sphi %s1450_s27, %s1684_s27   ;;  %s1361_s26 = sphi %s1448_s26, %s1683_s26   ;;  %s1357_s25 = sphi %s1446_s25, %s1682_s25  }
   0x8   : > { %s1471_s14 = sadd.s32 1, %s1369_s28   ;;  %s291_s15 = sadd.s32 1, %s1365_s27 }
   0x9   : > { %s288_s16 = ssub.s32 %s1369_s28, %s1471_s14  ;;  %p301_p0 = scmp.ne.s32.totalorder %s1365_s27, %s1361_s26 }
   0xa   : > { %p289_p1 = scmp.eq.s32.totalorder %s288_s16, 0  ;;  %p302_p2 = scmp.eq.s32.totalorder %s1467_s29, 3 }
   0xb   : > { %p307_p3 = scmp.ne.s32.totalorder %s1361_s26, %s1357_s25  ;;  %p308_p4 = scmp.eq.s32.totalorder %s1091_s30, 3 }
   0xc   : > { %s1482_s17 = scalar_select %p289_p1, %s1365_s27, %s291_s15  }
   0xd   : > { %p1484_p5 = por %p302_p2, %p301_p0  ;;  %p1488_p6 = por %p308_p4, %p307_p3 }
   0xe   : > { %p1094_p7 = scmp.ge.s32.totalorder %s1369_s28, 1  ;;  %p393_p8 = scmp.lt.s32.totalorder %s1369_s28, 5 }
  0x10   : > { %p394_p9 = pnand %p1094_p7, %p393_p8 }
  0x11   : > { %v1291_v0 = vld [vmem:[%s1662_s4] sm:$0xff] (!%p394_p9)   ;;  %v1371_v1 = vmov (!%p394_p9), 0.0   ;;  %v1292_v2 = vld [vmem:[%s1662_s4 + $0x8] sm:$0xff] (!%p394_p9)   ;;  %vm1372_vm0 = vmmov (!%p394_p9), 0   ;;  %p442_p10 = scmp.lt.s32.totalorder (!%p394_p9), %s1467_s29, 3  ;;  %s1678_s1 = sld [smem:[#allocation6_spill]] (!%p394_p9) }
  0x12   : > { %397 = sbr.rel (%p394_p9) target bundleno = 1170 (0x492), region = 68  ;;  %1161 = vmatprep.subr.bf16.mxu0 (!%p394_p9), %v1371_v1  ;;  %1165 = vmatprep.mubr.msk.bf16.mxu0 (!%p394_p9), %vm1372_vm0, %v1371_v1  ;;  %vm505_vm1 = vcmask (!%p394_p9), 261120   ;;  %s1679_s0 = sld [smem:[#allocation5_spill]] (!%p394_p9)  ;;  %vm596_vm2 = vcmask (!%p394_p9), 1043456   ;;  %vm586_vm3 = vcmask (!%p394_p9), 195584   ;;  %v1299_v15 = vld [vmem:[%s1661_s3] sm:$0xff] (!%p394_p9)  }
  0x13   : > { %1162 = vmatpush3.bf16.msra.mxu0 (!%p394_p9), %v1291_v0  ;;  %s1680_s2 = sld [smem:[#allocation7_spill]] (!%p394_p9)  ;;  %vm672_vm4 = vcmask (!%p394_p9), 326656   ;;  %v1097_v16 = vld [vmem:[%s1663_s5] ss:$0 sm:$0xff] (!%p394_p9)  ;;  %v1300_v43 = vld [vmem:[%s1661_s3 + $0x8] ss:$0 sps:$4 sm:$0xff] (!%p394_p9)  }
  0x14   : > { %1163 = vmatprep.subr.bf16.mxu0 (!%p394_p9), %v1371_v1  ;;  %1199 = vmatprep.mubr.msk.bf16.mxu1 (!%p394_p9), %vm672_vm4, %v1299_v15  ;;  %v1301_v44 = vld [vmem:[%s1664_s6] sm:$0xff] (!%p394_p9)   ;;  %v1302_v45 = vld [vmem:[%s1664_s6 + $0x8] sm:$0xff] (!%p394_p9)   ;;  %s1247_s21 = smul.u32 (!%p394_p9), 384, %s1467_s29 }
  0x15   : > { %v1303_v55 = vld [vmem:[%s1666_s8] sm:$0xff] (!%p394_p9)   ;;  %v1304_v56 = vld [vmem:[%s1666_s8 + $0x8] sm:$0xff] (!%p394_p9)  }
  0x16   : > { %v1116_v57 = vld [vmem:[%s1665_s7] ss:$0 sm:$0xff] (!%p394_p9)  ;;  %s1604_s23 = scalar_lea.hbm (!%p394_p9), %s1670_s12, %s1247_s21 }
  0x17   : > { %v1293_v3 = vld [vmem:[%s1678_s1] sm:$0xff] (!%p394_p9)   ;;  %1164 = vmatpush3.bf16.msra.mxu0 (!%p394_p9), %v1292_v2  ;;  %v1294_v9 = vld [vmem:[%s1678_s1 + $0x8] sm:$0xff] (!%p394_p9)   ;;  %v1295_v11 = vld [vmem:[%s1678_s1 + $0x10] ss:$0 sps:$4 sm:$0xff] (!%p394_p9)  }
  0x18   : > { %1177 = vmatprep.subr.bf16.mxu0 (!%p394_p9), %v1371_v1 }
  0x19   : > { %s1506_s15 = scalar_select %p442_p10, %s1467_s29, 3  ;;  %v1296_v12 = vld [vmem:[%s1680_s2] sm:$0xff]   ;;  %v1297_v13 = vld [vmem:[%s1680_s2 + $0x8] sm:$0xff]   ;;  %v1298_v14 = vld [vmem:[%s1680_s2 + $0x10] ss:$0 sps:$4 sm:$0xff]  }
  0x1a   : > { %1166 = vmatmul.mubr.msk.bf16.vlgmr.msra.gmra.mrb[0].mxu0 %vm505_vm1, %v1293_v3  ;;  %s1373_s2 = smov [#allocation2]  }
  0x1b   : > { %s1672_s16 = smul.u32 24, %s1506_s15  ;;  %1169 = vmatprep.mubr.msk.bf16.mxu0 %vm1372_vm0, %v1371_v1 }
  0x1d   : > { %s446_s22 = scalar_lea.vmem %s1679_s0, %s1672_s16  ;;  %s432_s0 = sand.u32 1, %s1361_s26  }
  0x1e   : > { %v1515_v4 = vld [vmem:[%s446_s22] sm:$0xff]  ;;  %v1517_v5 = vld [vmem:[%s446_s22 + $0x8] sm:$0xff]  ;;  %v1520_v6 = vld [vmem:[%s446_s22 + $0x10] sm:$0xff]  ;;  %s1245_s16 = smul.u32 24, %s432_s0  ;;  %s1606_s24 = scalar_lea.sflag [#allocation3], %s432_s0 }
  0x1f   : > { %v571_v7 = vpack.c.bf16 %v1517_v5, %v1515_v4  ;;  %v572_v8 = vpack.c.bf16 %v1520_v6, %v1520_v6 }
  0x20   : > { %s434_s30 = scalar_lea.vmem [#allocation2], %s1245_s16 }
  0x21   : > { %1178 = vmatpush3.bf16.msra.mxu0 %v571_v7  ;;  %v598_v10 = vsel %vm596_vm2, %v572_v8, 0  ;;  %v1306_v7 = vld [vmem:[%s1668_s10 + $0x8] sm:$0xff]   ;;  %v1121_v8 = vld [vmem:[%s1667_s9] ss:$0 sm:$0xff]  ;;  %s1001_s20 = sshll.u32 %s434_s30, 4  ;;  %s1599_s20 = int_to_ptr.vmem [resolvable:$true] %s1001_s20 }
  0x22   : > { %1179 = vmatprep.subr.bf16.mxu0 %v1371_v1  ;;  %1170 = vmatmul.mubr.msk.bf16.gmra.mrb[4].mxu0 %vm505_vm1, %v1294_v9  ;;  %s1307_s1 = scalar_lea.vmem %s1599_s20, 384 }
  0x23   : > { %1173 = vmatprep.mubr.msk.bf16.mxu0 %vm1372_vm0, %v1371_v1  ;;  %p1308_p11 = scmp.ne.s32.totalorder %s1599_s20, %s1307_s1 }
  0x25   : > { %1180 = vmatpush3.bf16.msra.mxu0 %v598_v10  ;;  %p1309_p12 = pnand %p1308_p11, %p1484_p5 }
  0x27   : > { %p1310_p13 = pneg %p1309_p12 }
  0x2a   : > { %1174 = vmatmul.mubr.msk.bf16.gmra.mrb[8].mxu0 %vm505_vm1, %v1295_v11 }
  0x2b   : > { %1181 = vmatprep.mubr.msk.bf16.mxu0 %vm1372_vm0, %v1371_v1 }
  0x32   : > { %1182 = vmatmul.mubr.msk.bf16.vlgmr.msra.gmra.mrb[0].mxu0 %vm586_vm3, %v1296_v12 }
  0x33   : > { %1185 = vmatprep.mubr.msk.bf16.mxu0 %vm1372_vm0, %v1371_v1 }
  0x3a   : > { %1186 = vmatmul.mubr.msk.bf16.gmra.mrb[4].mxu0 %vm586_vm3, %v1297_v13 }
  0x3b   : > { %1189 = vmatprep.mubr.msk.bf16.mxu0 %vm1372_vm0, %v1371_v1 }
  0x42   : > { %1190 = vmatmul.mubr.msk.bf16.gmra.mrb[8].mxu0 %vm586_vm3, %v1298_v14 }
 0x105   : > { %v634_v17 = vpop.f32.mrb[0].mxu0 }
 0x106   : > { %v1227_v18 = vadd.f32 %v1097_v16, %v634_v17  ;;  %v1183_v19 = vpop.f32.mrb[1].mxu0 }
 0x107   : > { %v637_v20 = vpop.f32.mrb[2].mxu0 }
 0x108   : > { %v1228_v21 = vadd.f32 %v1097_v16, %v637_v20  ;;  %v1184_v22 = vpop.f32.mrb[3].mxu0  ;;  %v656_v23 = vmax.f32 %v1227_v18, 0.0 }
 0x10a   : > { %v657_v24 = vmax.f32 %v1228_v21, 0.0 }
 0x10c   : > { %v661_v25 = vpack.c.bf16 %v657_v24, %v656_v23 }
 0x10d   : > { %v642_v26 = vpop.f32.mrb[4].mxu0 }
 0x10e   : > { %v1229_v27 = vadd.f32 %v1097_v16, %v642_v26  ;;  %v1187_v28 = vpop.f32.mrb[5].mxu0  ;;  %1193 = vmatprep.subr.bf16.mxu1 %v661_v25 }
 0x10f   : > { %v645_v29 = vpop.f32.mrb[6].mxu0  ;;  %1194 = vmatpush3.bf16.msra.mxu1 %v661_v25 }
 0x110   : > { %v1230_v30 = vadd.f32 %v1097_v16, %v645_v29  ;;  %v1188_v31 = vpop.f32.mrb[7].mxu0  ;;  %v658_v32 = vmax.f32 %v1229_v27, 0.0 }
 0x112   : > { %v659_v33 = vmax.f32 %v1230_v30, 0.0 }
 0x114   : > { %v662_v34 = vpack.c.bf16 %v659_v33, %v658_v32 }
 0x115   : > { %v650_v35 = vpop.f32.mrb[8].mxu0 }
 0x116   : > { %v1231_v36 = vadd.f32 %v1097_v16, %v650_v35  ;;  %v1191_v37 = vpop.f32.mrb[9].mxu0  ;;  %1195 = vmatprep.subr.bf16.mxu1 %v662_v34 }
 0x117   : > { %v653_v38 = vpop.f32.mrb[10].mxu0  ;;  %1196 = vmatpush3.bf16.msra.mxu1 %v662_v34 }
 0x118   : > { %v660_v39 = vmax.f32 %v1231_v36, 0.0  ;;  %v1192_v40 = vpop.f32.mrb[11].mxu0 }
 0x11a   : > { %v663_v41 = vpack.c.bf16 %v660_v39, %v660_v39 }
 0x11c   : > { %1244 = vmatprep.subr.msk.bf16.mxu1 %vm596_vm2, %v663_v41  ;;  %v680_v42 = vsel %vm596_vm2, %v663_v41, 0 }
 0x11d   : > { %1198 = vmatpush3.bf16.msra.mxu1 %v680_v42 }
 0x11e   : > { %1203 = vmatprep.subr.bf16.mxu1 %v1301_v44 }
 0x120   : > { %1200 = vmatmul.mubr.msk.bf16.vlgmr.msra.gmra.mrb[0].mxu1 %vm672_vm4, %v1300_v43 }
 0x121   : > { %1204 = vmatpush3.bf16.msra.mxu1 %v1301_v44 }
 0x122   : > { %1205 = vmatprep.subr.bf16.mxu1 %v1302_v45 }
 0x125   : > { %1206 = vmatpush3.bf16.msra.mxu1 %v1302_v45 }
 0x126   : > { %1211 = vmatprep.subr.bf16.mxu1 %v1303_v55 }
 0x1f3   : > { %v1201_v46 = vpop.f32.mrb[0].mxu1 }
 0x1f4   : > { %v716_v47 = vpop.f32.mrb[1].mxu1  ;;  %v732_v49 = vadd.f32 %v1201_v46, %v1520_v6  ;;  %v1305_v6 = vld [vmem:[%s1668_s10] sm:$0xff]  }
 0x1f5   : > { %v1202_v48 = vpop.f32.mrb[2].mxu1  ;;  %v730_v51 = vadd.f32 %v716_v47, %v1515_v4 }
 0x1f6   : > { %v719_v50 = vpop.f32.mrb[3].mxu1  ;;  %v734_v54 = vpack.c.bf16 %v732_v49, %v732_v49 }
 0x1f7   : > { %v731_v52 = vadd.f32 %v719_v50, %v1517_v5 }
 0x1f9   : > { %v733_v53 = vpack.c.bf16 %v731_v52, %v730_v51 }
 0x1fb   : > { %1207 = vmatprep.mubr.msk.bf16.mxu1 %vm505_vm1, %v733_v53 }
 0x1fc   : > { %1208 = vmatmul.mubr.msk.bf16.vlgmr.msra.gmra.mrb[4].mxu1 %vm505_vm1, %v734_v54 }
 0x1fd   : > { %1212 = vmatpush3.bf16.msra.mxu1 %v1303_v55 }
 0x1fe   : > { %1213 = vmatprep.subr.bf16.mxu1 %v1304_v56 }
 0x201   : > { %1214 = vmatpush3.bf16.msra.mxu1 %v1304_v56 }
 0x202   : > { %1219 = vmatprep.subr.bf16.mxu1 %v1305_v6 }
 0x2cf   : > { %v1209_v58 = vpop.f32.mrb[4].mxu1 }
 0x2d0   : > { %v807_v59 = vadd.f32 %v1209_v58, %v1116_v57  ;;  %v798_v60 = vpop.f32.mrb[5].mxu1 }
 0x2d1   : > { %v799_v61 = vadd.f32 %v1116_v57, %v798_v60  ;;  %v1210_v62 = vpop.f32.mrb[6].mxu1 }
 0x2d2   : > { %v801_v63 = vpop.f32.mrb[7].mxu1  ;;  %v814_v1 = vmax.f32 %v807_v59, 0.0 }
 0x2d3   : > { %v802_v0 = vadd.f32 %v1116_v57, %v801_v63  ;;  %v812_v2 = vmax.f32 %v799_v61, 0.0 }
 0x2d4   : > { %v816_v5 = vpack.c.bf16 %v814_v1, %v814_v1 }
 0x2d5   : > { %v813_v3 = vmax.f32 %v802_v0, 0.0 }
 0x2d7   : > { %v815_v4 = vpack.c.bf16 %v813_v3, %v812_v2 }
 0x2d9   : > { %1215 = vmatprep.mubr.msk.bf16.mxu1 %vm505_vm1, %v815_v4 }
 0x2da   : > { %1216 = vmatmul.mubr.msk.bf16.vlgmr.msra.gmra.mrb[8].mxu1 %vm505_vm1, %v816_v5 }
 0x2db   : > { %1220 = vmatpush3.bf16.msra.mxu1 %v1305_v6 }
 0x2dc   : > { %1221 = vmatprep.subr.bf16.mxu1 %v1306_v7 }
 0x2df   : > { %1222 = vmatpush3.bf16.msra.mxu1 %v1306_v7 }
 0x3ad   : > { %v1217_v9 = vpop.f32.mrb[8].mxu1 }
 0x3ae   : > { %v889_v10 = vadd.f32 %v1217_v9, %v1121_v8  ;;  %v880_v11 = vpop.f32.mrb[9].mxu1 }
 0x3af   : > { %v881_v12 = vadd.f32 %v1121_v8, %v880_v11  ;;  %v1218_v13 = vpop.f32.mrb[10].mxu1 }
 0x3b0   : > { %v896_v14 = vmax.f32 %v889_v10, 0.0  ;;  %v883_v15 = vpop.f32.mrb[11].mxu1 }
 0x3b1   : > { %v894_v16 = vmax.f32 %v881_v12, 0.0  ;;  %v884_v17 = vadd.f32 %v1121_v8, %v883_v15 }
 0x3b2   : > { %899 = vst.msk [vmem:[%s434_s30 + $0x10] sm:$0xff] %vm505_vm1, %v896_v14  ;;  %v901_v20 = vpack.c.bf16 %v896_v14, %v896_v14 }
 0x3b3   : > { %897 = vst.msk [vmem:[%s434_s30] sm:$0xff] %vm505_vm1, %v894_v16  ;;  %v895_v18 = vmax.f32 %v884_v17, 0.0 }
 0x3b5   : > { %898 = vst.msk [vmem:[%s434_s30 + $0x8] sm:$0xff] %vm505_vm1, %v895_v18  ;;  %v900_v19 = vpack.c.bf16 %v895_v18, %v894_v16  ;;  %s1311_s30 = sshll.u32 %s1373_s2, 4  ;;  %s1312_s30 = int_to_ptr.vmem [resolvable:$false] %s1311_s30 }
 0x3b6   : > { %s1313_s29 = scalar_lea.vmem %s1312_s30, 768  ;;  %p1314_p0 = scmp.lt.s32.totalorder %s1599_s20, %s1312_s30 }
 0x3b7   : > { %1223 = vmatprep.mubr.msk.bf16.mxu1 %vm505_vm1, %v900_v19  ;;  %p1315_p1 = scmp.lt.s32.totalorder %s1313_s29, %s1307_s1 }
 0x3b8   : > { %1224 = vmatmul.mubr.msk.bf16.vlgmr.msra.gmra.mrb[12].mxu1 %vm505_vm1, %v901_v20 }
 0x3b9   : > { %p1316_p2 = por %p1315_p1, %p1314_p0 }
 0x3bb   : > { %p1317_p3 = pnand %p1316_p2, %p1310_p13 }
 0x3bd   : > { %1320 = shalt.err (!%p1317_p3)
}
 0x3be   : > { %s1321_s0 = scalar_lea.hbm %s1604_s23, 384  ;;  %s1325_s2 = scalar_lea.hbm %s1670_s12, 1536 }
 0x3bf   : > { %p1322_p4 = scmp.ne.s32.totalorder %s1604_s23, %s1321_s0  ;;  %p1326_p9 = scmp.lt.u32.totalorder %s1604_s23, %s1670_s12 }
 0x3c0   : > { %p1327_p10 = scmp.lt.u32.totalorder %s1325_s2, %s1321_s0  ;;  %p1329_p12 = scmp.lt.u32.totalorder %s1321_s0, %s1604_s23 }
 0x3c1   : > { %p1323_p7 = pnand %p1322_p4, %p1484_p5 }
 0x3c2   : > { %p1328_p11 = por %p1327_p10, %p1326_p9 }
 0x3c3   : > { %p1324_p8 = pneg %p1323_p7 }
 0x3c4   : > { %p1330_p13 = por %p1329_p12, %p1328_p11 }
 0x3c6   : > { %p1331_p0 = pnand %p1330_p13, %p1324_p8 }
 0x3c8   : > { %1334 = shalt.err (!%p1331_p0)
}
 0x3c9   : > { %s1374_s1 = smov 128   ;;  %s1375_s29 = smov 8   ;;  %v1126_v21 = vld [vmem:[%s1669_s11] ss:$0 sm:$0xff] }
 0x3ca   : > { %1248 = dma.vmem_to_hbm [thread:$0]  (%p1484_p5), %s1599_s20, 384, %s1604_s23, %s1606_s24, %s1374_s1, %s1374_s1, %s1375_s29  }
 0x3cb   : > { %s1681_s16 = smul.u32 24, %s1506_s15 }
 0x3cd   : > { %s451_s0 = scalar_lea.vmem %s1671_s13, %s1681_s16 }
 0x48b   : > { %v1225_v22 = vpop.f32.mrb[12].mxu1 }
 0x48c   : > { %v974_v23 = vadd.f32 %v1225_v22, %v1126_v21  ;;  %v965_v24 = vpop.f32.mrb[13].mxu1 }
 0x48d   : > { %v966_v25 = vadd.f32 %v1126_v21, %v965_v24  ;;  %v1226_v26 = vpop.f32.mrb[14].mxu1 }
 0x48e   : > { %981 = vst.msk [vmem:[%s451_s0 + $0x10] sm:$0xff] %vm505_vm1, %v974_v23  ;;  %v968_v27 = vpop.f32.mrb[15].mxu1 }
 0x48f   : > { %979 = vst.msk [vmem:[%s451_s0] sm:$0xff] %vm505_vm1, %v966_v25  ;;  %v969_v28 = vadd.f32 %v1126_v21, %v968_v27 }
 0x491   : > { %980 = vst.msk [vmem:[%s451_s0 + $0x8] sm:$0xff] %vm505_vm1, %v969_v28 }
 0x492 PF: > { %p1254_p5 = scmp.ge.s32.totalorder %s1369_s28, 2  ;;  %s1019_s18 = sand.u32 1, %s1357_s25  }
 0x493   : > { %s1020_s15 = scalar_lea.sflag [#allocation3], %s1019_s18 }
 0x494   : > { %p1251_p1 = pnand %p1254_p5, %p1488_p6 }
 0x496   : > { %1352 = dma.done.wait (!%p1251_p1), %s1020_s15, 384  }
 0x497   : > { %1354 = vsyncadd (!%p1251_p1), %s1020_s15, 4294966912  ;;  %p24_p2 = scmp.ge.s32.totalorder %s1471_s14, 6   ;;  %s1682_s25 = smov %s1361_s26 }
 0x498   : > { %s1683_s26 = smov %s1365_s27  ;;  %s1684_s27 = smov %s1482_s17 }
 0x499   : > { %s1685_s28 = smov %s1471_s14  ;;  %26 = sbr.rel (!%p24_p2) target bundleno = 7 (0x7), region = 115 }
 0x4a0   :  { %1033 = vsyncpa [#allocation3], 1 }
 0x4a1   :  { %1035 = vsyncpa [#allocation3 + $0x1], 1 }

// kernel: pfgnn_forward.17
= control target key start
LH: loop header
LB: loop body
LE: loop exit
PB: predicated region body
PF: predicated region fallthrough
CT: control target
= control target key end

     0   :  { %v373_v0 = vmov 0.0   ;;  %vm374_vm0 = vmmov 0   ;;  %vm86_vm1 = vcmask 785408   ;;  %vm171_vm2 = vcmask 523264   ;;  %s469_s1 = inlined_call_operand.vmem [shape: bf16[96,64], index: 1, kind: input, shape index: {}]   ;;  %s470_s3 = inlined_call_operand.vmem [shape: bf16[64,32], index: 3, kind: input, shape index: {}]   ;;  %s471_s0 = inlined_call_operand.vmem [shape: f32[8,96], index: 0, kind: input, shape index: {}]   ;;  %s472_s5 = inlined_call_operand.vmem [shape: bf16[32,1], index: 5, kind: input, shape index: {}]   ;;  %s473_s2 = inlined_call_operand.vmem [shape: f32[1,64], index: 2, kind: input, shape index: {}]   ;;  %s474_s6 = inlined_call_operand.<no memory space> [shape: f32[1,1], index: 6, kind: input, shape index: {}]   ;;  %s475_s4 = inlined_call_operand.vmem [shape: f32[1,32], index: 4, kind: input, shape index: {}]   ;;  %s476_s7 = inlined_call_operand.vmem [shape: f32[8,1], index: 7, kind: output, shape index: {}]  }
   0x1   :  { %323 = vmatprep.subr.bf16.mxu0 %v373_v0  ;;  %v361_v1 = vld [vmem:[%s469_s1] sm:$0xff]   ;;  %335 = vmatprep.mubr.msk.bf16.mxu0 %vm374_vm0, %v373_v0  ;;  %v362_v2 = vld [vmem:[%s469_s1 + $0x8] sm:$0xff]   ;;  %v363_v3 = vld [vmem:[%s469_s1 + $0x10] sm:$0xff]   ;;  %v12_v23 = vstv %s474_s6  ;;  %vm240_vm3 = vcmask 261120   ;;  %vm284_vm4 = vcmask 7168  }
   0x2   :  { %339 = vmatprep.subr.bf16.mxu1 %v373_v0  ;;  %347 = vmatprep.mubr.msk.bf16.mxu1 %vm374_vm0, %v373_v0  ;;  %v367_v4 = vld [vmem:[%s470_s3] sm:$0xff]   ;;  %v368_v5 = vld [vmem:[%s470_s3 + $0x8] sm:$0xff]   ;;  %v364_v6 = vld [vmem:[%s469_s1 + $0x18] sm:$0xff]   ;;  %13 = vst [vmem:[#allocation2] sm:$0x1] %v12_v23 }
   0x3   :  { %324 = vmatpush3.bf16.msra.mxu0 %v361_v1  ;;  %340 = vmatpush3.bf16.msra.mxu1 %v367_v4  ;;  %v365_v7 = vld [vmem:[%s469_s1 + $0x20] sm:$0xff]   ;;  %v366_v8 = vld [vmem:[%s469_s1 + $0x28] sm:$0xff]   ;;  %v369_v11 = vld [vmem:[%s470_s3 + $0x10] sm:$0xff]  }
   0x4   :  { %325 = vmatprep.subr.bf16.mxu0 %v373_v0  ;;  %341 = vmatprep.subr.bf16.mxu1 %v373_v0  ;;  %v29_v9 = vld [vmem:[%s471_s0] sm:$0xff]  ;;  %v370_v12 = vld [vmem:[%s470_s3 + $0x18] sm:$0xff]   ;;  %v372_v22 = vld [vmem:[%s472_s5 + $0x8] sm:$0xff]  }
   0x5   :  { %v30_v10 = vpack.c.bf16 %v29_v9, %v29_v9  ;;  %v290_v13 = vld [vmem:[%s473_s2] ss:$0 sm:$0xff] }
   0x6   :  { %v371_v20 = vld [vmem:[%s472_s5] sm:$0xff]  }
   0x7   :  { %326 = vmatpush3.bf16.msra.mxu0 %v362_v2  ;;  %342 = vmatpush3.bf16.msra.mxu1 %v368_v5  ;;  %v298_v24 = vld [vmem:[%s475_s4] ss:$0 sm:$0xff] }
   0x8   :  { %327 = vmatprep.subr.bf16.mxu0 %v373_v0  ;;  %343 = vmatprep.subr.bf16.mxu1 %v373_v0 }
   0x9   :  { %v304_v32 = vld [vmem:[#allocation2] ss:$0 sm:$0xff] }
   0xb   :  { %328 = vmatpush3.bf16.msra.mxu0 %v363_v3  ;;  %344 = vmatpush3.bf16.msra.mxu1 %v369_v11 }
   0xc   :  { %329 = vmatprep.subr.bf16.mxu0 %v373_v0  ;;  %345 = vmatprep.subr.bf16.mxu1 %v373_v0 }
   0xf   :  { %330 = vmatpush3.bf16.msra.mxu0 %v364_v6  ;;  %346 = vmatpush3.bf16.msra.mxu1 %v370_v12 }
  0x10   :  { %331 = vmatprep.subr.bf16.mxu0 %v373_v0  ;;  %351 = vmatprep.subr.bf16.mxu1 %v373_v0 }
  0x13   :  { %332 = vmatpush3.bf16.msra.mxu0 %v365_v7 }
  0x14   :  { %333 = vmatprep.subr.bf16.mxu0 %v373_v0 }
  0x17   :  { %334 = vmatpush3.bf16.msra.mxu0 %v366_v8 }
  0x1a   :  { %336 = vmatmul.mubr.msk.bf16.vlgmr.msra.gmra.mrb[0].mxu0 %vm86_vm1, %v30_v10 }
  0xed   :  { %v124_v14 = vpop.f32.mrb[0].mxu0 }
  0xee   :  { %v125_v15 = vadd.f32 %v290_v13, %v124_v14  ;;  %v337_v16 = vpop.f32.mrb[1].mxu0 }
  0xef   :  { %v127_v17 = vpop.f32.mrb[2].mxu0 }
  0xf0   :  { %v130_v18 = vmax.f32 %v125_v15, 0.0  ;;  %v338_v19 = vpop.f32.mrb[3].mxu0 }
  0xf2   :  { %v131_v21 = vpack.c.bf16 %v130_v18, %v130_v18 }
  0xf4   :  { %348 = vmatmul.mubr.msk.bf16.vlgmr.msra.gmra.mrb[0].mxu1 %vm171_vm2, %v131_v21 }
  0xf5   :  { %352 = vmatpush3.bf16.msra.mxu1 %v371_v20  ;;  %355 = vmatprep.mubr.msk.bf16.mxu1 %vm374_vm0, %v373_v0 }
  0xf6   :  { %353 = vmatprep.subr.bf16.mxu1 %v373_v0 }
  0xf9   :  { %354 = vmatpush3.bf16.msra.mxu1 %v372_v22 }
 0x1c7   :  { %v209_v25 = vpop.f32.mrb[0].mxu1 }
 0x1c8   :  { %v210_v26 = vadd.f32 %v298_v24, %v209_v25  ;;  %v349_v27 = vpop.f32.mrb[1].mxu1 }
 0x1c9   :  { %v212_v28 = vpop.f32.mrb[2].mxu1 }
 0x1ca   :  { %v215_v29 = vmax.f32 %v210_v26, 0.0  ;;  %v350_v30 = vpop.f32.mrb[3].mxu1 }
 0x1cc   :  { %v216_v31 = vpack.c.bf16 %v215_v29, %v215_v29 }
 0x1ce   :  { %356 = vmatmul.mubr.msk.bf16.vlgmr.msra.gmra.mrb[4].mxu1 %vm240_vm3, %v216_v31 }
 0x2a1   :  { %v278_v33 = vpop.f32.mrb[4].mxu1 }
 0x2a2   :  { %v279_v34 = vadd.f32 %v304_v32, %v278_v33  ;;  %v357_v35 = vpop.f32.mrb[5].mxu1 }
 0x2a3   :  { %v281_v36 = vpop.f32.mrb[6].mxu1 }
 0x2a4   :  { %285 = vst.msk [vmem:[%s476_s7] sm:$0xff] %vm284_vm4, %v279_v34  ;;  %v358_v37 = vpop.f32.mrb[7].mxu1 }

</bundles_post_ra>
